<compile_context>
chip_gen: v7x
topology: tpu7x:2x2x1
jax: 0.10.0
libtpu: 0.0.40
codegen_flags: <defaults>
</compile_context>

<pallas_src>
import math

import jax
import jax.numpy as jnp
from jax import lax
from jax.experimental import pallas as pl
from jax.experimental.pallas import tpu as pltpu


# ----------------------------- configuration -------------------------------
B = 2            # batch
DIM = 4          # input channels
DIM_OUT = 8      # output channels
FMAP = 8         # feature-map height = width
PROJ_FACTOR = 2
HEADS = 4
DIM_HEAD = 16

N = FMAP * FMAP                       # tokens per image
ATTN_DIM_IN = DIM_OUT // PROJ_FACTOR  # bottleneck channels
INNER = HEADS * DIM_HEAD              # attention output channels
SCALE = DIM_HEAD ** (-0.5)
BN_EPS = 1e-5
K2 = DIM_OUT + ATTN_DIM_IN            # fused stem output channels: [shortcut | bottleneck]
G = HEADS * B                         # attention batch dim (head-major, image-minor)


# ------------------------------- kernel ------------------------------------
def bottle_block_kernel(x_ref, wstem_ref, bstem_ref, wqkv_ref, emb_ref,
                        b2_ref, w2_ref, b3_ref, o_ref):
    xf = x_ref[...].reshape(B * N, DIM)

    # fused shortcut + bottleneck 1x1 convs (BN folded into weights) + shared ReLU
    stem = jnp.maximum(
        jnp.dot(xf, wstem_ref[...], preferred_element_type=jnp.float32) + bstem_ref[...],
        0.0)                                            # (B*N, K2)
    shortcut = stem[:, :DIM_OUT]                        # (B*N, DIM_OUT) prefix lane slice

    # ONE fused q/k/v projection.  wqkv is zero-padded over the shortcut columns of the
    # fused stem output, so no lane-slice of `stem` is needed here; softmax scale is folded
    # into the q columns and the post-attention BN scale into the v columns.
    qkv = jnp.dot(stem, wqkv_ref[...],
                  preferred_element_type=jnp.float32)   # (B*N, 3*INNER)

    # head-major relayout via static lane slices + free leading-dim reshapes:
    #   (B*N, INNER) head-minor  ->  (G, N, DIM_HEAD),  g = h*B + b
    def to_heads(base):
        cols = [qkv[:, base + h * DIM_HEAD: base + (h + 1) * DIM_HEAD]
                for h in range(HEADS)]
        t = jnp.stack(cols, axis=0)                     # (HEADS, B*N, DIM_HEAD)
        return t.reshape(G, N, DIM_HEAD)

    q = to_heads(0)
    k = to_heads(INNER) + emb_ref[...][None, :, :]      # abs pos-emb folded into K
    v = to_heads(2 * INNER)

    # attention scores + softmax, all (head, image) pairs batched:  (G, N, N)
    sim = lax.dot_general(q, k, (((2,), (2,)), ((0,), (0,))),
                          preferred_element_type=jnp.float32)
    m = jnp.max(sim, axis=-1, keepdims=True)
    p = jnp.exp(sim - m)
    attn = p * pl.reciprocal(jnp.sum(p, axis=-1, keepdims=True), approx=True)

    out = lax.dot_general(attn, v, (((2,), (1,)), ((0,), (0,))),
                          preferred_element_type=jnp.float32)     # (G, N, DIM_HEAD)

    # back to token-major / head-minor (B*N, INNER): free leading reshape + lane concat
    out_hb = out.reshape(HEADS, B * N, DIM_HEAD)
    out_flat = jnp.concatenate([out_hb[h] for h in range(HEADS)], axis=-1)  # (B*N, INNER)

    # post-attention BN bias + ReLU (scale already folded into Wv)
    a2 = jnp.maximum(out_flat + b2_ref[...], 0.0)

    # final 1x1 conv with the head-sum folded into a single K=INNER matmul (BN folded)
    y = jnp.dot(a2, w2_ref[...], preferred_element_type=jnp.float32) + b3_ref[...]

    res = jnp.maximum(y + shortcut, 0.0)                # residual + final activation
    o_ref[...] = res.reshape(B, N, DIM_OUT).astype(o_ref.dtype)


# ------------------------------ wrapper -------------------------------------
@jax.jit
def bottle_block(x_tokens, w_stem, b_stem, w_qkv, emb, b2, w2, b3):
    def full(shape):
        zeros = (0,) * len(shape)
        return pl.BlockSpec(shape, lambda i, _z=zeros: _z)

    return pl.pallas_call(
        bottle_block_kernel,
        out_shape=jax.ShapeDtypeStruct((B, N, DIM_OUT), jnp.float32),
        grid_spec=pltpu.PrefetchScalarGridSpec(
            num_scalar_prefetch=0,
            grid=(1,),                                  # whole block resident, one step
            in_specs=[
                full((B, N, DIM)),
                full((DIM, K2)),
                full((1, K2)),
                full((K2, 3 * INNER)),
                full((N, DIM_HEAD)),
                full((1, INNER)),
                full((INNER, DIM_OUT)),
                full((1, DIM_OUT)),
            ],
            out_specs=full((B, N, DIM_OUT)),
        ),
        compiler_params=pltpu.CompilerParams(
            dimension_semantics=("arbitrary",)),
    )(x_tokens, w_stem, b_stem, w_qkv, emb, b2, w2, b3)


# ------------------------- parameter construction ---------------------------
def bn_fold(gamma, beta, mean, var, eps=BN_EPS):
    s = gamma / jnp.sqrt(var + eps)
    b = beta - mean * s
    return s, b


def make_module_params(key, zero_final_conv=True):
    """PyTorch-level parameters (BN already reduced to per-channel scale/bias)."""
    ks = jax.random.split(key, 6)

    def default_bn(c):
        return bn_fold(jnp.ones((c,)), jnp.zeros((c,)), jnp.zeros((c,)), jnp.ones((c,)))

    ws = jax.random.normal(ks[0], (DIM, DIM_OUT)) / math.sqrt(DIM)           # shortcut conv
    s_sc, b_sc = default_bn(DIM_OUT)
    w1 = jax.random.normal(ks[1], (DIM, ATTN_DIM_IN)) / math.sqrt(DIM)       # net[0] conv
    s1, b1 = default_bn(ATTN_DIM_IN)
    wqkv = jax.random.normal(ks[2], (ATTN_DIM_IN, 3 * INNER)) / math.sqrt(ATTN_DIM_IN)
    emb_h = jax.random.normal(ks[3], (FMAP, DIM_HEAD)) * SCALE               # AbsPosEmb
    emb_w = jax.random.normal(ks[4], (FMAP, DIM_HEAD)) * SCALE
    s2, b2 = default_bn(INNER)                                               # net[5] BN
    if zero_final_conv:                                                      # nn.init.zeros_
        w2 = jnp.zeros((INNER, DIM_OUT))
    else:  # validation-only variant to exercise the attention path
        w2 = jax.random.normal(ks[5], (INNER, DIM_OUT)) / math.sqrt(INNER)
    s3, b3 = default_bn(DIM_OUT)                                             # net[8] BN
    return dict(ws=ws, s_sc=s_sc, b_sc=b_sc, w1=w1, s1=s1, b1=b1, wqkv=wqkv,
                emb_h=emb_h, emb_w=emb_w, s2=s2, b2=b2, w2=w2, s3=s3, b3=b3)


def fold_params(p):
    """Fold BN / softmax scale / pos-emb into weights for the kernel."""
    # fused stem: [shortcut conv | bottleneck conv], BN folded
    w_stem = jnp.concatenate([p['ws'] * p['s_sc'][None, :],
                              p['w1'] * p['s1'][None, :]], axis=1)           # (DIM, K2)
    b_stem = jnp.concatenate([p['b_sc'], p['b1']])[None, :]                  # (1, K2)

    # fused q/k/v weight: scale folded into q columns, BN scale into v columns;
    # zero-padded over the shortcut columns of the fused stem output.
    wq = p['wqkv'][:, :INNER] * SCALE
    wk = p['wqkv'][:, INNER:2 * INNER]
    wv = p['wqkv'][:, 2 * INNER:] * p['s2'][None, :]
    w_qkv = jnp.concatenate([wq, wk, wv], axis=1)                            # (A_IN, 3*INNER)
    w_qkv = jnp.concatenate(
        [jnp.zeros((DIM_OUT, 3 * INNER), jnp.float32), w_qkv], axis=0)       # (K2, 3*INNER)

    emb = (p['emb_h'][:, None, :] + p['emb_w'][None, :, :]).reshape(N, DIM_HEAD)

    b2 = p['b2'][None, :]                                                    # (1, INNER)
    w2 = p['w2'] * p['s3'][None, :]                                          # (INNER, DIM_OUT)
    b3 = p['b3'][None, :]                                                    # (1, DIM_OUT)
    return (w_stem, b_stem, w_qkv, emb, b2, w2, b3)


# ----------------------------- pure-JAX reference ---------------------------
def reference(x_tokens, p):
    shortcut = jax.nn.relu((x_tokens @ p['ws']) * p['s_sc'] + p['b_sc'])
    h1 = jax.nn.relu((x_tokens @ p['w1']) * p['s1'] + p['b1'])
    qkv = h1 @ p['wqkv']
    q, k, v = jnp.split(qkv, 3, axis=-1)
    rs = lambda t: t.reshape(B, N, HEADS, DIM_HEAD).transpose(0, 2, 1, 3)
    q, k, v = map(rs, (q, k, v))
    q = q * SCALE
    emb = (p['emb_h'][:, None, :] + p['emb_w'][None, :, :]).reshape(N, DIM_HEAD)
    sim = jnp.einsum('bhid,bhjd->bhij', q, k) + jnp.einsum('bhid,jd->bhij', q, emb)
    attn = jax.nn.softmax(sim, axis=-1)
    out = jnp.einsum('bhij,bhjd->bhid', attn, v)
    out = out.transpose(0, 2, 1, 3).reshape(B, N, INNER)
    a2 = jax.nn.relu(out * p['s2'] + p['b2'])
    y = (a2 @ p['w2']) * p['s3'] + p['b3']
    return jax.nn.relu(y + shortcut)


# --------------------------------- main --------------------------------------
if __name__ == "__main__":
    key = jax.random.PRNGKey(0)
    kx, kp = jax.random.split(key)

    # PyTorch-style NCHW input, converted to (B, N, C) token layout.
    x_nchw = jax.random.normal(kx, (B, DIM, FMAP, FMAP), dtype=jnp.float32)
    x_tokens = x_nchw.transpose(0, 2, 3, 1).reshape(B, N, DIM)

    # 1) module-faithful parameters (zero-initialized final conv, as in the PyTorch module)
    mod = make_module_params(kp, zero_final_conv=True)
    out_tokens = jax.block_until_ready(bottle_block(x_tokens, *fold_params(mod)))
    ref_tokens = reference(x_tokens, mod)
    assert out_tokens.shape == (B, N, DIM_OUT)
    err = float(jnp.max(jnp.abs(out_tokens - ref_tokens)))
    assert err < 1e-4, err

    # 2) validation-only variant with a nonzero final conv so the attention path is exercised
    #    (relaxed tolerance because of the approx softmax reciprocal, ~2^-12 rel. error).
    mod2 = make_module_params(kp, zero_final_conv=False)
    out2 = jax.block_until_ready(bottle_block(x_tokens, *fold_params(mod2)))
    ref2 = reference(x_tokens, mod2)
    err2 = float(jnp.max(jnp.abs(out2 - ref2)))
    assert err2 < 5e-3, err2

    # back to NCHW to match the PyTorch module's output convention
    out_nchw = out_tokens.reshape(B, FMAP, FMAP, DIM_OUT).transpose(0, 3, 1, 2)
    assert out_nchw.shape == (B, DIM_OUT, FMAP, FMAP)

    print("KERNEL_OK")
</pallas_src>

<mosaic_0001>
module attributes {stable_mosaic.version = 11 : i64} {
  func.func @bottle_block_kernel(%arg0: i32, %arg1: memref<2x64x4xf32, #tpu.memory_space<vmem>>, %arg2: memref<4x12xf32, #tpu.memory_space<vmem>>, %arg3: memref<1x12xf32, #tpu.memory_space<vmem>>, %arg4: memref<12x192xf32, #tpu.memory_space<vmem>>, %arg5: memref<64x16xf32, #tpu.memory_space<vmem>>, %arg6: memref<1x64xf32, #tpu.memory_space<vmem>>, %arg7: memref<64x8xf32, #tpu.memory_space<vmem>>, %arg8: memref<1x8xf32, #tpu.memory_space<vmem>>, %arg9: memref<2x64x8xf32, #tpu.memory_space<vmem>>) attributes {dimension_semantics = [#tpu.dimension_semantics<arbitrary>], iteration_bounds = array<i64: 1>, scalar_prefetch = 0 : i64, scratch_operands = 0 : i64, tpu.core_type = #tpu.core_type<tc>, window_params = [{pipeline_mode = #tpu.pipeline_mode<synchronous>, transform_indices = @transform_0, window_bounds = array<i64: 2, 64, 4>}, {pipeline_mode = #tpu.pipeline_mode<synchronous>, transform_indices = @transform_1, window_bounds = array<i64: 4, 12>}, {pipeline_mode = #tpu.pipeline_mode<synchronous>, transform_indices = @transform_2, window_bounds = array<i64: 1, 12>}, {pipeline_mode = #tpu.pipeline_mode<synchronous>, transform_indices = @transform_3, window_bounds = array<i64: 12, 192>}, {pipeline_mode = #tpu.pipeline_mode<synchronous>, transform_indices = @transform_4, window_bounds = array<i64: 64, 16>}, {pipeline_mode = #tpu.pipeline_mode<synchronous>, transform_indices = @transform_5, window_bounds = array<i64: 1, 64>}, {pipeline_mode = #tpu.pipeline_mode<synchronous>, transform_indices = @transform_6, window_bounds = array<i64: 64, 8>}, {pipeline_mode = #tpu.pipeline_mode<synchronous>, transform_indices = @transform_7, window_bounds = array<i64: 1, 8>}, {pipeline_mode = #tpu.pipeline_mode<synchronous>, transform_indices = @transform_8, window_bounds = array<i64: 2, 64, 8>}]} {
    %c0 = arith.constant 0 : index
    %c0_0 = arith.constant 0 : index
    %c0_1 = arith.constant 0 : index
    %0 = vector.load %arg1[%c0, %c0_0, %c0_1] : memref<2x64x4xf32, #tpu.memory_space<vmem>>, vector<2x64x4xf32>
    %1 = vector.shape_cast %0 : vector<2x64x4xf32> to vector<128x4xf32>
    %c0_2 = arith.constant 0 : index
    %c0_3 = arith.constant 0 : index
    %2 = vector.load %arg2[%c0_2, %c0_3] : memref<4x12xf32, #tpu.memory_space<vmem>>, vector<4x12xf32>
    %cst = arith.constant dense<0.000000e+00> : vector<128x12xf32>
    %3 = tpu.matmul %1, %2, %cst {dimension_numbers = #tpu.dot_dimension_numbers<[1], [0], [0], [1], [0, 0, 1, 1], [], []>} : vector<128x4xf32>, vector<4x12xf32>, vector<128x12xf32> -> vector<128x12xf32>
    %c0_4 = arith.constant 0 : index
    %c0_5 = arith.constant 0 : index
    %4 = vector.load %arg3[%c0_4, %c0_5] : memref<1x12xf32, #tpu.memory_space<vmem>>, vector<1x12xf32>
    %5 = vector.broadcast %4 : vector<1x12xf32> to vector<128x12xf32>
    %6 = arith.addf %3, %5 : vector<128x12xf32>
    %cst_6 = arith.constant 0.000000e+00 : f32
    %7 = vector.broadcast %cst_6 : f32 to vector<128x12xf32>
    %8 = arith.maximumf %6, %7 : vector<128x12xf32>
    %9 = vector.extract_strided_slice %8 {offsets = [0, 0], sizes = [128, 8], strides = [1, 1]} : vector<128x12xf32> to vector<128x8xf32>
    %c0_7 = arith.constant 0 : index
    %c0_8 = arith.constant 0 : index
    %10 = vector.load %arg4[%c0_7, %c0_8] : memref<12x192xf32, #tpu.memory_space<vmem>>, vector<12x192xf32>
    %cst_9 = arith.constant dense<0.000000e+00> : vector<128x192xf32>
    %11 = tpu.matmul %8, %10, %cst_9 {dimension_numbers = #tpu.dot_dimension_numbers<[1], [0], [0], [1], [0, 0, 1, 1], [], []>} : vector<128x12xf32>, vector<12x192xf32>, vector<128x192xf32> -> vector<128x192xf32>
    %12 = vector.extract_strided_slice %11 {offsets = [0, 0], sizes = [128, 16], strides = [1, 1]} : vector<128x192xf32> to vector<128x16xf32>
    %13 = vector.extract_strided_slice %11 {offsets = [0, 16], sizes = [128, 16], strides = [1, 1]} : vector<128x192xf32> to vector<128x16xf32>
    %14 = vector.extract_strided_slice %11 {offsets = [0, 32], sizes = [128, 16], strides = [1, 1]} : vector<128x192xf32> to vector<128x16xf32>
    %15 = vector.extract_strided_slice %11 {offsets = [0, 48], sizes = [128, 16], strides = [1, 1]} : vector<128x192xf32> to vector<128x16xf32>
    %16 = vector.shape_cast %12 : vector<128x16xf32> to vector<1x128x16xf32>
    %17 = vector.shape_cast %13 : vector<128x16xf32> to vector<1x128x16xf32>
    %18 = vector.shape_cast %14 : vector<128x16xf32> to vector<1x128x16xf32>
    %19 = vector.shape_cast %15 : vector<128x16xf32> to vector<1x128x16xf32>
    %20 = tpu.concatenate %16, %17, %18, %19 in 0 : vector<1x128x16xf32>, vector<1x128x16xf32>, vector<1x128x16xf32>, vector<1x128x16xf32> -> vector<4x128x16xf32>
    %21 = vector.shape_cast %20 : vector<4x128x16xf32> to vector<8x64x16xf32>
    %22 = vector.extract_strided_slice %11 {offsets = [0, 64], sizes = [128, 16], strides = [1, 1]} : vector<128x192xf32> to vector<128x16xf32>
    %23 = vector.extract_strided_slice %11 {offsets = [0, 80], sizes = [128, 16], strides = [1, 1]} : vector<128x192xf32> to vector<128x16xf32>
    %24 = vector.extract_strided_slice %11 {offsets = [0, 96], sizes = [128, 16], strides = [1, 1]} : vector<128x192xf32> to vector<128x16xf32>
    %25 = vector.extract_strided_slice %11 {offsets = [0, 112], sizes = [128, 16], strides = [1, 1]} : vector<128x192xf32> to vector<128x16xf32>
    %26 = vector.shape_cast %22 : vector<128x16xf32> to vector<1x128x16xf32>
    %27 = vector.shape_cast %23 : vector<128x16xf32> to vector<1x128x16xf32>
    %28 = vector.shape_cast %24 : vector<128x16xf32> to vector<1x128x16xf32>
    %29 = vector.shape_cast %25 : vector<128x16xf32> to vector<1x128x16xf32>
    %30 = tpu.concatenate %26, %27, %28, %29 in 0 : vector<1x128x16xf32>, vector<1x128x16xf32>, vector<1x128x16xf32>, vector<1x128x16xf32> -> vector<4x128x16xf32>
    %31 = vector.shape_cast %30 : vector<4x128x16xf32> to vector<8x64x16xf32>
    %c0_10 = arith.constant 0 : index
    %c0_11 = arith.constant 0 : index
    %32 = vector.load %arg5[%c0_10, %c0_11] : memref<64x16xf32, #tpu.memory_space<vmem>>, vector<64x16xf32>
    %33 = vector.shape_cast %32 : vector<64x16xf32> to vector<1x64x16xf32>
    %34 = vector.broadcast %33 : vector<1x64x16xf32> to vector<8x64x16xf32>
    %35 = arith.addf %31, %34 : vector<8x64x16xf32>
    %36 = vector.extract_strided_slice %11 {offsets = [0, 128], sizes = [128, 16], strides = [1, 1]} : vector<128x192xf32> to vector<128x16xf32>
    %37 = vector.extract_strided_slice %11 {offsets = [0, 144], sizes = [128, 16], strides = [1, 1]} : vector<128x192xf32> to vector<128x16xf32>
    %38 = vector.extract_strided_slice %11 {offsets = [0, 160], sizes = [128, 16], strides = [1, 1]} : vector<128x192xf32> to vector<128x16xf32>
    %39 = vector.extract_strided_slice %11 {offsets = [0, 176], sizes = [128, 16], strides = [1, 1]} : vector<128x192xf32> to vector<128x16xf32>
    %40 = vector.shape_cast %36 : vector<128x16xf32> to vector<1x128x16xf32>
    %41 = vector.shape_cast %37 : vector<128x16xf32> to vector<1x128x16xf32>
    %42 = vector.shape_cast %38 : vector<128x16xf32> to vector<1x128x16xf32>
    %43 = vector.shape_cast %39 : vector<128x16xf32> to vector<1x128x16xf32>
    %44 = tpu.concatenate %40, %41, %42, %43 in 0 : vector<1x128x16xf32>, vector<1x128x16xf32>, vector<1x128x16xf32>, vector<1x128x16xf32> -> vector<4x128x16xf32>
    %45 = vector.shape_cast %44 : vector<4x128x16xf32> to vector<8x64x16xf32>
    %cst_12 = arith.constant dense<0.000000e+00> : vector<8x64x64xf32>
    %46 = tpu.matmul %21, %35, %cst_12 {dimension_numbers = #tpu.dot_dimension_numbers<[2], [2], [1], [1], [0, 0, 0, 1, 1, 1], [0], [0]>} : vector<8x64x16xf32>, vector<8x64x16xf32>, vector<8x64x64xf32> -> vector<8x64x64xf32>
    %cst_13 = arith.constant dense<0xFF800000> : vector<8x64xf32>
    %47 = vector.multi_reduction <maximumf>, %46, %cst_13 [2] : vector<8x64x64xf32> to vector<8x64xf32>
    %48 = vector.shape_cast %47 : vector<8x64xf32> to vector<8x64x1xf32>
    %49 = vector.broadcast %48 : vector<8x64x1xf32> to vector<8x64x64xf32>
    %50 = arith.subf %46, %49 : vector<8x64x64xf32>
    %51 = math.exp %50 : vector<8x64x64xf32>
    %cst_14 = arith.constant dense<0.000000e+00> : vector<8x64xf32>
    %52 = vector.multi_reduction <add>, %51, %cst_14 [2] : vector<8x64x64xf32> to vector<8x64xf32>
    %53 = vector.shape_cast %52 : vector<8x64xf32> to vector<8x64x1xf32>
    %54 = tpu.reciprocal %53 {approx = true} : vector<8x64x1xf32> -> vector<8x64x1xf32>
    %55 = vector.broadcast %54 : vector<8x64x1xf32> to vector<8x64x64xf32>
    %56 = arith.mulf %51, %55 : vector<8x64x64xf32>
    %cst_15 = arith.constant dense<0.000000e+00> : vector<8x64x16xf32>
    %57 = tpu.matmul %56, %45, %cst_15 {dimension_numbers = #tpu.dot_dimension_numbers<[2], [1], [1], [2], [0, 0, 0, 1, 1, 2], [0], [0]>} : vector<8x64x64xf32>, vector<8x64x16xf32>, vector<8x64x16xf32> -> vector<8x64x16xf32>
    %58 = vector.shape_cast %57 : vector<8x64x16xf32> to vector<4x128x16xf32>
    %59 = vector.extract_strided_slice %58 {offsets = [0, 0, 0], sizes = [1, 128, 16], strides = [1, 1, 1]} : vector<4x128x16xf32> to vector<1x128x16xf32>
    %60 = vector.shape_cast %59 : vector<1x128x16xf32> to vector<128x16xf32>
    %61 = vector.extract_strided_slice %58 {offsets = [1, 0, 0], sizes = [1, 128, 16], strides = [1, 1, 1]} : vector<4x128x16xf32> to vector<1x128x16xf32>
    %62 = vector.shape_cast %61 : vector<1x128x16xf32> to vector<128x16xf32>
    %63 = vector.extract_strided_slice %58 {offsets = [2, 0, 0], sizes = [1, 128, 16], strides = [1, 1, 1]} : vector<4x128x16xf32> to vector<1x128x16xf32>
    %64 = vector.shape_cast %63 : vector<1x128x16xf32> to vector<128x16xf32>
    %65 = vector.extract_strided_slice %58 {offsets = [3, 0, 0], sizes = [1, 128, 16], strides = [1, 1, 1]} : vector<4x128x16xf32> to vector<1x128x16xf32>
    %66 = vector.shape_cast %65 : vector<1x128x16xf32> to vector<128x16xf32>
    %67 = tpu.concatenate %60, %62, %64, %66 in 1 : vector<128x16xf32>, vector<128x16xf32>, vector<128x16xf32>, vector<128x16xf32> -> vector<128x64xf32>
    %c0_16 = arith.constant 0 : index
    %c0_17 = arith.constant 0 : index
    %68 = vector.load %arg6[%c0_16, %c0_17] : memref<1x64xf32, #tpu.memory_space<vmem>>, vector<1x64xf32>
    %69 = vector.broadcast %68 : vector<1x64xf32> to vector<128x64xf32>
    %70 = arith.addf %67, %69 : vector<128x64xf32>
    %cst_18 = arith.constant 0.000000e+00 : f32
    %71 = vector.broadcast %cst_18 : f32 to vector<128x64xf32>
    %72 = arith.maximumf %70, %71 : vector<128x64xf32>
    %c0_19 = arith.constant 0 : index
    %c0_20 = arith.constant 0 : index
    %73 = vector.load %arg7[%c0_19, %c0_20] : memref<64x8xf32, #tpu.memory_space<vmem>>, vector<64x8xf32>
    %cst_21 = arith.constant dense<0.000000e+00> : vector<128x8xf32>
    %74 = tpu.matmul %72, %73, %cst_21 {dimension_numbers = #tpu.dot_dimension_numbers<[1], [0], [0], [1], [0, 0, 1, 1], [], []>} : vector<128x64xf32>, vector<64x8xf32>, vector<128x8xf32> -> vector<128x8xf32>
    %c0_22 = arith.constant 0 : index
    %c0_23 = arith.constant 0 : index
    %75 = vector.load %arg8[%c0_22, %c0_23] : memref<1x8xf32, #tpu.memory_space<vmem>>, vector<1x8xf32>
    %76 = vector.broadcast %75 : vector<1x8xf32> to vector<128x8xf32>
    %77 = arith.addf %74, %76 : vector<128x8xf32>
    %78 = arith.addf %77, %9 : vector<128x8xf32>
    %cst_24 = arith.constant 0.000000e+00 : f32
    %79 = vector.broadcast %cst_24 : f32 to vector<128x8xf32>
    %80 = arith.maximumf %78, %79 : vector<128x8xf32>
    %81 = vector.shape_cast %80 : vector<128x8xf32> to vector<2x64x8xf32>
    %c0_25 = arith.constant 0 : index
    %c0_26 = arith.constant 0 : index
    %c0_27 = arith.constant 0 : index
    %82 = vector.load %arg9[%c0_25, %c0_26, %c0_27] : memref<2x64x8xf32, #tpu.memory_space<vmem>>, vector<2x64x8xf32>
    tpu.vector_store %arg9[%c0_25, %c0_26, %c0_27], %81 {strides = array<i32>} : memref<2x64x8xf32, #tpu.memory_space<vmem>>, vector<2x64x8xf32>,
    return
  }
  func.func @transform_0(%arg0: i32) -> (i32, i32, i32) {
    %c0_i32 = arith.constant 0 : i32
    %c0_i32_0 = arith.constant 0 : i32
    %c0_i32_1 = arith.constant 0 : i32
    %c0_i32_2 = arith.constant 0 : i32
    return %c0_i32, %c0_i32_0, %c0_i32_1 : i32, i32, i32
  }
  func.func @transform_1(%arg0: i32) -> (i32, i32) {
    %c0_i32 = arith.constant 0 : i32
    %c0_i32_0 = arith.constant 0 : i32
    %c0_i32_1 = arith.constant 0 : i32
    return %c0_i32, %c0_i32_0 : i32, i32
  }
  func.func @transform_2(%arg0: i32) -> (i32, i32) {
    %c0_i32 = arith.constant 0 : i32
    %c0_i32_0 = arith.constant 0 : i32
    %c0_i32_1 = arith.constant 0 : i32
    return %c0_i32, %c0_i32_0 : i32, i32
  }
  func.func @transform_3(%arg0: i32) -> (i32, i32) {
    %c0_i32 = arith.constant 0 : i32
    %c0_i32_0 = arith.constant 0 : i32
    %c0_i32_1 = arith.constant 0 : i32
    return %c0_i32, %c0_i32_0 : i32, i32
  }
  func.func @transform_4(%arg0: i32) -> (i32, i32) {
    %c0_i32 = arith.constant 0 : i32
    %c0_i32_0 = arith.constant 0 : i32
    %c0_i32_1 = arith.constant 0 : i32
    return %c0_i32, %c0_i32_0 : i32, i32
  }
  func.func @transform_5(%arg0: i32) -> (i32, i32) {
    %c0_i32 = arith.constant 0 : i32
    %c0_i32_0 = arith.constant 0 : i32
    %c0_i32_1 = arith.constant 0 : i32
    return %c0_i32, %c0_i32_0 : i32, i32
  }
  func.func @transform_6(%arg0: i32) -> (i32, i32) {
    %c0_i32 = arith.constant 0 : i32
    %c0_i32_0 = arith.constant 0 : i32
    %c0_i32_1 = arith.constant 0 : i32
    return %c0_i32, %c0_i32_0 : i32, i32
  }
  func.func @transform_7(%arg0: i32) -> (i32, i32) {
    %c0_i32 = arith.constant 0 : i32
    %c0_i32_0 = arith.constant 0 : i32
    %c0_i32_1 = arith.constant 0 : i32
    return %c0_i32, %c0_i32_0 : i32, i32
  }
  func.func @transform_8(%arg0: i32) -> (i32, i32, i32) {
    %c0_i32 = arith.constant 0 : i32
    %c0_i32_0 = arith.constant 0 : i32
    %c0_i32_1 = arith.constant 0 : i32
    %c0_i32_2 = arith.constant 0 : i32
    return %c0_i32, %c0_i32_0, %c0_i32_1 : i32, i32, i32
  }
}

</mosaic_0001>

<bundles_post_ra>
// kernel: bottle_block.1
= control target key start
LH: loop header
LB: loop body
LE: loop exit
PB: predicated region body
PF: predicated region fallthrough
CT: control target
= control target key end

     0   :  { %vm102_vm0 = vcmask 1043456   ;;  %vm53_vm1 = vcmask 31744   ;;  %vm6423_vm2 = vmmov 1   ;;  %v6424_v23 = vmov 0.0   ;;  %s6425_s26 = smov 64   ;;  %s6428_s17 = smov 80   ;;  %s8669_s1 = inlined_call_operand.vmem [shape: f32[4,12], index: 1, kind: input, shape index: {}]   ;;  %s8670_s0 = inlined_call_operand.vmem [shape: f32[2,64,4], index: 0, kind: input, shape index: {}]   ;;  %s8671_s3 = inlined_call_operand.vmem [shape: f32[12,192], index: 3, kind: input, shape index: {}]   ;;  %s8672_s4 = inlined_call_operand.vmem [shape: f32[64,16], index: 4, kind: input, shape index: {}]   ;;  %s8673_s2 = inlined_call_operand.vmem [shape: f32[1,12], index: 2, kind: input, shape index: {}]   ;;  %s8674_s6 = inlined_call_operand.vmem [shape: f32[64,8], index: 6, kind: input, shape index: {}]   ;;  %s8675_s5 = inlined_call_operand.vmem [shape: f32[1,64], index: 5, kind: input, shape index: {}]   ;;  %s8676_s7 = inlined_call_operand.vmem [shape: f32[1,8], index: 7, kind: input, shape index: {}]   ;;  %s8677_s8 = inlined_call_operand.vmem [shape: f32[2,64,8], index: 8, kind: output, shape index: {}]  }
   0x1   :  { %v45_v0 = vld [vmem:[%s8669_s1] sm:$0xf]  ;;  %v30_v2 = vld [vmem:[%s8670_s0 + $0x8] sm:$0xff]  ;;  %v31_v3 = vld [vmem:[%s8670_s0 + $0x10] sm:$0xff]  ;;  %390 = vmatprep.mubr.f32.mxu1 %v6424_v23  ;;  %vm271_vm4 = vcmask 97280   ;;  %vm935_vm5 = vcmask 130048  }
   0x2   :  { %v29_v1 = vld [vmem:[%s8670_s0] sm:$0xff]  ;;  %5022 = vmatprep.subr.msk.mxu0 %vm102_vm0, %v45_v0  ;;  %v32_v4 = vld [vmem:[%s8670_s0 + $0x18] sm:$0xff]  ;;  %v34_v6 = vld [vmem:[%s8670_s0 + $0x28] sm:$0xff]  ;;  %vm2200_vm7 = vcmask 523264   ;;  %s6429_s18 = smov 16   ;;  %s6430_s19 = smov 32  }
   0x3   :  { %5024 = vmatprep.mubr.msk.f32.mxu0 %vm53_vm1, %v29_v1  ;;  %5023 = vmatpush3.msk.msra.mxu0 %vm102_vm0, %v45_v0  ;;  %v33_v5 = vld [vmem:[%s8670_s0 + $0x20] sm:$0xff]  ;;  %v35_v7 = vld [vmem:[%s8670_s0 + $0x30] sm:$0xff]  ;;  %v36_v8 = vld [vmem:[%s8670_s0 + $0x38] sm:$0xff]  ;;  %s6431_s12 = smov 48   ;;  %vm4145_vm8 = vcmask 261120   ;;  %vm4162_vm9 = vcmask 392192  }
   0x4   :  { %5025 = vmatmul.mubr.msk.f32.vlgmr.msra.gmra.mrb[0].mxu0 %vm53_vm1, %v30_v2  ;;  %v37_v9 = vld [vmem:[%s8670_s0 + $0x40] sm:$0xff]  ;;  %v38_v10 = vld [vmem:[%s8670_s0 + $0x48] sm:$0xff]  ;;  %v39_v11 = vld [vmem:[%s8670_s0 + $0x50] sm:$0xff]  ;;  %vm4458_vm10 = vcmask 64512  }
   0x5   :  { %5027 = vmatprep.mubr.msk.f32.mxu0 %vm53_vm1, %v31_v3  ;;  %v40_v12 = vld [vmem:[%s8670_s0 + $0x58] sm:$0xff]  ;;  %v41_v13 = vld [vmem:[%s8670_s0 + $0x60] sm:$0xff]  ;;  %v42_v14 = vld [vmem:[%s8670_s0 + $0x68] sm:$0xff] }
   0x6   :  { %v43_v15 = vld [vmem:[%s8670_s0 + $0x70] sm:$0xff]  ;;  %v44_v16 = vld [vmem:[%s8670_s0 + $0x78] sm:$0xff]  ;;  %v268_v17 = vld [vmem:[%s8671_s3 + $0x8] sm:$0xff] }
   0x7   :  { %v270_v18 = vld [vmem:[%s8671_s3 + $0x18] sm:$0xf]  ;;  %v267_v20 = vld [vmem:[%s8671_s3] sm:$0xff]  ;;  %v269_v21 = vld [vmem:[%s8671_s3 + $0x10] sm:$0xf] }
   0x8   :  { %5028 = vmatmul.mubr.msk.f32.gmra.mrb[2].mxu0 %vm53_vm1, %v32_v4  ;;  %v5536_v19 = vpack.c.bf16 %v270_v18, %v268_v17  ;;  %vm5537_vm3 = vmpackc.low %vm102_vm0, %vm6423_vm2  ;;  %v5539_v22 = vpack.c.bf16 %v269_v21, %v267_v20  ;;  %v647_v24 = vld [vmem:[%s8672_s4] sm:$0xff]  ;;  %v649_v25 = vld [vmem:[%s8672_s4 + $0x10] sm:$0xff] }
   0x9   :  { %5030 = vmatprep.mubr.msk.f32.mxu0 %vm53_vm1, %v33_v5  ;;  %663 = vrot.lane.b32.xlu0 %v647_v24, %s6425_s26  ;;  %v648_v26 = vld [vmem:[%s8672_s4 + $0x8] sm:$0xff]  ;;  %v650_v27 = vld [vmem:[%s8672_s4 + $0x18] sm:$0xff]  ;;  %v651_v28 = vld [vmem:[%s8672_s4 + $0x20] sm:$0xff] }
   0xa   :  { %5538 = vmatprep.subr.msk.bf16.mxu1 %vm5537_vm3, %v5536_v19  ;;  %667 = vrot.lane.b32.xlu1 %v649_v25, %s6425_s26  ;;  %v652_v29 = vld [vmem:[%s8672_s4 + $0x28] sm:$0xff]  ;;  %v653_v30 = vld [vmem:[%s8672_s4 + $0x30] sm:$0xff]  ;;  %v654_v31 = vld [vmem:[%s8672_s4 + $0x38] sm:$0xff]  ;;  %s6427_s4 = smov 112  }
   0xb   :  { %5541 = vmatpush1.bf16.msk.msra.mxu1 %vm5537_vm3, %v5539_v22  ;;  %v6595_v32 = vld [vmem:[%s8673_s2] ss:$0 sm:$0xff]  ;;  %s6426_s2 = smov 96   ;;  %vm6935_vm6 = vmpackc.low %vm935_vm5, %vm935_vm5 }
   0xc   :  { %5031 = vmatmul.mubr.msk.f32.gmra.mrb[4].mxu0 %vm53_vm1, %v34_v6 }
   0xd   :  { %5033 = vmatprep.mubr.msk.f32.mxu0 %vm53_vm1, %v35_v7  ;;  %665 = vrot.lane.b32.xlu0 %v648_v26, %s6425_s26 }
   0xe   :  { %669 = vrot.lane.b32.xlu1 %v650_v27, %s6425_s26 }
  0x10   :  { %5034 = vmatmul.mubr.msk.f32.gmra.mrb[6].mxu0 %vm53_vm1, %v36_v8 }
  0x11   :  { %5036 = vmatprep.mubr.msk.f32.mxu0 %vm53_vm1, %v37_v9  ;;  %671 = vrot.lane.b32.xlu0 %v651_v28, %s6425_s26 }
  0x12   :  { %673 = vrot.lane.b32.xlu1 %v652_v29, %s6425_s26 }
  0x14   :  { %5037 = vmatmul.mubr.msk.f32.gmra.mrb[8].mxu0 %vm53_vm1, %v38_v10 }
  0x15   :  { %5039 = vmatprep.mubr.msk.f32.mxu0 %vm53_vm1, %v39_v11  ;;  %675 = vrot.lane.b32.xlu0 %v653_v30, %s6425_s26 }
  0x16   :  { %677 = vrot.lane.b32.xlu1 %v654_v31, %s6425_s26 }
  0x18   :  { %5040 = vmatmul.mubr.msk.f32.gmra.mrb[10].mxu0 %vm53_vm1, %v40_v12 }
  0x19   :  { %5042 = vmatprep.mubr.msk.f32.mxu0 %vm53_vm1, %v41_v13 }
  0x1c   :  { %5043 = vmatmul.mubr.msk.f32.gmra.mrb[12].mxu0 %vm53_vm1, %v42_v14 }
  0x1d   :  { %5045 = vmatprep.mubr.msk.f32.mxu0 %vm53_vm1, %v43_v15 }
  0x20   :  { %5046 = vmatmul.mubr.msk.f32.gmra.mrb[14].mxu0 %vm53_vm1, %v44_v16 }
  0x7b   :  { %v6724_v17 = vpop.permute.xlu0 %663 }
  0x7c   :  { %v6738_v22 = vpop.permute.xlu1 %667 }
  0x7f   :  { %v6734_v20 = vpop.permute.xlu0 %665 }
  0x80   :  { %v6755_v31 = vpop.permute.xlu1 %669 }
  0xd7   :  { %v5026_v33 = vpop.f32.mrb[0].mxu0 }
  0xd8   :  { %v172_v34 = vpop.f32.mrb[1].mxu0  ;;  %v6601_v36 = vadd.f32 %v5026_v33, %v6595_v32 }
  0xd9   :  { %v6598_v35 = vadd.f32 %v6595_v32, %v172_v34 }
  0xda   :  { %8765 = vst [vmem:[#allocation3_spill] sm:$0xff] %v6601_v36  ;;  %v8693_v41 = vmax.f32 %v6601_v36, 0.0 }
  0xdb   :  { %8764 = vst [vmem:[#allocation2_spill] sm:$0xff] %v6598_v35  ;;  %v8692_v37 = vmax.f32 %v6598_v35, 0.0  ;;  %v5029_v38 = vpop.f32.mrb[2].mxu0 }
  0xdc   :  { %v182_v39 = vpop.f32.mrb[3].mxu0  ;;  %v6618_v45 = vadd.f32 %v5029_v38, %v6595_v32 }
  0xdd   :  { %4499 = vmatmul.mubr.msk.f32.vlgmr.msra.gmra.mrb[0].mxu1 %vm271_vm4, %v8692_v37  ;;  %v6608_v40 = vadd.f32 %v6595_v32, %v182_v39 }
  0xde   :  { %396 = vmatprep.mubr.f32.mxu1 %v6424_v23  ;;  %8767 = vst [vmem:[#allocation5_spill] sm:$0xff] %v6618_v45  ;;  %v8691_v49 = vmax.f32 %v6618_v45, 0.0 }
  0xdf   :  { %8766 = vst [vmem:[#allocation4_spill] sm:$0xff] %v6608_v40  ;;  %v5032_v42 = vpop.f32.mrb[4].mxu0  ;;  %v8690_v44 = vmax.f32 %v6608_v40, 0.0 }
  0xe0   :  { %v192_v43 = vpop.f32.mrb[5].mxu0  ;;  %v6629_v52 = vadd.f32 %v5032_v42, %v6595_v32 }
  0xe1   :  { %4500 = vmatmul.mubr.msk.f32.gmra.mrb[2].mxu1 %vm271_vm4, %v8693_v41  ;;  %v6624_v48 = vadd.f32 %v6595_v32, %v192_v43 }
  0xe2   :  { %402 = vmatprep.mubr.f32.mxu1 %v6424_v23  ;;  %8769 = vst [vmem:[#allocation7_spill] sm:$0xff] %v6629_v52  ;;  %v8689_v56 = vmax.f32 %v6629_v52, 0.0 }
  0xe3   :  { %v5035_v46 = vpop.f32.mrb[6].mxu0  ;;  %8768 = vst [vmem:[#allocation6_spill] sm:$0xff] %v6624_v48  ;;  %v8688_v53 = vmax.f32 %v6624_v48, 0.0 }
  0xe4   :  { %v202_v47 = vpop.f32.mrb[7].mxu0  ;;  %v6645_v60 = vadd.f32 %v5035_v46, %v6595_v32 }
  0xe5   :  { %4501 = vmatmul.mubr.msk.f32.gmra.mrb[4].mxu1 %vm271_vm4, %v8690_v44  ;;  %v6641_v57 = vadd.f32 %v6595_v32, %v202_v47  ;;  %v6773_v47 = vpop.permute.xlu0 %671 }
  0xe6   :  { %408 = vmatprep.mubr.f32.mxu1 %v6424_v23  ;;  %8771 = vst [vmem:[#allocation9_spill] sm:$0xff] %v6645_v60  ;;  %v8687_v0 = vmax.f32 %v6645_v60, 0.0 }
  0xe7   :  { %v5038_v50 = vpop.f32.mrb[8].mxu0  ;;  %8770 = vst [vmem:[#allocation8_spill] sm:$0xff] %v6641_v57  ;;  %v8686_v61 = vmax.f32 %v6641_v57, 0.0 }
  0xe8   :  { %v212_v51 = vpop.f32.mrb[9].mxu0  ;;  %v6661_v2 = vadd.f32 %v5038_v50, %v6595_v32 }
  0xe9   :  { %4502 = vmatmul.mubr.msk.f32.gmra.mrb[6].mxu1 %vm271_vm4, %v8691_v49  ;;  %v6657_v1 = vadd.f32 %v6595_v32, %v212_v51  ;;  %v6779_v51 = vpop.permute.xlu1 %673 }
  0xea   :  { %414 = vmatprep.mubr.f32.mxu1 %v6424_v23  ;;  %8773 = vst [vmem:[#allocation11_spill] sm:$0xff] %v6661_v2  ;;  %v8685_v4 = vmax.f32 %v6661_v2, 0.0 }
  0xeb   :  { %v5041_v54 = vpop.f32.mrb[10].mxu0  ;;  %8772 = vst [vmem:[#allocation10_spill] sm:$0xff] %v6657_v1  ;;  %v8684_v3 = vmax.f32 %v6657_v1, 0.0 }
  0xec   :  { %v222_v55 = vpop.f32.mrb[11].mxu0  ;;  %v6677_v6 = vadd.f32 %v5041_v54, %v6595_v32 }
  0xed   :  { %4503 = vmatmul.mubr.msk.f32.gmra.mrb[8].mxu1 %vm271_vm4, %v8688_v53  ;;  %v6673_v5 = vadd.f32 %v6595_v32, %v222_v55 }
  0xee   :  { %420 = vmatprep.mubr.f32.mxu1 %v6424_v23  ;;  %8775 = vst [vmem:[#allocation13_spill] sm:$0xff] %v6677_v6  ;;  %v8683_v8 = vmax.f32 %v6677_v6, 0.0 }
  0xef   :  { %v5044_v58 = vpop.f32.mrb[12].mxu0  ;;  %8774 = vst [vmem:[#allocation12_spill] sm:$0xff] %v6673_v5  ;;  %v8682_v7 = vmax.f32 %v6673_v5, 0.0 }
  0xf0   :  { %v232_v59 = vpop.f32.mrb[13].mxu0  ;;  %v6693_v10 = vadd.f32 %v5044_v58, %v6595_v32 }
  0xf1   :  { %4504 = vmatmul.mubr.msk.f32.gmra.mrb[10].mxu1 %vm271_vm4, %v8689_v56  ;;  %v6689_v9 = vadd.f32 %v6595_v32, %v232_v59 }
  0xf2   :  { %426 = vmatprep.mubr.f32.mxu1 %v6424_v23  ;;  %8777 = vst [vmem:[#allocation15_spill] sm:$0xff] %v6693_v10  ;;  %v8681_v12 = vmax.f32 %v6693_v10, 0.0 }
  0xf3   :  { %v5047_v62 = vpop.f32.mrb[14].mxu0  ;;  %8776 = vst [vmem:[#allocation14_spill] sm:$0xff] %v6689_v9  ;;  %v8680_v11 = vmax.f32 %v6689_v9, 0.0 }
  0xf4   :  { %v242_v63 = vpop.f32.mrb[15].mxu0  ;;  %v6709_v14 = vadd.f32 %v5047_v62, %v6595_v32 }
  0xf5   :  { %4505 = vmatmul.mubr.msk.f32.gmra.mrb[12].mxu1 %vm271_vm4, %v8686_v61  ;;  %v6705_v13 = vadd.f32 %v6595_v32, %v242_v63 }
  0xf6   :  { %432 = vmatprep.mubr.f32.mxu1 %v6424_v23  ;;  %8779 = vst [vmem:[#allocation17_spill] sm:$0xff] %v6709_v14  ;;  %v8679_v16 = vmax.f32 %v6709_v14, 0.0 }
  0xf7   :  { %8778 = vst [vmem:[#allocation16_spill] sm:$0xff] %v6705_v13  ;;  %v8678_v15 = vmax.f32 %v6705_v13, 0.0 }
  0xf9   :  { %4506 = vmatmul.mubr.msk.f32.gmra.mrb[14].mxu1 %vm271_vm4, %v8687_v0 }
  0xfa   :  { %438 = vmatprep.mubr.f32.mxu1 %v6424_v23 }
  0xfd   :  { %4507 = vmatmul.mubr.msk.f32.gmra.mrb[16].mxu1 %vm271_vm4, %v8684_v3 }
  0xfe   :  { %444 = vmatprep.mubr.f32.mxu1 %v6424_v23 }
 0x101   :  { %4508 = vmatmul.mubr.msk.f32.gmra.mrb[18].mxu1 %vm271_vm4, %v8685_v4 }
 0x102   :  { %450 = vmatprep.mubr.f32.mxu1 %v6424_v23 }
 0x105   :  { %4509 = vmatmul.mubr.msk.f32.gmra.mrb[20].mxu1 %vm271_vm4, %v8682_v7 }
 0x106   :  { %456 = vmatprep.mubr.f32.mxu1 %v6424_v23 }
 0x109   :  { %4510 = vmatmul.mubr.msk.f32.gmra.mrb[22].mxu1 %vm271_vm4, %v8683_v8 }
 0x10a   :  { %462 = vmatprep.mubr.f32.mxu1 %v6424_v23 }
 0x10d   :  { %4511 = vmatmul.mubr.msk.f32.gmra.mrb[24].mxu1 %vm271_vm4, %v8680_v11 }
 0x10e   :  { %468 = vmatprep.mubr.f32.mxu1 %v6424_v23 }
 0x111   :  { %4512 = vmatmul.mubr.msk.f32.gmra.mrb[26].mxu1 %vm271_vm4, %v8681_v12 }
 0x112   :  { %474 = vmatprep.mubr.f32.mxu1 %v6424_v23 }
 0x115   :  { %4513 = vmatmul.mubr.msk.f32.gmra.mrb[28].mxu1 %vm271_vm4, %v8678_v15 }
 0x116   :  { %480 = vmatprep.mubr.f32.mxu1 %v6424_v23 }
 0x119   :  { %4514 = vmatmul.mubr.msk.f32.gmra.mrb[30].mxu1 %vm271_vm4, %v8679_v16 }
 0x1b0   :  { %v6726_v18 = vpop.f32.mrb[0].mxu1 }
 0x1b1   :  { %535 = vrot.lane.b32.xlu1 %v6726_v18, %s6426_s2  ;;  %503 = vrot.lane.b32.xlu0 %v6726_v18, %s6427_s4  ;;  %v394_v19 = vpop.f32.mrb[1].mxu1  ;;  %v687_v24 = vadd.f32 %v6724_v17, %v6726_v18 }
 0x1b2   :  { %5064 = vmatprep.mubr.msk.f32.mxu0 %vm935_vm5, %v6726_v18 }
 0x1b4   :  { %v6736_v21 = vpop.f32.mrb[2].mxu1 }
 0x1b5   :  { %537 = vrot.lane.b32.xlu0 %v6736_v21, %s6426_s2  ;;  %505 = vrot.lane.b32.xlu1 %v6736_v21, %s6427_s4  ;;  %v400_v23 = vpop.f32.mrb[3].mxu1  ;;  %v688_v25 = vadd.f32 %v6734_v20, %v6736_v21 }
 0x1b6   :  { %v6748_v26 = vpack.i.bf16 %v400_v23, %v394_v19  ;;  %v6750_v27 = vpack.c.bf16 %v400_v23, %v394_v19 }
 0x1b7   :  { %v5887_v28 = vpack.i.bf16 %v688_v25, %v687_v24  ;;  %v6796_v24 = vpop.permute.xlu0 %675 }
 0x1b8   :  { %8780 = vst [vmem:[#allocation18_spill] sm:$0xff] %v6750_v27  ;;  %v6752_v29 = vpop.f32.mrb[4].mxu1 }
 0x1b9   :  { %5888 = vrot.lane.b32.xlu0 %v5887_v28, %s6425_s26  ;;  %v406_v30 = vpop.f32.mrb[5].mxu1  ;;  %v689_v34 = vadd.f32 %v6738_v22, %v6752_v29  ;;  %v6802_v28 = vpop.permute.xlu1 %677 }
 0x1bc   :  { %v6757_v32 = vpop.f32.mrb[6].mxu1 }
 0x1bd   :  { %507 = vrot.lane.b32.xlu0 %v6752_v29, %s6427_s4  ;;  %509 = vrot.lane.b32.xlu1 %v6757_v32, %s6427_s4  ;;  %v412_v33 = vpop.f32.mrb[7].mxu1  ;;  %v690_v38 = vadd.f32 %v6755_v31, %v6757_v32 }
 0x1be   :  { %v6767_v39 = vpack.i.bf16 %v412_v33, %v406_v30  ;;  %v6769_v42 = vpack.c.bf16 %v412_v33, %v406_v30 }
 0x1bf   :  { %v5892_v43 = vpack.i.bf16 %v690_v38, %v689_v34 }
 0x1c0   :  { %8781 = vst [vmem:[#allocation19_spill] sm:$0xff] %v6769_v42  ;;  %v6771_v46 = vpop.f32.mrb[8].mxu1 }
 0x1c1   :  { %539 = vrot.lane.b32.xlu0 %v6752_v29, %s6426_s2  ;;  %541 = vrot.lane.b32.xlu1 %v6757_v32, %s6426_s2  ;;  %v418_v50 = vpop.f32.mrb[9].mxu1  ;;  %v691_v54 = vadd.f32 %v6773_v47, %v6771_v46 }
 0x1c4   :  { %v6783_v55 = vpop.f32.mrb[10].mxu1 }
 0x1c5   :  { %5893 = vrot.lane.b32.xlu1 %v5892_v43, %s6425_s26  ;;  %513 = vrot.lane.b32.xlu0 %v6783_v55, %s6427_s4  ;;  %v424_v58 = vpop.f32.mrb[11].mxu1  ;;  %v692_v59 = vadd.f32 %v6779_v51, %v6783_v55 }
 0x1c6   :  { %v6790_v62 = vpack.i.bf16 %v424_v58, %v418_v50  ;;  %v6792_v63 = vpack.c.bf16 %v424_v58, %v418_v50 }
 0x1c7   :  { %v5897_v19 = vpack.i.bf16 %v692_v59, %v691_v54 }
 0x1c8   :  { %8782 = vst [vmem:[#allocation20_spill] sm:$0xff] %v6792_v63  ;;  %v6794_v23 = vpop.f32.mrb[12].mxu1 }
 0x1c9   :  { %511 = vrot.lane.b32.xlu1 %v6771_v46, %s6427_s4  ;;  %545 = vrot.lane.b32.xlu0 %v6783_v55, %s6426_s2  ;;  %v430_v25 = vpop.f32.mrb[13].mxu1  ;;  %v693_v30 = vadd.f32 %v6796_v24, %v6794_v23 }
 0x1cc   :  { %v6806_v33 = vpop.f32.mrb[14].mxu1 }
 0x1cd   :  { %543 = vrot.lane.b32.xlu1 %v6771_v46, %s6426_s2  ;;  %5898 = vrot.lane.b32.xlu0 %v5897_v19, %s6425_s26  ;;  %v436_v34 = vpop.f32.mrb[15].mxu1  ;;  %v694_v38 = vadd.f32 %v6802_v28, %v6806_v33 }
 0x1ce   :  { %v6813_v43 = vpack.i.bf16 %v436_v34, %v430_v25  ;;  %v6815_v50 = vpack.c.bf16 %v436_v34, %v430_v25 }
 0x1cf   :  { %v5902_v54 = vpack.i.bf16 %v694_v38, %v693_v30 }
 0x1d0   :  { %8783 = vst [vmem:[#allocation21_spill] sm:$0xff] %v6815_v50  ;;  %v6817_v58 = vpop.f32.mrb[16].mxu1 }
 0x1d1   :  { %515 = vrot.lane.b32.xlu0 %v6794_v23, %s6427_s4  ;;  %517 = vrot.lane.b32.xlu1 %v6806_v33, %s6427_s4  ;;  %v442_v59 = vpop.f32.mrb[17].mxu1  ;;  %v695_v25 = vadd.f32 %v6724_v17, %v6817_v58 }
 0x1d4   :  { %v6823_v15 = vpop.f32.mrb[18].mxu1 }
 0x1d5   :  { %5903 = vrot.lane.b32.xlu1 %v5902_v54, %s6425_s26  ;;  %521 = vrot.lane.b32.xlu0 %v6823_v15, %s6427_s4  ;;  %v448_v19 = vpop.f32.mrb[19].mxu1  ;;  %v696_v30 = vadd.f32 %v6734_v20, %v6823_v15 }
 0x1d6   :  { %v6832_v34 = vpack.i.bf16 %v448_v19, %v442_v59  ;;  %v6834_v38 = vpack.c.bf16 %v448_v19, %v442_v59 }
 0x1d7   :  { %v5907_v16 = vpack.i.bf16 %v696_v30, %v695_v25 }
 0x1d8   :  { %8784 = vst [vmem:[#allocation22_spill] sm:$0xff] %v6834_v38  ;;  %v6836_v11 = vpop.f32.mrb[20].mxu1 }
 0x1d9   :  { %519 = vrot.lane.b32.xlu1 %v6817_v58, %s6427_s4  ;;  %553 = vrot.lane.b32.xlu0 %v6823_v15, %s6426_s2  ;;  %v454_v54 = vpop.f32.mrb[21].mxu1  ;;  %v697_v59 = vadd.f32 %v6738_v22, %v6836_v11 }
 0x1dc   :  { %v6842_v12 = vpop.f32.mrb[22].mxu1 }
 0x1dd   :  { %551 = vrot.lane.b32.xlu1 %v6817_v58, %s6426_s2  ;;  %5908 = vrot.lane.b32.xlu0 %v5907_v16, %s6425_s26  ;;  %v460_v7 = vpop.f32.mrb[23].mxu1  ;;  %v698_v19 = vadd.f32 %v6755_v31, %v6842_v12 }
 0x1de   :  { %v6851_v25 = vpack.i.bf16 %v460_v7, %v454_v54  ;;  %v6853_v30 = vpack.c.bf16 %v460_v7, %v454_v54 }
 0x1df   :  { %v5912_v8 = vpack.i.bf16 %v698_v19, %v697_v59 }
 0x1e0   :  { %8785 = vst [vmem:[#allocation23_spill] sm:$0xff] %v6853_v30  ;;  %v6855_v3 = vpop.f32.mrb[24].mxu1 }
 0x1e1   :  { %549 = vrot.lane.b32.xlu1 %v6806_v33, %s6426_s2  ;;  %523 = vrot.lane.b32.xlu0 %v6836_v11, %s6427_s4  ;;  %v466_v16 = vpop.f32.mrb[25].mxu1  ;;  %v699_v54 = vadd.f32 %v6773_v47, %v6855_v3 }
 0x1e4   :  { %v6861_v4 = vpop.f32.mrb[26].mxu1 }
 0x1e5   :  { %547 = vrot.lane.b32.xlu0 %v6794_v23, %s6426_s2  ;;  %525 = vrot.lane.b32.xlu1 %v6842_v12, %s6427_s4  ;;  %v472_v7 = vpop.f32.mrb[27].mxu1  ;;  %v700_v59 = vadd.f32 %v6779_v51, %v6861_v4 }
 0x1e6   :  { %v6871_v19 = vpack.i.bf16 %v472_v7, %v466_v16  ;;  %v6873_v61 = vpack.c.bf16 %v472_v7, %v466_v16 }
 0x1e7   :  { %v5917_v0 = vpack.i.bf16 %v700_v59, %v699_v54 }
 0x1e8   :  { %8786 = vst [vmem:[#allocation24_spill] sm:$0xff] %v6871_v19  ;;  %8787 = vst [vmem:[#allocation25_spill] sm:$0xff] %v6873_v61  ;;  %v6875_v53 = vpop.f32.mrb[28].mxu1 }
 0x1e9   :  { %5913 = vrot.lane.b32.xlu1 %v5912_v8, %s6425_s26  ;;  %529 = vrot.lane.b32.xlu0 %v6861_v4, %s6427_s4  ;;  %v478_v56 = vpop.f32.mrb[29].mxu1  ;;  %v701_v16 = vadd.f32 %v6796_v24, %v6875_v53 }
 0x1ec   :  { %v6880_v44 = vpop.f32.mrb[30].mxu1 }
 0x1ed   :  { %527 = vrot.lane.b32.xlu1 %v6855_v3, %s6427_s4  ;;  %555 = vrot.lane.b32.xlu0 %v6836_v11, %s6426_s2  ;;  %v484_v49 = vpop.f32.mrb[31].mxu1  ;;  %v702_v7 = vadd.f32 %v6802_v28, %v6880_v44 }
 0x1ee   :  { %v6890_v8 = vpack.i.bf16 %v484_v49, %v478_v56  ;;  %v6892_v54 = vpack.c.bf16 %v484_v49, %v478_v56 }
 0x1ef   :  { %v5922_v59 = vpack.i.bf16 %v702_v7, %v701_v16 }
 0x1f0   :  { %8788 = vst [vmem:[#allocation26_spill] sm:$0xff] %v6890_v8  ;;  %8789 = vst [vmem:[#allocation27_spill] sm:$0xff] %v6892_v54 }
 0x1f1   :  { %557 = vrot.lane.b32.xlu1 %v6842_v12, %s6426_s2  ;;  %531 = vrot.lane.b32.xlu0 %v6875_v53, %s6427_s4 }
 0x1f5   :  { %5918 = vrot.lane.b32.xlu0 %v5917_v0, %s6425_s26  ;;  %533 = vrot.lane.b32.xlu1 %v6880_v44, %s6427_s4 }
 0x1f9   :  { %559 = vrot.lane.b32.xlu0 %v6855_v3, %s6426_s2  ;;  %561 = vrot.lane.b32.xlu1 %v6861_v4, %s6426_s2 }
 0x1fd   :  { %567 = vrot.lane.b32.xlu0 %v6726_v18, %s6428_s17  ;;  %569 = vrot.lane.b32.xlu1 %v6736_v21, %s6428_s17 }
 0x201   :  { %563 = vrot.lane.b32.xlu0 %v6875_v53, %s6426_s2  ;;  %573 = vrot.lane.b32.xlu1 %v6757_v32, %s6428_s17 }
 0x205   :  { %571 = vrot.lane.b32.xlu0 %v6752_v29, %s6428_s17  ;;  %565 = vrot.lane.b32.xlu1 %v6880_v44, %s6426_s2 }
 0x209   :  { %575 = vrot.lane.b32.xlu0 %v6771_v46, %s6428_s17 }
 0x20d   :  { %5923 = vrot.lane.b32.xlu0 %v5922_v59, %s6425_s26 }
 0x211   :  { %583 = vrot.lane.b32.xlu0 %v6817_v58, %s6428_s17 }
 0x223   :  { %v6922_v49 = vpop.permute.xlu1 %535  ;;  %v504_v56 = vpop.permute.xlu0 %503 }
 0x224   :  { %5120 = vmatprep.mubr.msk.f32.mxu1 %vm935_vm5, %v504_v56  ;;  %v703_v16 = vadd.f32 %v6724_v17, %v504_v56 }
 0x227   :  { %v6925_v0 = vpop.permute.xlu0 %537  ;;  %v6927_v18 = vpop.permute.xlu1 %505 }
 0x228   :  { %v704_v7 = vadd.f32 %v6734_v20, %v6927_v18 }
 0x22a   :  { %v5927_v37 = vpack.i.bf16 %v704_v7, %v703_v16 }
 0x22b   :  { %v5889_v41 = vpop.permute.xlu0 %5888 }
 0x22c   :  { %v5891_v59 = vunpack.i.h.bf16 %v5889_v41  ;;  %v5890_v13 = vunpack.i.l.bf16 %v5889_v41  ;;  %5928 = vrot.lane.b32.xlu1 %v5927_v37, %s6425_s26 }
 0x22e   :  { %v5542_v9 = vpack.c.bf16 %v5891_v59, %v5890_v13 }
 0x22f   :  { %v6939_v10 = vpop.permute.xlu0 %507  ;;  %v6941_v5 = vpop.permute.xlu1 %509 }
 0x230   :  { %v705_v56 = vadd.f32 %v6738_v22, %v6939_v10  ;;  %v706_v16 = vadd.f32 %v6755_v31, %v6941_v5  ;;  %5544 = vmatprep.subr.msk.bf16.mxu0 %vm6935_vm6, %v5542_v9  ;;  %577 = vrot.lane.b32.xlu1 %v6783_v55, %s6428_s17 }
 0x231   :  { %5547 = vmatpush3.bf16.xpose.msk.msra.mxu0 %vm6935_vm6, %v5542_v9 }
 0x232   :  { %v5932_v37 = vpack.i.bf16 %v706_v16, %v705_v56 }
 0x233   :  { %v6953_v41 = vpop.permute.xlu0 %539  ;;  %v6955_v13 = vpop.permute.xlu1 %541 }
 0x234   :  { %5933 = vrot.lane.b32.xlu1 %v5932_v37, %s6425_s26 }
 0x237   :  { %v5894_v7 = vpop.permute.xlu1 %5893  ;;  %v6958_v59 = vpop.permute.xlu0 %513 }
 0x238   :  { %v5896_v6 = vunpack.i.h.bf16 %v5894_v7  ;;  %v5895_v1 = vunpack.i.l.bf16 %v5894_v7  ;;  %585 = vrot.lane.b32.xlu1 %v6823_v15, %s6428_s17  ;;  %v708_v9 = vadd.f32 %v6779_v51, %v6958_v59 }
 0x23a   :  { %v5548_v2 = vpack.c.bf16 %v5896_v6, %v5895_v1 }
 0x23b   :  { %v6962_v57 = vpop.permute.xlu1 %511  ;;  %v6964_v60 = vpop.permute.xlu0 %545 }
 0x23c   :  { %8792 = vst [vmem:[#allocation28_spill] sm:$0xff] %v6964_v60  ;;  %v707_v56 = vadd.f32 %v6773_v47, %v6962_v57  ;;  %5550 = vmatprep.subr.msk.bf16.mxu0 %vm6935_vm6, %v5548_v2 }
 0x23d   :  { %5553 = vmatpush3.bf16.xpose.msk.msra.mxu0 %vm6935_vm6, %v5548_v2 }
 0x23e   :  { %v5937_v16 = vpack.i.bf16 %v708_v9, %v707_v56 }
 0x23f   :  { %v6974_v37 = vpop.permute.xlu1 %543  ;;  %v5899_v1 = vpop.permute.xlu0 %5898 }
 0x240   :  { %8793 = vst [vmem:[#allocation29_spill] sm:$0xff] %v6974_v37  ;;  %v5901_v6 = vunpack.i.h.bf16 %v5899_v1  ;;  %v5900_v7 = vunpack.i.l.bf16 %v5899_v1  ;;  %5938 = vrot.lane.b32.xlu0 %v5937_v16, %s6425_s26 }
 0x242   :  { %v5554_v48 = vpack.c.bf16 %v5901_v6, %v5900_v7 }
 0x243   :  { %v6977_v52 = vpop.permute.xlu0 %515  ;;  %v6979_v40 = vpop.permute.xlu1 %517 }
 0x244   :  { %v709_v45 = vadd.f32 %v6796_v24, %v6977_v52  ;;  %v710_v35 = vadd.f32 %v6802_v28, %v6979_v40  ;;  %5556 = vmatprep.subr.msk.bf16.mxu0 %vm6935_vm6, %v5554_v48  ;;  %579 = vrot.lane.b32.xlu0 %v6794_v23, %s6428_s17 }
 0x245   :  { %5559 = vmatpush3.bf16.xpose.msk.msra.mxu0 %vm6935_vm6, %v5554_v48 }
 0x246   :  { %v5942_v2 = vpack.i.bf16 %v710_v35, %v709_v45 }
 0x247   :  { %v5904_v9 = vpop.permute.xlu1 %5903  ;;  %v6991_v56 = vpop.permute.xlu0 %521 }
 0x248   :  { %v5906_v16 = vunpack.i.h.bf16 %v5904_v9  ;;  %v5905_v1 = vunpack.i.l.bf16 %v5904_v9  ;;  %5943 = vrot.lane.b32.xlu0 %v5942_v2, %s6425_s26  ;;  %v712_v54 = vadd.f32 %v6734_v20, %v6991_v56 }
 0x24a   :  { %v5560_v6 = vpack.c.bf16 %v5906_v16, %v5905_v1 }
 0x24b   :  { %v6994_v7 = vpop.permute.xlu1 %519  ;;  %v6996_v36 = vpop.permute.xlu0 %553 }
 0x24c   :  { %8794 = vst [vmem:[#allocation30_spill] sm:$0xff] %v6996_v36  ;;  %v711_v61 = vadd.f32 %v6724_v17, %v6994_v7  ;;  %5562 = vmatprep.subr.msk.bf16.mxu0 %vm6935_vm6, %v5560_v6  ;;  %587 = vrot.lane.b32.xlu0 %v6836_v11, %s6428_s17 }
 0x24d   :  { %5565 = vmatpush3.bf16.xpose.msk.msra.mxu0 %vm6935_vm6, %v5560_v6 }
 0x24e   :  { %v5947_v35 = vpack.i.bf16 %v712_v54, %v711_v61 }
 0x24f   :  { %v7008_v45 = vpop.permute.xlu1 %551  ;;  %v5909_v48 = vpop.permute.xlu0 %5908 }
 0x250   :  { %v5911_v2 = vunpack.i.h.bf16 %v5909_v48  ;;  %v5910_v9 = vunpack.i.l.bf16 %v5909_v48  ;;  %5948 = vrot.lane.b32.xlu1 %v5947_v35, %s6425_s26 }
 0x252   :  { %v5566_v16 = vpack.c.bf16 %v5911_v2, %v5910_v9 }
 0x253   :  { %v7011_v1 = vpop.permute.xlu1 %549  ;;  %v7013_v30 = vpop.permute.xlu0 %523 }
 0x254   :  { %8795 = vst [vmem:[#allocation31_spill] sm:$0xff] %v7011_v1  ;;  %5065 = vmatmul.mubr.msk.f32.vlgmr.msra.gmra.mrb[16].mxu0 %vm935_vm5, %v6736_v21  ;;  %5568 = vmatprep.subr.msk.bf16.mxu0 %vm6935_vm6, %v5566_v16  ;;  %v713_v6 = vadd.f32 %v6738_v22, %v7013_v30 }
 0x255   :  { %581 = vrot.lane.b32.xlu1 %v6806_v33, %s6428_s17  ;;  %5067 = vmatprep.mubr.msk.f32.mxu0 %vm935_vm5, %v6752_v29 }
 0x256   :  { %5571 = vmatpush3.bf16.xpose.msk.msra.mxu0 %vm6935_vm6, %v5566_v16 }
 0x257   :  { %v7025_v61 = vpop.permute.xlu0 %547  ;;  %v7027_v54 = vpop.permute.xlu1 %525 }
 0x258   :  { %v714_v21 = vadd.f32 %v6755_v31, %v7027_v54  ;;  %5068 = vmatmul.mubr.msk.f32.gmra.mrb[18].mxu0 %vm935_vm5, %v6757_v32  ;;  %v720_v32 = vadd.f32 %v6734_v20, %v6925_v0 }
 0x259   :  { %5070 = vmatprep.mubr.msk.f32.mxu0 %vm935_vm5, %v6771_v46 }
 0x25a   :  { %v5952_v29 = vpack.i.bf16 %v714_v21, %v713_v6 }
 0x25b   :  { %v5914_v35 = vpop.permute.xlu1 %5913  ;;  %v7037_v48 = vpop.permute.xlu0 %529 }
 0x25c   :  { %v5916_v2 = vunpack.i.h.bf16 %v5914_v35  ;;  %v5915_v9 = vunpack.i.l.bf16 %v5914_v35  ;;  %5071 = vmatmul.mubr.msk.f32.gmra.mrb[20].mxu0 %vm935_vm5, %v6783_v55  ;;  %5953 = vrot.lane.b32.xlu1 %v5952_v29, %s6425_s26  ;;  %v716_v6 = vadd.f32 %v6779_v51, %v7037_v48  ;;  %v719_v55 = vadd.f32 %v6724_v17, %v6922_v49 }
 0x25d   :  { %5073 = vmatprep.mubr.msk.f32.mxu0 %vm935_vm5, %v6794_v23 }
 0x25e   :  { %v5572_v16 = vpack.c.bf16 %v5916_v2, %v5915_v9  ;;  %v721_v2 = vadd.f32 %v6738_v22, %v6953_v41  ;;  %v722_v9 = vadd.f32 %v6755_v31, %v6955_v13 }
 0x25f   :  { %v7046_v38 = vpop.permute.xlu1 %527  ;;  %v7048_v46 = vpop.permute.xlu0 %555 }
 0x260   :  { %8796 = vst [vmem:[#allocation32_spill] sm:$0xff] %v7048_v46  ;;  %v715_v21 = vadd.f32 %v6773_v47, %v7046_v38  ;;  %5074 = vmatmul.mubr.msk.f32.gmra.mrb[22].mxu0 %vm935_vm5, %v6806_v33  ;;  %5574 = vmatprep.subr.msk.bf16.mxu0 %vm6935_vm6, %v5572_v16  ;;  %v5957_v33 = vpack.i.bf16 %v720_v32, %v719_v55 }
 0x261   :  { %589 = vrot.lane.b32.xlu1 %v6842_v12, %s6428_s17  ;;  %5577 = vmatpush3.bf16.xpose.msk.msra.mxu0 %vm6935_vm6, %v5572_v16  ;;  %v5967_v42 = vpack.i.bf16 %v722_v9, %v721_v2  ;;  %v724_v2 = vadd.f32 %v6779_v51, %v6964_v60  ;;  %v725_v9 = vadd.f32 %v6796_v24, %v7025_v61 }
 0x262   :  { %5092 = vmatprep.mubr.msk.f32.mxu0 %vm935_vm5, %v6817_v58  ;;  %v5962_v23 = vpack.i.bf16 %v716_v6, %v715_v21 }
 0x263   :  { %v7066_v29 = vpop.permute.xlu1 %557  ;;  %v7068_v35 = vpop.permute.xlu0 %531 }
 0x264   :  { %8797 = vst [vmem:[#allocation33_spill] sm:$0xff] %v7066_v29  ;;  %5963 = vrot.lane.b32.xlu0 %v5962_v23, %s6425_s26  ;;  %v717_v58 = vadd.f32 %v6796_v24, %v7068_v35 }
 0x265   :  { %5958 = vrot.lane.b32.xlu1 %v5957_v33, %s6425_s26 }
 0x267   :  { %v5919_v16 = vpop.permute.xlu0 %5918  ;;  %v7076_v50 = vpop.permute.xlu1 %533 }
 0x268   :  { %v5921_v6 = vunpack.i.h.bf16 %v5919_v16  ;;  %v5920_v21 = vunpack.i.l.bf16 %v5919_v16  ;;  %v718_v32 = vadd.f32 %v6802_v28, %v7076_v50  ;;  %591 = vrot.lane.b32.xlu0 %v6855_v3, %s6428_s17  ;;  %v723_v16 = vadd.f32 %v6773_v47, %v6974_v37 }
 0x269   :  { %593 = vrot.lane.b32.xlu1 %v6861_v4, %s6428_s17  ;;  %v726_v37 = vadd.f32 %v6802_v28, %v7011_v1 }
 0x26a   :  { %v5578_v55 = vpack.c.bf16 %v5921_v6, %v5920_v21  ;;  %v5972_v23 = vpack.i.bf16 %v718_v32, %v717_v58  ;;  %v727_v58 = vadd.f32 %v6724_v17, %v7008_v45  ;;  %v5977_v32 = vpack.i.bf16 %v724_v2, %v723_v16 }
 0x26b   :  { %v7086_v33 = vpop.permute.xlu0 %559  ;;  %v7088_v63 = vpop.permute.xlu1 %561 }
 0x26c   :  { %8798 = vst [vmem:[#allocation34_spill] sm:$0xff] %v7086_v33  ;;  %8799 = vst [vmem:[#allocation35_spill] sm:$0xff] %v7088_v63  ;;  %5580 = vmatprep.subr.msk.bf16.mxu0 %vm6935_vm6, %v5578_v55  ;;  %5973 = vrot.lane.b32.xlu0 %v5972_v23, %s6425_s26  ;;  %v731_v16 = vadd.f32 %v6773_v47, %v7086_v33  ;;  %v732_v2 = vadd.f32 %v6779_v51, %v7088_v63 }
 0x26d   :  { %5968 = vrot.lane.b32.xlu1 %v5967_v42, %s6425_s26  ;;  %5583 = vmatpush3.bf16.xpose.msk.msra.mxu0 %vm6935_vm6, %v5578_v55  ;;  %v728_v42 = vadd.f32 %v6734_v20, %v6996_v36  ;;  %v730_v55 = vadd.f32 %v6755_v31, %v7066_v29  ;;  %v729_v36 = vadd.f32 %v6738_v22, %v7048_v46 }
 0x26e   :  { %v5987_v29 = vpack.i.bf16 %v726_v37, %v725_v9  ;;  %v5997_v63 = vpack.i.bf16 %v732_v2, %v731_v16 }
 0x26f   :  { %v7100_v6 = vpop.permute.xlu0 %567  ;;  %v7102_v21 = vpop.permute.xlu1 %569  ;;  %v5982_v60 = vpack.i.bf16 %v728_v42, %v727_v58  ;;  %v5992_v46 = vpack.i.bf16 %v730_v55, %v729_v36 }
 0x270   :  { %8800 = vst [vmem:[#allocation36_spill] sm:$0xff] %v7102_v21  ;;  %595 = vrot.lane.b32.xlu0 %v6875_v53, %s6428_s17  ;;  %v735_v58 = vadd.f32 %v6724_v17, %v7100_v6  ;;  %v736_v42 = vadd.f32 %v6734_v20, %v7102_v21 }
 0x271   :  { %597 = vrot.lane.b32.xlu1 %v6880_v44, %s6428_s17 }
 0x272   :  { %v6002_v33 = vpack.i.bf16 %v736_v42, %v735_v58 }
 0x273   :  { %v7116_v23 = vpop.permute.xlu0 %563  ;;  %v7118_v27 = vpop.permute.xlu1 %573 }
 0x274   :  { %5978 = vrot.lane.b32.xlu0 %v5977_v32, %s6425_s26  ;;  %v733_v21 = vadd.f32 %v6796_v24, %v7116_v23  ;;  %v738_v36 = vadd.f32 %v6755_v31, %v7118_v27 }
 0x275   :  { %5983 = vrot.lane.b32.xlu1 %v5982_v60, %s6425_s26 }
 0x277   :  { %v7134_v1 = vpop.permute.xlu0 %571  ;;  %v7136_v32 = vpop.permute.xlu1 %565 }
 0x278   :  { %5988 = vrot.lane.b32.xlu0 %v5987_v29, %s6425_s26  ;;  %v734_v60 = vadd.f32 %v6802_v28, %v7136_v32  ;;  %v737_v37 = vadd.f32 %v6738_v22, %v7134_v1 }
 0x279   :  { %5993 = vrot.lane.b32.xlu1 %v5992_v46, %s6425_s26 }
 0x27a   :  { %v6007_v46 = vpack.i.bf16 %v734_v60, %v733_v21  ;;  %v6012_v55 = vpack.i.bf16 %v738_v36, %v737_v37 }
 0x27b   :  { %v7144_v9 = vpop.permute.xlu0 %575 }
 0x27c   :  { %5998 = vrot.lane.b32.xlu0 %v5997_v63, %s6425_s26 }
 0x27d   :  { %6003 = vrot.lane.b32.xlu1 %v6002_v33, %s6425_s26 }
 0x27f   :  { %v5924_v29 = vpop.permute.xlu0 %5923 }
 0x280   :  { %v5926_v16 = vunpack.i.h.bf16 %v5924_v29  ;;  %v5925_v2 = vunpack.i.l.bf16 %v5924_v29  ;;  %6008 = vrot.lane.b32.xlu0 %v6007_v46, %s6425_s26 }
 0x281   :  { %6013 = vrot.lane.b32.xlu1 %v6012_v55, %s6425_s26 }
 0x282   :  { %v5584_v58 = vpack.c.bf16 %v5926_v16, %v5925_v2 }
 0x283   :  { %v7185_v42 = vpop.permute.xlu0 %583 }
 0x284   :  { %5586 = vmatprep.subr.msk.bf16.mxu0 %vm6935_vm6, %v5584_v58  ;;  %v743_v36 = vadd.f32 %v6724_v17, %v7185_v42 }
 0x285   :  { %5589 = vmatpush3.bf16.xpose.msk.msra.mxu0 %vm6935_vm6, %v5584_v58 }
 0x28c   :  { %5093 = vmatmul.mubr.msk.f32.vlgmr.msra.gmra.mrb[24].mxu0 %vm935_vm5, %v6823_v15 }
 0x28d   :  { %5095 = vmatprep.mubr.msk.f32.mxu0 %vm935_vm5, %v6836_v11 }
 0x290   :  { %5096 = vmatmul.mubr.msk.f32.gmra.mrb[26].mxu0 %vm935_vm5, %v6842_v12 }
 0x291   :  { %5098 = vmatprep.mubr.msk.f32.mxu0 %vm935_vm5, %v6855_v3  ;;  %v739_v3 = vadd.f32 %v6773_v47, %v7144_v9 }
 0x294   :  { %5099 = vmatmul.mubr.msk.f32.gmra.mrb[28].mxu0 %vm935_vm5, %v6861_v4 }
 0x295   :  { %5101 = vmatprep.mubr.msk.f32.mxu0 %vm935_vm5, %v6875_v53 }
 0x298   :  { %5102 = vmatmul.mubr.msk.f32.gmra.mrb[30].mxu0 %vm935_vm5, %v6880_v44 }
 0x299   :  { %5148 = vmatprep.mubr.msk.f32.mxu0 %vm935_vm5, %v6994_v7 }
 0x29e   :  { %v5929_v15 = vpop.permute.xlu1 %5928 }
 0x29f   :  { %v5931_v11 = vunpack.i.h.bf16 %v5929_v15  ;;  %v5930_v63 = vunpack.i.l.bf16 %v5929_v15 }
 0x2a1   :  { %v5590_v33 = vpack.c.bf16 %v5931_v11, %v5930_v63 }
 0x2a2   :  { %v7174_v12 = vpop.permute.xlu1 %577 }
 0x2a3   :  { %v740_v4 = vadd.f32 %v6779_v51, %v7174_v12  ;;  %5592 = vmatprep.subr.msk.bf16.mxu1 %vm6935_vm6, %v5590_v33 }
 0x2a4   :  { %5595 = vmatpush3.bf16.xpose.msk.msra.mxu1 %vm6935_vm6, %v5590_v33 }
 0x2a5   :  { %v6017_v44 = vpack.i.bf16 %v740_v4, %v739_v3 }
 0x2a6   :  { %v5934_v53 = vpop.permute.xlu1 %5933 }
 0x2a7   :  { %v5936_v7 = vunpack.i.h.bf16 %v5934_v53  ;;  %v5935_v21 = vunpack.i.l.bf16 %v5934_v53  ;;  %6018 = vrot.lane.b32.xlu0 %v6017_v44, %s6425_s26 }
 0x2a9   :  { %v5596_v60 = vpack.c.bf16 %v5936_v7, %v5935_v21 }
 0x2aa   :  { %v7187_v37 = vpop.permute.xlu1 %585 }
 0x2ab   :  { %v744_v46 = vadd.f32 %v6734_v20, %v7187_v37  ;;  %5598 = vmatprep.subr.msk.bf16.mxu1 %vm6935_vm6, %v5596_v60 }
 0x2ac   :  { %5601 = vmatpush3.bf16.xpose.msk.msra.mxu1 %vm6935_vm6, %v5596_v60 }
 0x2ad   :  { %v6022_v29 = vpack.i.bf16 %v744_v46, %v743_v36 }
 0x2af   :  { %6023 = vrot.lane.b32.xlu1 %v6022_v29, %s6425_s26 }
 0x2b2   :  { %v5939_v55 = vpop.permute.xlu0 %5938 }
 0x2b3   :  { %v5941_v16 = vunpack.i.h.bf16 %v5939_v55  ;;  %v5940_v2 = vunpack.i.l.bf16 %v5939_v55 }
 0x2b5   :  { %v5602_v58 = vpack.c.bf16 %v5941_v16, %v5940_v2 }
 0x2b6   :  { %v7198_v15 = vpop.permute.xlu0 %579 }
 0x2b7   :  { %5604 = vmatprep.subr.msk.bf16.mxu1 %vm6935_vm6, %v5602_v58  ;;  %v741_v7 = vadd.f32 %v6796_v24, %v7198_v15 }
 0x2b8   :  { %5607 = vmatpush3.bf16.xpose.msk.msra.mxu1 %vm6935_vm6, %v5602_v58 }
 0x2ba   :  { %v5944_v17 = vpop.permute.xlu0 %5943 }
 0x2bb   :  { %v5946_v20 = vunpack.i.h.bf16 %v5944_v17  ;;  %v5945_v11 = vunpack.i.l.bf16 %v5944_v17 }
 0x2bd   :  { %v5608_v63 = vpack.c.bf16 %v5946_v20, %v5945_v11 }
 0x2bf   :  { %5610 = vmatprep.subr.msk.bf16.mxu1 %vm6935_vm6, %v5608_v63 }
 0x2c0   :  { %5613 = vmatpush3.bf16.xpose.msk.msra.mxu1 %vm6935_vm6, %v5608_v63 }
 0x2c2   :  { %v5949_v33 = vpop.permute.xlu1 %5948 }
 0x2c3   :  { %v5951_v3 = vunpack.i.h.bf16 %v5949_v33  ;;  %v5950_v4 = vunpack.i.l.bf16 %v5949_v33 }
 0x2c5   :  { %v5614_v44 = vpack.c.bf16 %v5951_v3, %v5950_v4 }
 0x2c7   :  { %v7208_v53 = vpop.permute.xlu1 %581  ;;  %5121 = vmatmul.mubr.msk.f32.vlgmr.msra.gmra.mrb[32].mxu1 %vm935_vm5, %v6927_v18  ;;  %5616 = vmatprep.subr.msk.bf16.mxu0 %vm6935_vm6, %v5614_v44 }
 0x2c8   :  { %v742_v21 = vadd.f32 %v6802_v28, %v7208_v53  ;;  %5123 = vmatprep.mubr.msk.f32.mxu1 %vm935_vm5, %v6939_v10  ;;  %5619 = vmatpush3.bf16.xpose.msk.msra.mxu0 %vm6935_vm6, %v5614_v44  ;;  %v7231_v10 = vpop.permute.xlu0 %587 }
 0x2ca   :  { %v6027_v60 = vpack.i.bf16 %v742_v21, %v741_v7 }
 0x2cb   :  { %5124 = vmatmul.mubr.msk.f32.gmra.mrb[34].mxu1 %vm935_vm5, %v6941_v5 }
 0x2cc   :  { %6028 = vrot.lane.b32.xlu0 %v6027_v60, %s6425_s26  ;;  %5126 = vmatprep.mubr.msk.f32.mxu1 %vm935_vm5, %v6962_v57  ;;  %v745_v57 = vadd.f32 %v6738_v22, %v7231_v10 }
 0x2ce   :  { %v5954_v18 = vpop.permute.xlu1 %5953 }
 0x2cf   :  { %v5956_v36 = vunpack.i.h.bf16 %v5954_v18  ;;  %v5955_v46 = vunpack.i.l.bf16 %v5954_v18  ;;  %5127 = vmatmul.mubr.msk.f32.gmra.mrb[36].mxu1 %vm935_vm5, %v6958_v59 }
 0x2d0   :  { %5129 = vmatprep.mubr.msk.f32.mxu1 %vm935_vm5, %v6977_v52 }
 0x2d1   :  { %v5620_v29 = vpack.c.bf16 %v5956_v36, %v5955_v46 }
 0x2d3   :  { %v7233_v55 = vpop.permute.xlu1 %589  ;;  %5130 = vmatmul.mubr.msk.f32.gmra.mrb[38].mxu1 %vm935_vm5, %v6979_v40  ;;  %5622 = vmatprep.subr.msk.bf16.mxu0 %vm6935_vm6, %v5620_v29 }
 0x2d4   :  { %v746_v5 = vadd.f32 %v6755_v31, %v7233_v55  ;;  %5625 = vmatpush3.bf16.xpose.msk.msra.mxu0 %vm6935_vm6, %v5620_v29  ;;  %5176 = vmatprep.mubr.msk.f32.mxu1 %vm935_vm5, %v6922_v49 }
 0x2d6   :  { %v5964_v52 = vpop.permute.xlu0 %5963  ;;  %v6032_v59 = vpack.i.bf16 %v746_v5, %v745_v57 }
 0x2d7   :  { %v5959_v16 = vpop.permute.xlu1 %5958  ;;  %v5966_v2 = vunpack.i.h.bf16 %v5964_v52  ;;  %v5965_v40 = vunpack.i.l.bf16 %v5964_v52 }
 0x2d8   :  { %v5961_v58 = vunpack.i.h.bf16 %v5959_v16  ;;  %v5960_v17 = vunpack.i.l.bf16 %v5959_v16  ;;  %6033 = vrot.lane.b32.xlu1 %v6032_v59, %s6425_s26 }
 0x2d9   :  { %v5626_v20 = vpack.c.bf16 %v5966_v2, %v5965_v40 }
 0x2da   :  { %v5638_v22 = vpack.c.bf16 %v5961_v58, %v5960_v17  ;;  %v7248_v11 = vpop.permute.xlu0 %591 }
 0x2db   :  { %v7250_v31 = vpop.permute.xlu1 %593  ;;  %v747_v63 = vadd.f32 %v6773_v47, %v7248_v11  ;;  %5628 = vmatprep.subr.msk.bf16.mxu0 %vm6935_vm6, %v5626_v20 }
 0x2dc   :  { %v748_v49 = vadd.f32 %v6779_v51, %v7250_v31  ;;  %5640 = vmatprep.subr.msk.bf16.mxu1 %vm6935_vm6, %v5638_v22  ;;  %5631 = vmatpush3.bf16.xpose.msk.msra.mxu0 %vm6935_vm6, %v5626_v20 }
 0x2dd   :  { %5643 = vmatpush3.bf16.xpose.msk.msra.mxu1 %vm6935_vm6, %v5638_v22 }
 0x2de   :  { %v5974_v33 = vpop.permute.xlu0 %5973  ;;  %v6037_v3 = vpack.i.bf16 %v748_v49, %v747_v63 }
 0x2df   :  { %v5969_v4 = vpop.permute.xlu1 %5968  ;;  %v5976_v44 = vunpack.i.h.bf16 %v5974_v33  ;;  %v5975_v47 = vunpack.i.l.bf16 %v5974_v33 }
 0x2e0   :  { %v5971_v7 = vunpack.i.h.bf16 %v5969_v4  ;;  %v5970_v21 = vunpack.i.l.bf16 %v5969_v4  ;;  %6038 = vrot.lane.b32.xlu0 %v6037_v3, %s6425_s26 }
 0x2e1   :  { %v5632_v60 = vpack.c.bf16 %v5976_v44, %v5975_v47 }
 0x2e2   :  { %v5644_v51 = vpack.c.bf16 %v5971_v7, %v5970_v21  ;;  %v7265_v18 = vpop.permute.xlu0 %595 }
 0x2e3   :  { %v7267_v36 = vpop.permute.xlu1 %597  ;;  %v749_v46 = vadd.f32 %v6796_v24, %v7265_v18  ;;  %5634 = vmatprep.subr.msk.bf16.mxu0 %vm6935_vm6, %v5632_v60 }
 0x2e4   :  { %v750_v29 = vadd.f32 %v6802_v28, %v7267_v36  ;;  %6053 = vrot.lane.b32.xlu0 %v6767_v39, %s6427_s4  ;;  %5646 = vmatprep.subr.msk.bf16.mxu1 %vm6935_vm6, %v5644_v51 }
 0x2e5   :  { %5637 = vmatpush3.bf16.xpose.msk.msra.mxu0 %vm6935_vm6, %v5632_v60  ;;  %5649 = vmatpush3.bf16.xpose.msk.msra.mxu1 %vm6935_vm6, %v5644_v51 }
 0x2e6   :  { %v5979_v57 = vpop.permute.xlu0 %5978  ;;  %v6042_v24 = vpack.i.bf16 %v750_v29, %v749_v46 }
 0x2e7   :  { %v5984_v5 = vpop.permute.xlu1 %5983  ;;  %v5981_v52 = vunpack.i.h.bf16 %v5979_v57  ;;  %v5980_v59 = vunpack.i.l.bf16 %v5979_v57 }
 0x2e8   :  { %v5986_v16 = vunpack.i.h.bf16 %v5984_v5  ;;  %v5985_v2 = vunpack.i.l.bf16 %v5984_v5  ;;  %6068 = vrot.lane.b32.xlu0 %v6832_v34, %s6427_s4  ;;  %6043 = vrot.lane.b32.xlu1 %v6042_v24, %s6425_s26 }
 0x2e9   :  { %v5650_v28 = vpack.c.bf16 %v5981_v52, %v5980_v59 }
 0x2ea   :  { %v5662_v40 = vpack.c.bf16 %v5986_v16, %v5985_v2  ;;  %v5989_v58 = vpop.permute.xlu0 %5988 }
 0x2eb   :  { %v5994_v17 = vpop.permute.xlu1 %5993  ;;  %v5991_v20 = vunpack.i.h.bf16 %v5989_v58  ;;  %v5990_v22 = vunpack.i.l.bf16 %v5989_v58  ;;  %5652 = vmatprep.subr.msk.bf16.mxu1 %vm6935_vm6, %v5650_v28 }
 0x2ec   :  { %v5996_v63 = vunpack.i.h.bf16 %v5994_v17  ;;  %v5995_v49 = vunpack.i.l.bf16 %v5994_v17  ;;  %6073 = vrot.lane.b32.xlu0 %v6748_v26, %s6426_s2  ;;  %6048 = vrot.lane.b32.xlu1 %v6748_v26, %s6427_s4 }
 0x2ed   :  { %v5656_v33 = vpack.c.bf16 %v5991_v20, %v5990_v22  ;;  %5149 = vmatmul.mubr.msk.f32.vlgmr.msra.gmra.mrb[32].mxu0 %vm935_vm5, %v6991_v56  ;;  %5664 = vmatprep.subr.msk.bf16.mxu0 %vm6935_vm6, %v5662_v40 }
 0x2ee   :  { %v5668_v3 = vpack.c.bf16 %v5996_v63, %v5995_v49  ;;  %5151 = vmatprep.mubr.msk.f32.mxu0 %vm935_vm5, %v7013_v30  ;;  %5655 = vmatpush3.bf16.xpose.msk.msra.mxu1 %vm6935_vm6, %v5650_v28  ;;  %v5999_v44 = vpop.permute.xlu0 %5998 }
 0x2ef   :  { %5667 = vmatpush3.bf16.xpose.msk.msra.mxu0 %vm6935_vm6, %v5662_v40  ;;  %v6004_v4 = vpop.permute.xlu1 %6003  ;;  %5658 = vmatprep.subr.msk.bf16.mxu1 %vm6935_vm6, %v5656_v33  ;;  %v6001_v30 = vunpack.i.h.bf16 %v5999_v44  ;;  %v6000_v7 = vunpack.i.l.bf16 %v5999_v44 }
 0x2f0   :  { %6088 = vrot.lane.b32.xlu0 %v6871_v19, %s6427_s4  ;;  %6058 = vrot.lane.b32.xlu1 %v6790_v62, %s6427_s4  ;;  %v6006_v56 = vunpack.i.h.bf16 %v6004_v4  ;;  %v6005_v47 = vunpack.i.l.bf16 %v6004_v4 }
 0x2f1   :  { %5152 = vmatmul.mubr.msk.f32.gmra.mrb[34].mxu0 %vm935_vm5, %v7027_v54  ;;  %5670 = vmatprep.subr.msk.bf16.mxu0 %vm6935_vm6, %v5668_v3  ;;  %v5674_v60 = vpack.c.bf16 %v6001_v30, %v6000_v7  ;;  %v8809_v30 = vld [vmem:[#allocation18_spill] sm:$0xff] }
 0x2f2   :  { %5154 = vmatprep.mubr.msk.f32.mxu0 %vm935_vm5, %v7046_v38  ;;  %v5686_v21 = vpack.c.bf16 %v6006_v56, %v6005_v47  ;;  %v6009_v51 = vpop.permute.xlu0 %6008 }
 0x2f3   :  { %v6014_v54 = vpop.permute.xlu1 %6013  ;;  %v6010_v46 = vunpack.i.l.bf16 %v6009_v51 }
 0x2f4   :  { %6093 = vrot.lane.b32.xlu0 %v6790_v62, %s6426_s2  ;;  %6063 = vrot.lane.b32.xlu1 %v6813_v43, %s6427_s4  ;;  %v6016_v38 = vunpack.i.h.bf16 %v6014_v54 }
 0x2f5   :  { %5155 = vmatmul.mubr.msk.f32.gmra.mrb[36].mxu0 %vm935_vm5, %v7037_v48  ;;  %v6015_v48 = vunpack.i.l.bf16 %v6014_v54  ;;  %v8810_v54 = vld [vmem:[#allocation36_spill] sm:$0xff] }
 0x2f6   :  { %5157 = vmatprep.mubr.msk.f32.mxu0 %vm935_vm5, %v7068_v35  ;;  %5661 = vmatpush3.bf16.xpose.msk.msra.mxu1 %vm6935_vm6, %v5656_v33  ;;  %v6011_v35 = vunpack.i.h.bf16 %v6009_v51 }
 0x2f7   :  { %5673 = vmatpush3.bf16.xpose.msk.msra.mxu0 %vm6935_vm6, %v5668_v3  ;;  %5688 = vmatprep.subr.msk.bf16.mxu1 %vm6935_vm6, %v5686_v21  ;;  %v5692_v29 = vpack.c.bf16 %v6016_v38, %v6015_v48  ;;  %v8811_v38 = vld [vmem:[#allocation19_spill] sm:$0xff] }
 0x2f8   :  { %5676 = vmatprep.subr.msk.bf16.mxu0 %vm6935_vm6, %v5674_v60  ;;  %6108 = vrot.lane.b32.xlu0 %v6832_v34, %s6426_s2  ;;  %v5680_v57 = vpack.c.bf16 %v6011_v35, %v6010_v46 }
 0x2f9   :  { %6078 = vrot.lane.b32.xlu1 %v6851_v25, %s6427_s4  ;;  %5158 = vmatmul.mubr.msk.f32.gmra.mrb[38].mxu0 %vm935_vm5, %v7076_v50  ;;  %v8802_v50 = vld [vmem:[#allocation28_spill] sm:$0xff] }
 0x2fa   :  { %5204 = vmatprep.mubr.msk.f32.mxu0 %vm935_vm5, %v7008_v45  ;;  %v8808_v45 = vld [vmem:[#allocation35_spill] sm:$0xff] }
 0x2fc   :  { %6113 = vrot.lane.b32.xlu0 %v6748_v26, %s6428_s17  ;;  %v8801_v26 = vld [vmem:[#allocation29_spill] sm:$0xff] }
 0x2fd   :  { %6083 = vrot.lane.b32.xlu1 %v6767_v39, %s6426_s2  ;;  %5177 = vmatmul.mubr.msk.f32.vlgmr.msra.gmra.mrb[40].mxu1 %vm935_vm5, %v6925_v0  ;;  %v8803_v0 = vld [vmem:[#allocation31_spill] sm:$0xff] }
 0x2fe   :  { %5179 = vmatprep.mubr.msk.f32.mxu1 %vm935_vm5, %v6953_v41  ;;  %5691 = vmatpush3.bf16.xpose.msk.msra.mxu1 %vm6935_vm6, %v5686_v21  ;;  %v8805_v41 = vld [vmem:[#allocation32_spill] sm:$0xff] }
 0x2ff   :  { %5679 = vmatpush3.bf16.xpose.msk.msra.mxu0 %vm6935_vm6, %v5674_v60  ;;  %5694 = vmatprep.subr.msk.bf16.mxu1 %vm6935_vm6, %v5692_v29 }
 0x300   :  { %5682 = vmatprep.subr.msk.bf16.mxu0 %vm6935_vm6, %v5680_v57  ;;  %6128 = vrot.lane.b32.xlu0 %v6871_v19, %s6426_s2 }
 0x301   :  { %5180 = vmatmul.mubr.msk.f32.gmra.mrb[42].mxu1 %vm935_vm5, %v6955_v13  ;;  %6098 = vrot.lane.b32.xlu1 %v6890_v8, %s6427_s4  ;;  %v8807_v13 = vld [vmem:[#allocation34_spill] sm:$0xff] }
 0x302   :  { %5182 = vmatprep.mubr.msk.f32.mxu1 %vm935_vm5, %v8801_v26 }
 0x304   :  { %6133 = vrot.lane.b32.xlu0 %v6790_v62, %s6428_s17  ;;  %v8804_v62 = vld [vmem:[#allocation30_spill] sm:$0xff] }
 0x305   :  { %5183 = vmatmul.mubr.msk.f32.gmra.mrb[44].mxu1 %vm935_vm5, %v8802_v50  ;;  %6103 = vrot.lane.b32.xlu1 %v6813_v43, %s6426_s2 }
 0x306   :  { %5185 = vmatprep.mubr.msk.f32.mxu1 %vm935_vm5, %v7025_v61  ;;  %5697 = vmatpush3.bf16.xpose.msk.msra.mxu1 %vm6935_vm6, %v5692_v29 }
 0x307   :  { %5685 = vmatpush3.bf16.xpose.msk.msra.mxu0 %vm6935_vm6, %v5680_v57 }
 0x308   :  { %6148 = vrot.lane.b32.xlu0 %v6832_v34, %s6428_s17  ;;  %v8806_v34 = vld [vmem:[#allocation33_spill] sm:$0xff] }
 0x309   :  { %5186 = vmatmul.mubr.msk.f32.gmra.mrb[46].mxu1 %vm935_vm5, %v8803_v0  ;;  %6118 = vrot.lane.b32.xlu1 %v6851_v25, %s6426_s2 }
 0x30a   :  { %5232 = vmatprep.mubr.msk.f32.mxu1 %vm935_vm5, %v7100_v6 }
 0x30d   :  { %6123 = vrot.lane.b32.xlu1 %v6767_v39, %s6428_s17 }
 0x30e   :  { %5205 = vmatmul.mubr.msk.f32.vlgmr.msra.gmra.mrb[40].mxu0 %vm935_vm5, %v8804_v62 }
 0x30f   :  { %5207 = vmatprep.mubr.msk.f32.mxu0 %vm935_vm5, %v8805_v41 }
 0x311   :  { %6138 = vrot.lane.b32.xlu1 %v6890_v8, %s6426_s2 }
 0x312   :  { %5208 = vmatmul.mubr.msk.f32.gmra.mrb[42].mxu0 %vm935_vm5, %v8806_v34 }
 0x313   :  { %5210 = vmatprep.mubr.msk.f32.mxu0 %vm935_vm5, %v8807_v13 }
 0x315   :  { %6143 = vrot.lane.b32.xlu1 %v6813_v43, %s6428_s17 }
 0x316   :  { %5211 = vmatmul.mubr.msk.f32.gmra.mrb[44].mxu0 %vm935_vm5, %v8808_v45 }
 0x317   :  { %5213 = vmatprep.mubr.msk.f32.mxu0 %vm935_vm5, %v7116_v23 }
 0x319   :  { %6153 = vrot.lane.b32.xlu1 %v6851_v25, %s6428_s17  ;;  %v6019_v39 = vpop.permute.xlu0 %6018 }
 0x31a   :  { %5214 = vmatmul.mubr.msk.f32.gmra.mrb[46].mxu0 %vm935_vm5, %v7136_v32  ;;  %v6021_v61 = vunpack.i.h.bf16 %v6019_v39  ;;  %v6020_v6 = vunpack.i.l.bf16 %v6019_v39 }
 0x31b   :  { %5260 = vmatprep.mubr.msk.f32.mxu0 %vm935_vm5, %v7185_v42 }
 0x31c   :  { %v5698_v24 = vpack.c.bf16 %v6021_v61, %v6020_v6 }
 0x31e   :  { %5700 = vmatprep.subr.msk.bf16.mxu1 %vm6935_vm6, %v5698_v24 }
 0x31f   :  { %5703 = vmatpush3.bf16.xpose.msk.msra.mxu1 %vm6935_vm6, %v5698_v24 }
 0x321   :  { %v6024_v43 = vpop.permute.xlu1 %6023 }
 0x322   :  { %v6026_v23 = vunpack.i.h.bf16 %v6024_v43  ;;  %v6025_v5 = vunpack.i.l.bf16 %v6024_v43 }
 0x324   :  { %v5710_v25 = vpack.c.bf16 %v6026_v23, %v6025_v5 }
 0x326   :  { %5712 = vmatprep.subr.msk.bf16.mxu0 %vm6935_vm6, %v5710_v25 }
 0x327   :  { %v7412_v32 = vpop.f32.mrb[16].mxu0  ;;  %5715 = vmatpush3.bf16.xpose.msk.msra.mxu0 %vm6935_vm6, %v5710_v25 }
 0x328   :  { %v7416_v42 = vpop.f32.mrb[17].mxu0  ;;  %v2204_v49 = vsel %vm2200_vm7, %v7412_v32, -inf }
 0x329   :  { %v2201_v52 = vsel %vm2200_vm7, %v7416_v42, -inf }
 0x32a   :  { %2202 = vmax.xlane.f32.xlu0 %v2201_v52 }
 0x32b   :  { %v7420_v59 = vpop.f32.mrb[18].mxu0 }
 0x32c   :  { %v7422_v16 = vpop.f32.mrb[19].mxu0  ;;  %v2210_v2 = vsel %vm2200_vm7, %v7420_v59, -inf }
 0x32d   :  { %v2207_v58 = vsel %vm2200_vm7, %v7422_v16, -inf }
 0x32e   :  { %2211 = vmax.xlane.f32.xlu0 %v2210_v2 }
 0x32f   :  { %v7426_v28 = vpop.f32.mrb[20].mxu0 }
 0x330   :  { %v7428_v40 = vpop.f32.mrb[21].mxu0  ;;  %v2216_v22 = vsel %vm2200_vm7, %v7426_v28, -inf }
 0x331   :  { %v2213_v44 = vsel %vm2200_vm7, %v7428_v40, -inf }
 0x332   :  { %2208 = vmax.xlane.f32.xlu0 %v2207_v58 }
 0x333   :  { %v7432_v17 = vpop.f32.mrb[22].mxu0 }
 0x334   :  { %v7434_v20 = vpop.f32.mrb[23].mxu0  ;;  %v2222_v63 = vsel %vm2200_vm7, %v7432_v17, -inf }
 0x335   :  { %v2219_v47 = vsel %vm2200_vm7, %v7434_v20, -inf }
 0x336   :  { %2217 = vmax.xlane.f32.xlu0 %v2216_v22 }
 0x33a   :  { %2223 = vmax.xlane.f32.xlu0 %v2222_v63 }
 0x33d   :  { %2205 = vmax.xlane.f32.xlu1 %v2204_v49 }
 0x33e   :  { %v6029_v33 = vpop.permute.xlu0 %6028 }
 0x33f   :  { %v6031_v3 = vunpack.i.h.bf16 %v6029_v33  ;;  %v6030_v4 = vunpack.i.l.bf16 %v6029_v33 }
 0x341   :  { %v5704_v56 = vpack.c.bf16 %v6031_v3, %v6030_v4  ;;  %2214 = vmax.xlane.f32.xlu1 %v2213_v44 }
 0x343   :  { %5706 = vmatprep.subr.msk.bf16.mxu1 %vm6935_vm6, %v5704_v56 }
 0x344   :  { %5709 = vmatpush3.bf16.xpose.msk.msra.mxu1 %vm6935_vm6, %v5704_v56 }
 0x345   :  { %2220 = vmax.xlane.f32.xlu1 %v2219_v47  ;;  %5735 = vmatprep.subr.bf16.mxu1 %v8809_v30 }
 0x34a   :  { %v6034_v7 = vpop.permute.xlu1 %6033 }
 0x34b   :  { %v6036_v21 = vunpack.i.h.bf16 %v6034_v7  ;;  %v6035_v60 = vunpack.i.l.bf16 %v6034_v7  ;;  %5233 = vmatmul.mubr.msk.f32.vlgmr.msra.gmra.mrb[48].mxu1 %vm935_vm5, %v8810_v54 }
 0x34c   :  { %5235 = vmatprep.mubr.msk.f32.mxu1 %vm935_vm5, %v7134_v1  ;;  %5737 = vmatpush3.bf16.msra.mxu1 %v8809_v30  ;;  %v8812_v1 = vld [vmem:[#allocation20_spill] sm:$0xff] }
 0x34d   :  { %v5716_v51 = vpack.c.bf16 %v6036_v21, %v6035_v60  ;;  %5739 = vmatprep.subr.bf16.mxu1 %v8811_v38 }
 0x34f   :  { %5236 = vmatmul.mubr.msk.f32.gmra.mrb[50].mxu1 %vm935_vm5, %v7118_v27  ;;  %5718 = vmatprep.subr.msk.bf16.mxu0 %vm6935_vm6, %v5716_v51 }
 0x350   :  { %5238 = vmatprep.mubr.msk.f32.mxu1 %vm935_vm5, %v7144_v9  ;;  %5721 = vmatpush3.bf16.xpose.msk.msra.mxu0 %vm6935_vm6, %v5716_v51  ;;  %v8813_v9 = vld [vmem:[#allocation21_spill] sm:$0xff] }
 0x351   :  { %5741 = vmatpush3.bf16.msra.mxu1 %v8811_v38 }
 0x352   :  { %5743 = vmatprep.subr.bf16.mxu1 %v8812_v1  ;;  %v6039_v48 = vpop.permute.xlu0 %6038 }
 0x353   :  { %v6041_v35 = vunpack.i.h.bf16 %v6039_v48  ;;  %v6040_v46 = vunpack.i.l.bf16 %v6039_v48  ;;  %5239 = vmatmul.mubr.msk.f32.gmra.mrb[52].mxu1 %vm935_vm5, %v7174_v12  ;;  %v8815_v12 = vld [vmem:[#allocation22_spill] sm:$0xff] }
 0x354   :  { %5241 = vmatprep.mubr.msk.f32.mxu1 %vm935_vm5, %v7198_v15 }
 0x355   :  { %v5722_v27 = vpack.c.bf16 %v6041_v35, %v6040_v46  ;;  %5745 = vmatpush3.bf16.msra.mxu1 %v8812_v1 }
 0x356   :  { %5747 = vmatprep.subr.bf16.mxu1 %v8813_v9  ;;  %v7473_v29 = vpop.permute.xlu0 %6053 }
 0x357   :  { %8814 = vst [vmem:[#allocation29_spill] sm:$0xff] %v7473_v29  ;;  %5242 = vmatmul.mubr.msk.f32.gmra.mrb[54].mxu1 %vm935_vm5, %v7208_v53  ;;  %5724 = vmatprep.subr.msk.bf16.mxu0 %vm6935_vm6, %v5722_v27 }
 0x358   :  { %5727 = vmatpush3.bf16.xpose.msk.msra.mxu0 %vm6935_vm6, %v5722_v27 }
 0x359   :  { %5749 = vmatpush3.bf16.msra.mxu1 %v8813_v9 }
 0x35a   :  { %5751 = vmatprep.subr.bf16.mxu1 %v8815_v12  ;;  %v6044_v15 = vpop.permute.xlu1 %6043  ;;  %v7483_v57 = vpop.permute.xlu0 %6068 }
 0x35b   :  { %8816 = vst [vmem:[#allocation28_spill] sm:$0xff] %v7483_v57  ;;  %v6046_v26 = vunpack.i.h.bf16 %v6044_v15  ;;  %v6045_v50 = vunpack.i.l.bf16 %v6044_v15 }
 0x35d   :  { %v5728_v0 = vpack.c.bf16 %v6046_v26, %v6045_v50 }
 0x35e   :  { %v7485_v62 = vpop.permute.xlu1 %6048  ;;  %v6074_v41 = vpop.permute.xlu0 %6073 }
 0x35f   :  { %v6076_v53 = vunpack.i.h.bf16 %v6074_v41  ;;  %v6075_v34 = vunpack.i.l.bf16 %v6074_v41  ;;  %5730 = vmatprep.subr.msk.bf16.mxu0 %vm6935_vm6, %v5728_v0  ;;  %v7489_v13 = vpop.f32.mrb[24].mxu0 }
 0x360   :  { %5733 = vmatpush3.bf16.xpose.msk.msra.mxu0 %vm6935_vm6, %v5728_v0  ;;  %v7493_v45 = vpop.f32.mrb[25].mxu0  ;;  %v2228_v39 = vsel %vm2200_vm7, %v7489_v13, -inf }
 0x361   :  { %2229 = vmax.xlane.f32.xlu0 %v2228_v39  ;;  %v5798_v61 = vpack.c.bf16 %v6076_v53, %v6075_v34  ;;  %v2225_v6 = vsel %vm2200_vm7, %v7493_v45, -inf }
 0x362   :  { %v7499_v24 = vpop.permute.xlu1 %6058  ;;  %2226 = vmax.xlane.f32.xlu1 %v2225_v6  ;;  %v7501_v43 = vpop.permute.xlu0 %6088 }
 0x363   :  { %8817 = vst [vmem:[#allocation31_spill] sm:$0xff] %v7499_v24  ;;  %8818 = vst [vmem:[#allocation30_spill] sm:$0xff] %v7501_v43  ;;  %5799 = vmatprep.subr.bf16.mxu0 %v5798_v61  ;;  %v7503_v23 = vpop.f32.mrb[26].mxu0 }
 0x364   :  { %v7505_v14 = vpop.f32.mrb[27].mxu0  ;;  %v2234_v5 = vsel %vm2200_vm7, %v7503_v23, -inf }
 0x365   :  { %2235 = vmax.xlane.f32.xlu0 %v2234_v5  ;;  %v2231_v25 = vsel %vm2200_vm7, %v7505_v14, -inf }
 0x366   :  { %v7511_v52 = vpop.permute.xlu1 %6063  ;;  %2232 = vmax.xlane.f32.xlu1 %v2231_v25  ;;  %v6094_v63 = vpop.permute.xlu0 %6093 }
 0x367   :  { %8819 = vst [vmem:[#allocation32_spill] sm:$0xff] %v7511_v52  ;;  %5261 = vmatmul.mubr.msk.f32.vlgmr.msra.gmra.mrb[48].mxu0 %vm935_vm5, %v7187_v37  ;;  %v7515_v2 = vpop.f32.mrb[28].mxu0  ;;  %v6095_v47 = vunpack.i.l.bf16 %v6094_v63 }
 0x368   :  { %5263 = vmatprep.mubr.msk.f32.mxu0 %vm935_vm5, %v7231_v10  ;;  %5801 = vmatpush3.bf16.msra.mxu0 %v5798_v61  ;;  %v7519_v58 = vpop.f32.mrb[29].mxu0  ;;  %v2240_v22 = vsel %vm2200_vm7, %v7515_v2, -inf }
 0x369   :  { %2241 = vmax.xlane.f32.xlu0 %v2240_v22  ;;  %v2237_v49 = vsel %vm2200_vm7, %v7519_v58, -inf }
 0x36a   :  { %2238 = vmax.xlane.f32.xlu1 %v2237_v49  ;;  %v7539_v44 = vpop.permute.xlu0 %6108 }
 0x36b   :  { %v7525_v33 = vpop.permute.xlu1 %6078  ;;  %5264 = vmatmul.mubr.msk.f32.gmra.mrb[50].mxu0 %vm935_vm5, %v7233_v55  ;;  %v7529_v37 = vpop.f32.mrb[30].mxu0  ;;  %8821 = vst [vmem:[#allocation34_spill] sm:$0xff] %v7539_v44  ;;  %v6096_v55 = vunpack.i.h.bf16 %v6094_v63 }
 0x36c   :  { %8820 = vst [vmem:[#allocation33_spill] sm:$0xff] %v7525_v33  ;;  %5266 = vmatprep.mubr.msk.f32.mxu0 %vm935_vm5, %v7248_v11  ;;  %v7533_v10 = vpop.f32.mrb[31].mxu0  ;;  %v2246_v3 = vsel %vm2200_vm7, %v7529_v37, -inf }
 0x36d   :  { %2247 = vmax.xlane.f32.xlu0 %v2246_v3  ;;  %v2243_v4 = vsel %vm2200_vm7, %v7533_v10, -inf  ;;  %v5806_v60 = vpack.c.bf16 %v6096_v55, %v6095_v47 }
 0x36e   :  { %2244 = vmax.xlane.f32.xlu1 %v2243_v4  ;;  %v6114_v54 = vpop.permute.xlu0 %6113 }
 0x36f   :  { %v6084_v56 = vpop.permute.xlu1 %6083  ;;  %5267 = vmatmul.mubr.msk.f32.gmra.mrb[52].mxu0 %vm935_vm5, %v7250_v31  ;;  %v6116_v31 = vunpack.i.h.bf16 %v6114_v54  ;;  %v6115_v38 = vunpack.i.l.bf16 %v6114_v54 }
 0x370   :  { %v6086_v30 = vunpack.i.h.bf16 %v6084_v56  ;;  %v6085_v11 = vunpack.i.l.bf16 %v6084_v56  ;;  %5269 = vmatprep.mubr.msk.f32.mxu0 %vm935_vm5, %v7265_v18 }
 0x371   :  { %v7549_v18 = vpack.c.bf16 %v6116_v31, %v6115_v38 }
 0x372   :  { %v5802_v7 = vpack.c.bf16 %v6086_v30, %v6085_v11  ;;  %v7598_v47 = vpop.permute.xlu0 %6128 }
 0x373   :  { %v7545_v21 = vpop.permute.xlu1 %6098  ;;  %5270 = vmatmul.mubr.msk.f32.gmra.mrb[54].mxu0 %vm935_vm5, %v7267_v36  ;;  %8823 = vst [vmem:[#allocation18_spill] sm:$0xff] %v7549_v18  ;;  %8828 = vst [vmem:[#allocation22_spill] sm:$0xff] %v7598_v47 }
 0x374   :  { %8822 = vst [vmem:[#allocation35_spill] sm:$0xff] %v7545_v21  ;;  %5803 = vmatprep.subr.bf16.mxu0 %v5802_v7 }
 0x375   :  { %5805 = vmatpush3.bf16.msra.mxu0 %v5802_v7 }
 0x376   :  { %5807 = vmatprep.subr.bf16.mxu0 %v5806_v60  ;;  %v7614_v38 = vpop.permute.xlu0 %6133 }
 0x377   :  { %v6104_v51 = vpop.permute.xlu1 %6103  ;;  %8830 = vst [vmem:[#allocation38_spill] sm:$0xff] %v7614_v38 }
 0x378   :  { %v6106_v1 = vunpack.i.h.bf16 %v6104_v51  ;;  %v6105_v48 = vunpack.i.l.bf16 %v6104_v51 }
 0x379   :  { %5809 = vmatpush3.bf16.msra.mxu0 %v5806_v60 }
 0x37a   :  { %v5810_v35 = vpack.c.bf16 %v6106_v1, %v6105_v48 }
 0x37b   :  { %v7584_v22 = vpop.permute.xlu1 %6118 }
 0x37c   :  { %5811 = vmatprep.subr.bf16.mxu0 %v5810_v35  ;;  %8824 = vst [vmem:[#allocation36_spill] sm:$0xff] %v7584_v22 }
 0x37d   :  { %5813 = vmatpush3.bf16.msra.mxu0 %v5810_v35 }
 0x37e   :  { %5831 = vmatprep.subr.bf16.mxu0 %v7549_v18 }
 0x37f   :  { %v7586_v63 = vpop.permute.xlu1 %6123 }
 0x380   :  { %8825 = vst [vmem:[#allocation19_spill] sm:$0xff] %v7586_v63 }
 0x383   :  { %v7588_v49 = vpop.permute.xlu1 %6138 }
 0x384   :  { %8826 = vst [vmem:[#allocation20_spill] sm:$0xff] %v7588_v49 }
 0x387   :  { %v7590_v3 = vpop.permute.xlu1 %6143 }
 0x388   :  { %8827 = vst [vmem:[#allocation21_spill] sm:$0xff] %v7590_v3 }
 0x38b   :  { %v7606_v60 = vpop.permute.xlu1 %6153 }
 0x38c   :  { %8829 = vst [vmem:[#allocation37_spill] sm:$0xff] %v7606_v60 }
 0x39a   :  { %v7552_v46 = vpop.f32.mrb[32].mxu1 }
 0x39b   :  { %v7554_v36 = vpop.f32.mrb[33].mxu1  ;;  %v2252_v27 = vsel %vm2200_vm7, %v7552_v46, -inf }
 0x39c   :  { %2253 = vmax.xlane.f32.xlu0 %v2252_v27  ;;  %v2249_v9 = vsel %vm2200_vm7, %v7554_v36, -inf }
 0x39d   :  { %2250 = vmax.xlane.f32.xlu1 %v2249_v9 }
 0x39e   :  { %v7560_v15 = vpop.f32.mrb[34].mxu1 }
 0x39f   :  { %v7562_v26 = vpop.f32.mrb[35].mxu1  ;;  %v2258_v50 = vsel %vm2200_vm7, %v7560_v15, -inf }
 0x3a0   :  { %2259 = vmax.xlane.f32.xlu0 %v2258_v50  ;;  %v2255_v0 = vsel %vm2200_vm7, %v7562_v26, -inf }
 0x3a1   :  { %2256 = vmax.xlane.f32.xlu1 %v2255_v0  ;;  %v7623_v0 = vpop.permute.xlu0 %6148 }
 0x3a2   :  { %v7568_v41 = vpop.f32.mrb[36].mxu1  ;;  %8831 = vst [vmem:[#allocation39_spill] sm:$0xff] %v7623_v0 }
 0x3a3   :  { %v7570_v53 = vpop.f32.mrb[37].mxu1  ;;  %v2264_v34 = vsel %vm2200_vm7, %v7568_v41, -inf }
 0x3a4   :  { %2265 = vmax.xlane.f32.xlu0 %v2264_v34  ;;  %v2261_v39 = vsel %vm2200_vm7, %v7570_v53, -inf }
 0x3a5   :  { %2262 = vmax.xlane.f32.xlu1 %v2261_v39 }
 0x3a6   :  { %v7576_v61 = vpop.f32.mrb[38].mxu1 }
 0x3a7   :  { %v7578_v6 = vpop.f32.mrb[39].mxu1  ;;  %v2270_v5 = vsel %vm2200_vm7, %v7576_v61, -inf }
 0x3a8   :  { %2271 = vmax.xlane.f32.xlu0 %v2270_v5  ;;  %v2267_v25 = vsel %vm2200_vm7, %v7578_v6, -inf }
 0x3a9   :  { %2268 = vmax.xlane.f32.xlu1 %v2267_v25 }
 0x3c0   :  { %v7592_v4 = vpop.f32.mrb[32].mxu0 }
 0x3c1   :  { %v7594_v56 = vpop.f32.mrb[33].mxu0  ;;  %v2276_v55 = vsel %vm2200_vm7, %v7592_v4, -inf }
 0x3c2   :  { %2277 = vmax.xlane.f32.xlu1 %v2276_v55  ;;  %v2273_v7 = vsel %vm2200_vm7, %v7594_v56, -inf }
 0x3c4   :  { %v7600_v30 = vpop.f32.mrb[34].mxu0 }
 0x3c5   :  { %v7602_v11 = vpop.f32.mrb[35].mxu0  ;;  %v2282_v31 = vsel %vm2200_vm7, %v7600_v30, -inf }
 0x3c6   :  { %2274 = vmax.xlane.f32.xlu1 %v2273_v7  ;;  %v2279_v27 = vsel %vm2200_vm7, %v7602_v11, -inf }
 0x3c8   :  { %v7608_v54 = vpop.f32.mrb[36].mxu0 }
 0x3c9   :  { %v7610_v51 = vpop.f32.mrb[37].mxu0  ;;  %v2288_v25 = vsel %vm2200_vm7, %v7608_v54, -inf }
 0x3ca   :  { %v2206_v1 = vpop.xlane.xlu1 %2205  ;;  %2283 = vmax.xlane.f32.xlu1 %v2282_v31  ;;  %v2285_v0 = vsel %vm2200_vm7, %v7610_v51, -inf }
 0x3cc   :  { %v7616_v48 = vpop.f32.mrb[38].mxu0 }
 0x3cd   :  { %v7618_v35 = vpop.f32.mrb[39].mxu0 }
 0x3ce   :  { %v2215_v9 = vpop.xlane.xlu1 %2214  ;;  %2280 = vmax.xlane.f32.xlu1 %v2279_v27  ;;  %v2203_v27 = vpop.xlane.xlu0 %2202 }
 0x3cf   :  { %v2397_v50 = vsub.f32 %v7428_v40, %v2215_v9  ;;  %v2394_v40 = vsub.f32 %v7412_v32, %v2206_v1  ;;  %v2294_v32 = vsel %vm2200_vm7, %v7616_v48, -inf }
 0x3d0   :  { %v7625_v34 = vpop.f32.mrb[40].mxu1 }
 0x3d1   :  { %v2465_v39 = vmul.f32 1.442695, %v2397_v50  ;;  %v7627_v5 = vpop.f32.mrb[41].mxu1  ;;  %v2300_v55 = vsel %vm2200_vm7, %v7625_v34, -inf }
 0x3d2   :  { %v2221_v7 = vpop.xlane.xlu1 %2220  ;;  %2289 = vmax.xlane.f32.xlu1 %v2288_v25  ;;  %2301 = vmax.xlane.f32.xlu0 %v2300_v55  ;;  %v2297_v3 = vsel %vm2200_vm7, %v7627_v5, -inf  ;;  %v2459_v25 = vmul.f32 1.442695, %v2394_v40 }
 0x3d3   :  { %v2399_v31 = vsub.f32 %v7434_v20, %v2221_v7  ;;  %6167 = vpow2.f32 %v2465_v39  ;;  %v2212_v39 = vpop.xlane.xlu0 %2211  ;;  %v2393_v7 = vsub.f32 %v7416_v42, %v2203_v27 }
 0x3d4   :  { %v7635_v9 = vpop.f32.mrb[42].mxu1 }
 0x3d5   :  { %v2469_v50 = vmul.f32 1.442695, %v2399_v31  ;;  %v7637_v60 = vpop.f32.mrb[43].mxu1  ;;  %v2306_v1 = vsel %vm2200_vm7, %v7635_v9, -inf  ;;  %v2291_v31 = vsel %vm2200_vm7, %v7618_v35, -inf }
 0x3d6   :  { %2286 = vmax.xlane.f32.xlu1 %v2285_v0  ;;  %2298 = vmax.xlane.f32.xlu0 %v2297_v3  ;;  %v2303_v40 = vsel %vm2200_vm7, %v7637_v60, -inf  ;;  %v2457_v49 = vmul.f32 1.442695, %v2393_v7 }
 0x3d7   :  { %6169 = vpow2.f32 %v2469_v50 }
 0x3d8   :  { %v7643_v20 = vpop.f32.mrb[44].mxu1  ;;  %6171 = vpow2.f32 %v2459_v25 }
 0x3d9   :  { %v7645_v55 = vpop.f32.mrb[45].mxu1  ;;  %v2312_v27 = vsel %vm2200_vm7, %v7643_v20, -inf  ;;  %6173 = vpow2.f32 %v2457_v49 }
 0x3da   :  { %2295 = vmax.xlane.f32.xlu1 %v2294_v32  ;;  %2307 = vmax.xlane.f32.xlu0 %v2306_v1  ;;  %v2209_v32 = vpop.xlane.xlu0 %2208  ;;  %v2309_v38 = vsel %vm2200_vm7, %v7645_v55, -inf }
 0x3db   :  { %v2395_v49 = vsub.f32 %v7422_v16, %v2209_v32 }
 0x3dc   :  { %v7652_v0 = vpop.f32.mrb[46].mxu1 }
 0x3dd   :  { %v7654_v3 = vpop.f32.mrb[47].mxu1  ;;  %v7660_v50 = vpop.eup %6167  ;;  %v2461_v19 = vmul.f32 1.442695, %v2395_v49  ;;  %v2318_v32 = vsel %vm2200_vm7, %v7652_v0, -inf }
 0x3de   :  { %2292 = vmax.xlane.f32.xlu1 %v2291_v31  ;;  %2304 = vmax.xlane.f32.xlu0 %v2303_v40  ;;  %v2597_v42 = vsel %vm2200_vm7, %v7660_v50, 0.0  ;;  %v2396_v31 = vsub.f32 %v7420_v59, %v2212_v39  ;;  %v2218_v63 = vpop.xlane.xlu0 %2217 }
 0x3e1   :  { %v7662_v1 = vpop.f32.mrb[40].mxu0  ;;  %v7668_v25 = vpop.eup %6169 }
 0x3e2   :  { %v7670_v18 = vpop.f32.mrb[41].mxu0  ;;  %2598 = vadd.xlane.f32.xlu1 %v2597_v42  ;;  %2313 = vmax.xlane.f32.xlu0 %v2312_v27  ;;  %v2603_v7 = vsel %vm2200_vm7, %v7668_v25, 0.0  ;;  %v7679_v47 = vpop.eup %6171  ;;  %v2463_v42 = vmul.f32 1.442695, %v2396_v31  ;;  %v2324_v59 = vsel %vm2200_vm7, %v7662_v1, -inf }
 0x3e3   :  { %v2588_v39 = vsel %vm2200_vm7, %v7679_v47, 0.0  ;;  %v2321_v16 = vsel %vm2200_vm7, %v7670_v18, -inf  ;;  %v7699_v44 = vpop.eup %6173 }
 0x3e4   :  { %6175 = vpow2.f32 %v2463_v42 }
 0x3e5   :  { %v7673_v40 = vpop.f32.mrb[42].mxu0  ;;  %6177 = vpow2.f32 %v2461_v19  ;;  %v2315_v19 = vsel %vm2200_vm7, %v7654_v3, -inf }
 0x3e6   :  { %v7681_v22 = vpop.f32.mrb[43].mxu0  ;;  %2604 = vadd.xlane.f32.xlu1 %v2603_v7  ;;  %2310 = vmax.xlane.f32.xlu0 %v2309_v38  ;;  %v2398_v7 = vsub.f32 %v7426_v28, %v2218_v63  ;;  %v2224_v38 = vpop.xlane.xlu0 %2223 }
 0x3e7   :  { %v2400_v42 = vsub.f32 %v7432_v17, %v2224_v38  ;;  %v2327_v17 = vsel %vm2200_vm7, %v7681_v22, -inf }
 0x3e8   :  { %v2467_v28 = vmul.f32 1.442695, %v2398_v7 }
 0x3e9   :  { %v7684_v27 = vpop.f32.mrb[44].mxu0  ;;  %v2471_v43 = vmul.f32 1.442695, %v2400_v42 }
 0x3ea   :  { %v7690_v8 = vpop.f32.mrb[45].mxu0  ;;  %2325 = vmax.xlane.f32.xlu1 %v2324_v59  ;;  %2589 = vadd.xlane.f32.xlu0 %v2588_v39  ;;  %v2330_v59 = vsel %vm2200_vm7, %v7673_v40, -inf  ;;  %v2585_v39 = vsel %vm2200_vm7, %v7699_v44, 0.0  ;;  %6179 = vpow2.f32 %v2467_v28 }
 0x3eb   :  { %6181 = vpow2.f32 %v2471_v43  ;;  %v2333_v43 = vsel %vm2200_vm7, %v7690_v8, -inf }
 0x3ed   :  { %v7693_v31 = vpop.f32.mrb[46].mxu0 }
 0x3ee   :  { %v7701_v21 = vpop.f32.mrb[47].mxu0  ;;  %2322 = vmax.xlane.f32.xlu1 %v2321_v16  ;;  %2319 = vmax.xlane.f32.xlu0 %v2318_v32  ;;  %v7713_v7 = vpop.eup %6175  ;;  %v2336_v32 = vsel %vm2200_vm7, %v7684_v27, -inf }
 0x3ef   :  { %8832 = vst [vmem:[#allocation40_spill] sm:$0xff] %v7701_v21  ;;  %v2227_v49 = vpop.xlane.xlu1 %2226  ;;  %v2594_v42 = vsel %vm2200_vm7, %v7713_v7, 0.0 }
 0x3f0   :  { %v2401_v63 = vsub.f32 %v7493_v45, %v2227_v49  ;;  %v7720_v49 = vpop.eup %6177 }
 0x3f2   :  { %2331 = vmax.xlane.f32.xlu1 %v2330_v59  ;;  %2586 = vadd.xlane.f32.xlu0 %v2585_v39  ;;  %v2473_v16 = vmul.f32 1.442695, %v2401_v63 }
 0x3f3   :  { %v2233_v33 = vpop.xlane.xlu1 %2232 }
 0x3f4   :  { %6183 = vpow2.f32 %v2473_v16  ;;  %v2403_v38 = vsub.f32 %v7505_v14, %v2233_v33  ;;  %v2591_v14 = vsel %vm2200_vm7, %v7720_v49, 0.0  ;;  %v7727_v33 = vpop.eup %6179 }
 0x3f6   :  { %2328 = vmax.xlane.f32.xlu1 %v2327_v17  ;;  %2316 = vmax.xlane.f32.xlu0 %v2315_v19  ;;  %v2477_v28 = vmul.f32 1.442695, %v2403_v38  ;;  %v7730_v17 = vpop.eup %6181  ;;  %v2600_v19 = vsel %vm2200_vm7, %v7727_v33, 0.0 }
 0x3f7   :  { %v2239_v45 = vpop.xlane.xlu1 %2238 }
 0x3f8   :  { %v2405_v63 = vsub.f32 %v7519_v58, %v2239_v45  ;;  %6185 = vpow2.f32 %v2477_v28  ;;  %v2342_v58 = vsel %vm2200_vm7, %v7693_v31, -inf }
 0x3fa   :  { %2337 = vmax.xlane.f32.xlu1 %v2336_v32  ;;  %2595 = vadd.xlane.f32.xlu0 %v2594_v42  ;;  %v2481_v39 = vmul.f32 1.442695, %v2405_v63  ;;  %v2339_v42 = vsel %vm2200_vm7, %v7701_v21, -inf }
 0x3fb   :  { %v2245_v59 = vpop.xlane.xlu1 %2244 }
 0x3fc   :  { %v2407_v16 = vsub.f32 %v7533_v10, %v2245_v59  ;;  %6187 = vpow2.f32 %v2481_v39  ;;  %v2606_v10 = vsel %vm2200_vm7, %v7730_v17, 0.0 }
 0x3fe   :  { %2334 = vmax.xlane.f32.xlu1 %v2333_v43  ;;  %2592 = vadd.xlane.f32.xlu0 %v2591_v14  ;;  %v7736_v45 = vpop.eup %6183  ;;  %v2485_v38 = vmul.f32 1.442695, %v2407_v16 }
 0x3ff   :  { %v2609_v32 = vsel %vm2200_vm7, %v7736_v45, 0.0 }
 0x400   :  { %6189 = vpow2.f32 %v2485_v38 }
 0x402   :  { %2343 = vmax.xlane.f32.xlu1 %v2342_v58  ;;  %2601 = vadd.xlane.f32.xlu0 %v2600_v19  ;;  %v7744_v28 = vpop.eup %6185  ;;  %v2230_v58 = vpop.xlane.xlu0 %2229 }
 0x403   :  { %8833 = vst [vmem:[#allocation41_spill] sm:$0xff] %v7744_v28  ;;  %v2615_v63 = vsel %vm2200_vm7, %v7744_v28, 0.0 }
 0x406   :  { %2610 = vadd.xlane.f32.xlu1 %v2609_v32  ;;  %2607 = vadd.xlane.f32.xlu0 %v2606_v10  ;;  %v7748_v59 = vpop.eup %6187  ;;  %v2402_v32 = vsub.f32 %v7489_v13, %v2230_v58 }
 0x407   :  { %8834 = vst [vmem:[#allocation42_spill] sm:$0xff] %v7748_v59  ;;  %v2621_v43 = vsel %vm2200_vm7, %v7748_v59, 0.0 }
 0x40a   :  { %2340 = vmax.xlane.f32.xlu1 %v2339_v42  ;;  %v7752_v14 = vpop.eup %6189 }
 0x40b   :  { %8835 = vst [vmem:[#allocation43_spill] sm:$0xff] %v7752_v14  ;;  %v2627_v39 = vsel %vm2200_vm7, %v7752_v14, 0.0  ;;  %v2236_v14 = vpop.xlane.xlu0 %2235 }
 0x40e   :  { %2616 = vadd.xlane.f32.xlu1 %v2615_v63 }
 0x412   :  { %2622 = vadd.xlane.f32.xlu1 %v2621_v43  ;;  %v2475_v43 = vmul.f32 1.442695, %v2402_v32  ;;  %v2404_v32 = vsub.f32 %v7503_v23, %v2236_v14 }
 0x414   :  { %6191 = vpow2.f32 %v2475_v43  ;;  %v2479_v24 = vmul.f32 1.442695, %v2404_v32 }
 0x416   :  { %2628 = vadd.xlane.f32.xlu1 %v2627_v39  ;;  %6193 = vpow2.f32 %v2479_v24 }
 0x41e   :  { %v7756_v16 = vpop.f32.mrb[48].mxu1  ;;  %v7787_v29 = vpop.eup %6191 }
 0x41f   :  { %v7758_v19 = vpop.f32.mrb[49].mxu1  ;;  %v2348_v38 = vsel %vm2200_vm7, %v7756_v16, -inf  ;;  %8839 = vst [vmem:[#allocation47_spill] sm:$0xff] %v7787_v29  ;;  %v2612_v23 = vsel %vm2200_vm7, %v7787_v29, 0.0 }
 0x420   :  { %2349 = vmax.xlane.f32.xlu0 %v2348_v38  ;;  %v2345_v63 = vsel %vm2200_vm7, %v7758_v19, -inf }
 0x422   :  { %v7763_v10 = vpop.f32.mrb[50].mxu1 }
 0x423   :  { %v7765_v42 = vpop.f32.mrb[51].mxu1  ;;  %v2354_v57 = vsel %vm2200_vm7, %v7763_v10, -inf }
 0x424   :  { %2346 = vmax.xlane.f32.xlu0 %v2345_v63  ;;  %v2351_v38 = vsel %vm2200_vm7, %v7765_v42, -inf  ;;  %v2242_v63 = vpop.xlane.xlu0 %2241 }
 0x425   :  { %v2406_v28 = vsub.f32 %v7515_v2, %v2242_v63 }
 0x426   :  { %v7769_v39 = vpop.f32.mrb[52].mxu1 }
 0x427   :  { %v7771_v59 = vpop.f32.mrb[53].mxu1  ;;  %v2360_v52 = vsel %vm2200_vm7, %v7769_v39, -inf  ;;  %v2483_v21 = vmul.f32 1.442695, %v2406_v28 }
 0x428   :  { %8836 = vst [vmem:[#allocation44_spill] sm:$0xff] %v7771_v59  ;;  %2355 = vmax.xlane.f32.xlu0 %v2354_v57  ;;  %v2248_v57 = vpop.xlane.xlu0 %2247  ;;  %v2357_v43 = vsel %vm2200_vm7, %v7771_v59, -inf }
 0x429   :  { %6195 = vpow2.f32 %v2483_v21 }
 0x42a   :  { %v7775_v13 = vpop.f32.mrb[54].mxu1  ;;  %v2251_v14 = vpop.xlane.xlu1 %2250 }
 0x42b   :  { %8837 = vst [vmem:[#allocation45_spill] sm:$0xff] %v7775_v13  ;;  %v7777_v58 = vpop.f32.mrb[55].mxu1  ;;  %v2366_v59 = vsel %vm2200_vm7, %v7775_v13, -inf }
 0x42c   :  { %8838 = vst [vmem:[#allocation46_spill] sm:$0xff] %v7777_v58  ;;  %2352 = vmax.xlane.f32.xlu0 %v2351_v38  ;;  %v2408_v38 = vsub.f32 %v7529_v37, %v2248_v57  ;;  %v2409_v57 = vsub.f32 %v7554_v36, %v2251_v14 }
 0x42e   :  { %v2487_v32 = vmul.f32 1.442695, %v2408_v38  ;;  %v2257_v37 = vpop.xlane.xlu1 %2256  ;;  %v2363_v38 = vsel %vm2200_vm7, %v7777_v58, -inf  ;;  %v2489_v29 = vmul.f32 1.442695, %v2409_v57 }
 0x42f   :  { %v2411_v36 = vsub.f32 %v7562_v26, %v2257_v37 }
 0x430   :  { %2361 = vmax.xlane.f32.xlu0 %v2360_v52  ;;  %v2254_v52 = vpop.xlane.xlu0 %2253  ;;  %6197 = vpow2.f32 %v2487_v32 }
 0x431   :  { %v2410_v32 = vsub.f32 %v7552_v46, %v2254_v52  ;;  %6199 = vpow2.f32 %v2489_v29  ;;  %v2493_v26 = vmul.f32 1.442695, %v2411_v36 }
 0x432   :  { %v2263_v13 = vpop.xlane.xlu1 %2262 }
 0x433   :  { %v2491_v46 = vmul.f32 1.442695, %v2410_v32  ;;  %v2413_v37 = vsub.f32 %v7570_v53, %v2263_v13 }
 0x434   :  { %2358 = vmax.xlane.f32.xlu0 %v2357_v43  ;;  %v2260_v21 = vpop.xlane.xlu0 %2259 }
 0x435   :  { %v2412_v52 = vsub.f32 %v7560_v15, %v2260_v21  ;;  %6201 = vpow2.f32 %v2491_v46  ;;  %v2497_v29 = vmul.f32 1.442695, %v2413_v37 }
 0x436   :  { %6203 = vpow2.f32 %v2493_v26  ;;  %v2269_v53 = vpop.xlane.xlu1 %2268 }
 0x437   :  { %v2495_v15 = vmul.f32 1.442695, %v2412_v52 }
 0x438   :  { %2613 = vadd.xlane.f32.xlu0 %v2612_v23  ;;  %v7807_v23 = vpop.eup %6193 }
 0x439   :  { %8842 = vst [vmem:[#allocation50_spill] sm:$0xff] %v7807_v23  ;;  %6205 = vpow2.f32 %v2495_v15 }
 0x43a   :  { %v7792_v2 = vpop.f32.mrb[48].mxu0  ;;  %6207 = vpow2.f32 %v2497_v29 }
 0x43b   :  { %v7794_v63 = vpop.f32.mrb[49].mxu0 }
 0x43c   :  { %8840 = vst [vmem:[#allocation48_spill] sm:$0xff] %v7794_v63  ;;  %2367 = vmax.xlane.f32.xlu0 %v2366_v59  ;;  %v2369_v24 = vsel %vm2200_vm7, %v7794_v63, -inf  ;;  %v2618_v63 = vsel %vm2200_vm7, %v7807_v23, 0.0 }
 0x43d   :  { %2370 = vmax.xlane.f32.xlu1 %v2369_v24 }
 0x43e   :  { %v7800_v28 = vpop.f32.mrb[50].mxu0 }
 0x43f   :  { %v7803_v43 = vpop.f32.mrb[51].mxu0 }
 0x440   :  { %8841 = vst [vmem:[#allocation49_spill] sm:$0xff] %v7803_v43  ;;  %2364 = vmax.xlane.f32.xlu0 %v2363_v38  ;;  %v2375_v59 = vsel %vm2200_vm7, %v7803_v43, -inf  ;;  %v7821_v38 = vpop.eup %6195 }
 0x441   :  { %2376 = vmax.xlane.f32.xlu1 %v2375_v59  ;;  %v2266_v59 = vpop.xlane.xlu0 %2265  ;;  %v2624_v23 = vsel %vm2200_vm7, %v7821_v38, 0.0 }
 0x442   :  { %v7812_v24 = vpop.f32.mrb[52].mxu0 }
 0x443   :  { %8843 = vst [vmem:[#allocation51_spill] sm:$0xff] %v7812_v24  ;;  %v7815_v14 = vpop.f32.mrb[53].mxu0  ;;  %v2384_v58 = vsel %vm2200_vm7, %v7812_v24, -inf  ;;  %v7831_v24 = vpop.eup %6197 }
 0x444   :  { %2619 = vadd.xlane.f32.xlu0 %v2618_v63  ;;  %v2414_v63 = vsub.f32 %v7568_v41, %v2266_v59  ;;  %v2630_v13 = vsel %vm2200_vm7, %v7831_v24, 0.0  ;;  %v2372_v41 = vsel %vm2200_vm7, %v7792_v2, -inf  ;;  %v7846_v26 = vpop.eup %6199 }
 0x445   :  { %2385 = vmax.xlane.f32.xlu1 %v2384_v58  ;;  %v2381_v58 = vsel %vm2200_vm7, %v7815_v14, -inf  ;;  %v2272_v21 = vpop.xlane.xlu0 %2271  ;;  %v7851_v29 = vpop.eup %6201 }
 0x446   :  { %v7824_v57 = vpop.f32.mrb[54].mxu0  ;;  %v2416_v36 = vsub.f32 %v7576_v61, %v2272_v21  ;;  %v7855_v21 = vpop.eup %6203 }
 0x447   :  { %v7827_v43 = vpop.f32.mrb[55].mxu0  ;;  %v2390_v32 = vsel %vm2200_vm7, %v7824_v57, -inf  ;;  %8844 = vst [vmem:[#allocation52_spill] sm:$0xff] %v7855_v21 }
 0x448   :  { %2625 = vadd.xlane.f32.xlu0 %v2624_v23  ;;  %v2499_v23 = vmul.f32 1.442695, %v2414_v63  ;;  %v2387_v52 = vsel %vm2200_vm7, %v7827_v43, -inf  ;;  %v2503_v37 = vmul.f32 1.442695, %v2416_v36  ;;  %v2378_v63 = vsel %vm2200_vm7, %v7800_v28, -inf }
 0x449   :  { %2382 = vmax.xlane.f32.xlu1 %v2381_v58  ;;  %v2415_v58 = vsub.f32 %v7578_v6, %v2269_v53  ;;  %v2636_v6 = vsel %vm2200_vm7, %v7851_v29, 0.0  ;;  %v7859_v53 = vpop.eup %6205 }
 0x44a   :  { %6209 = vpow2.f32 %v2499_v23  ;;  %8845 = vst [vmem:[#allocation53_spill] sm:$0xff] %v7859_v53  ;;  %v2639_v23 = vsel %vm2200_vm7, %v7855_v21, 0.0  ;;  %v7863_v36 = vpop.eup %6207 }
 0x44b   :  { %8846 = vst [vmem:[#allocation54_spill] sm:$0xff] %v7863_v36 }
 0x44c   :  { %2631 = vadd.xlane.f32.xlu0 %v2630_v13  ;;  %v2501_v13 = vmul.f32 1.442695, %v2415_v58 }
 0x44d   :  { %2391 = vmax.xlane.f32.xlu1 %v2390_v32 }
 0x44f   :  { %v2278_v46 = vpop.xlane.xlu1 %2277 }
 0x450   :  { %v2418_v59 = vsub.f32 %v7592_v4, %v2278_v46  ;;  %2373 = vmax.xlane.f32.xlu0 %v2372_v41  ;;  %v2633_v4 = vsel %vm2200_vm7, %v7846_v26, 0.0  ;;  %v2642_v41 = vsel %vm2200_vm7, %v7859_v53, 0.0 }
 0x451   :  { %2388 = vmax.xlane.f32.xlu1 %v2387_v52  ;;  %v2645_v52 = vsel %vm2200_vm7, %v7863_v36, 0.0 }
 0x452   :  { %v2507_v15 = vmul.f32 1.442695, %v2418_v59 }
 0x453   :  { %v2275_v61 = vpop.xlane.xlu1 %2274 }
 0x454   :  { %6211 = vpow2.f32 %v2507_v15  ;;  %2379 = vmax.xlane.f32.xlu0 %v2378_v63  ;;  %v7867_v59 = vpop.eup %6209  ;;  %v2417_v58 = vsub.f32 %v7594_v56, %v2275_v61 }
 0x455   :  { %2634 = vadd.xlane.f32.xlu1 %v2633_v4  ;;  %6213 = vpow2.f32 %v2503_v37  ;;  %8847 = vst [vmem:[#allocation55_spill] sm:$0xff] %v7867_v59  ;;  %v2648_v4 = vsel %vm2200_vm7, %v7867_v59, 0.0 }
 0x456   :  { %6215 = vpow2.f32 %v2501_v13 }
 0x457   :  { %v2284_v32 = vpop.xlane.xlu1 %2283 }
 0x458   :  { %2637 = vadd.xlane.f32.xlu0 %v2636_v6  ;;  %v2420_v36 = vsub.f32 %v7600_v30, %v2284_v32 }
 0x459   :  { %2640 = vadd.xlane.f32.xlu1 %v2639_v23 }
 0x45b   :  { %v2281_v46 = vpop.xlane.xlu1 %2280 }
 0x45c   :  { %2643 = vadd.xlane.f32.xlu0 %v2642_v41 }
 0x45d   :  { %2646 = vadd.xlane.f32.xlu1 %v2645_v52  ;;  %v2505_v52 = vmul.f32 1.442695, %v2417_v58  ;;  %v2419_v58 = vsub.f32 %v7602_v11, %v2281_v46 }
 0x45e   :  { %v7871_v37 = vpop.eup %6211 }
 0x45f   :  { %8848 = vst [vmem:[#allocation56_spill] sm:$0xff] %v7871_v37  ;;  %v2290_v15 = vpop.xlane.xlu1 %2289  ;;  %v2302_v63 = vpop.xlane.xlu0 %2301  ;;  %v2660_v23 = vsel %vm2200_vm7, %v7871_v37, 0.0 }
 0x460   :  { %v7876_v13 = vpop.eup %6213  ;;  %v2426_v6 = vsub.f32 %v7625_v34, %v2302_v63  ;;  %2649 = vadd.xlane.f32.xlu0 %v2648_v4  ;;  %v2511_v63 = vmul.f32 1.442695, %v2420_v36 }
 0x461   :  { %2661 = vadd.xlane.f32.xlu1 %v2660_v23  ;;  %v2654_v61 = vsel %vm2200_vm7, %v7876_v13, 0.0  ;;  %v7886_v59 = vpop.eup %6215 }
 0x462   :  { %v2523_v41 = vmul.f32 1.442695, %v2426_v6  ;;  %v2651_v30 = vsel %vm2200_vm7, %v7886_v59, 0.0 }
 0x463   :  { %v7882_v53 = vpop.xlane.xlu1 %2286  ;;  %v2299_v56 = vpop.xlane.xlu0 %2298 }
 0x464   :  { %v2425_v21 = vsub.f32 %v7627_v5, %v2299_v56  ;;  %2655 = vadd.xlane.f32.xlu0 %v2654_v61  ;;  %6217 = vpow2.f32 %v2523_v41 }
 0x465   :  { %6219 = vpow2.f32 %v2505_v52 }
 0x466   :  { %v2521_v34 = vmul.f32 1.442695, %v2425_v21  ;;  %v2509_v21 = vmul.f32 1.442695, %v2419_v58 }
 0x467   :  { %v2296_v4 = vpop.xlane.xlu1 %2295  ;;  %v2308_v6 = vpop.xlane.xlu0 %2307 }
 0x468   :  { %v2428_v32 = vsub.f32 %v7635_v9, %v2308_v6  ;;  %2652 = vadd.xlane.f32.xlu0 %v2651_v30  ;;  %6221 = vpow2.f32 %v2521_v34  ;;  %v2424_v11 = vsub.f32 %v7616_v48, %v2296_v4  ;;  %v2422_v34 = vsub.f32 %v7608_v54, %v2290_v15 }
 0x469   :  { %6223 = vpow2.f32 %v2511_v63 }
 0x46a   :  { %v2527_v23 = vmul.f32 1.442695, %v2428_v32  ;;  %v2519_v48 = vmul.f32 1.442695, %v2424_v11 }
 0x46b   :  { %v7893_v37 = vpop.xlane.xlu1 %2292  ;;  %v2305_v5 = vpop.xlane.xlu0 %2304 }
 0x46c   :  { %6225 = vpow2.f32 %v2527_v23  ;;  %v2427_v36 = vsub.f32 %v7637_v60, %v2305_v5  ;;  %v2515_v5 = vmul.f32 1.442695, %v2422_v34 }
 0x46d   :  { %6227 = vpow2.f32 %v2509_v21 }
 0x46e   :  { %v7895_v41 = vpop.eup %6217  ;;  %v2525_v63 = vmul.f32 1.442695, %v2427_v36 }
 0x46f   :  { %v7898_v52 = vpop.xlane.xlu1 %2598  ;;  %v2314_v56 = vpop.xlane.xlu0 %2313  ;;  %v2684_v9 = vsel %vm2200_vm7, %v7895_v41, 0.0 }
 0x470   :  { %v7902_v61 = vpop.eup %6219  ;;  %2685 = vadd.xlane.f32.xlu1 %v2684_v9  ;;  %6229 = vpow2.f32 %v2525_v63  ;;  %v2430_v54 = vsub.f32 %v7643_v20, %v2314_v56  ;;  %v2421_v9 = vsub.f32 %v7610_v51, %v7882_v53  ;;  %v2423_v51 = vsub.f32 %v7618_v35, %v7893_v37 }
 0x471   :  { %v2657_v32 = vsel %vm2200_vm7, %v7902_v61, 0.0 }
 0x472   :  { %v7905_v46 = vpop.eup %6221  ;;  %v2531_v11 = vmul.f32 1.442695, %v2430_v54 }
 0x473   :  { %v7908_v6 = vpop.xlane.xlu1 %2604  ;;  %v2311_v60 = vpop.xlane.xlu0 %2310  ;;  %v2681_v58 = vsel %vm2200_vm7, %v7905_v46, 0.0 }
 0x474   :  { %v2429_v30 = vsub.f32 %v7645_v55, %v2311_v60  ;;  %v7915_v23 = vpop.eup %6223  ;;  %2658 = vadd.xlane.f32.xlu1 %v2657_v32  ;;  %2682 = vadd.xlane.f32.xlu0 %v2681_v58  ;;  %v2513_v32 = vmul.f32 1.442695, %v2421_v9 }
 0x475   :  { %v2666_v55 = vsel %vm2200_vm7, %v7915_v23, 0.0 }
 0x476   :  { %v2529_v4 = vmul.f32 1.442695, %v2429_v30  ;;  %v7920_v36 = vpop.eup %6225 }
 0x477   :  { %v2326_v15 = vpop.xlane.xlu1 %2325  ;;  %v2590_v21 = vpop.xlane.xlu0 %2589  ;;  %v2690_v56 = vsel %vm2200_vm7, %v7920_v36, 0.0 }
 0x478   :  { %6231 = vpow2.f32 %v2529_v4  ;;  %2667 = vadd.xlane.f32.xlu0 %v2666_v55  ;;  %v7929_v63 = vpop.eup %6227 }
 0x479   :  { %6233 = vpow2.f32 %v2519_v48  ;;  %v2663_v53 = vsel %vm2200_vm7, %v7929_v63, 0.0 }
 0x47a   :  { %6235 = vpow2.f32 %v2515_v5  ;;  %v2434_v5 = vsub.f32 %v7662_v1, %v2326_v15 }
 0x47b   :  { %v7924_v60 = vpop.xlane.xlu1 %2322  ;;  %v2320_v34 = vpop.xlane.xlu0 %2319  ;;  %6237 = vpow2.f32 %v2531_v11 }
 0x47c   :  { %v2432_v20 = vsub.f32 %v7652_v0, %v2320_v34  ;;  %2691 = vadd.xlane.f32.xlu0 %v2690_v56  ;;  %6239 = vrcp.f32 %v2590_v21  ;;  %v7937_v0 = vpop.eup %6229  ;;  %v2517_v21 = vmul.f32 1.442695, %v2423_v51  ;;  %v2539_v1 = vmul.f32 1.442695, %v2434_v5 }
 0x47d   :  { %v2687_v11 = vsel %vm2200_vm7, %v7937_v0, 0.0 }
 0x47e   :  { %v2535_v30 = vmul.f32 1.442695, %v2432_v20 }
 0x47f   :  { %v7931_v58 = vpop.xlane.xlu1 %2331  ;;  %v2587_v48 = vpop.xlane.xlu0 %2586 }
 0x480   :  { %6241 = vpow2.f32 %v2535_v30  ;;  %2664 = vadd.xlane.f32.xlu0 %v2663_v53 }
 0x481   :  { %6243 = vrcp.f32 %v2587_v48 }
 0x482   :  { %v7939_v4 = vpop.eup %6231  ;;  %6245 = vpow2.f32 %v2513_v32 }
 0x483   :  { %v7942_v54 = vpop.xlane.xlu1 %2328  ;;  %v2317_v55 = vpop.xlane.xlu0 %2316  ;;  %v2693_v35 = vsel %vm2200_vm7, %v7939_v4, 0.0  ;;  %6247 = vpow2.f32 %v2517_v21 }
 0x484   :  { %v7946_v37 = vpop.eup %6233  ;;  %v2431_v9 = vsub.f32 %v7654_v3, %v2317_v55  ;;  %2694 = vadd.xlane.f32.xlu1 %v2693_v35  ;;  %2688 = vadd.xlane.f32.xlu0 %v2687_v11 }
 0x485   :  { %8849 = vst [vmem:[#allocation57_spill] sm:$0xff] %v7946_v37  ;;  %v7951_v34 = vpop.eup %6235  ;;  %v2678_v30 = vsel %vm2200_vm7, %v7946_v37, 0.0 }
 0x486   :  { %v2533_v20 = vmul.f32 1.442695, %v2431_v9  ;;  %v2672_v3 = vsel %vm2200_vm7, %v7951_v34, 0.0  ;;  %v7959_v32 = vpop.eup %6237 }
 0x487   :  { %v7953_v15 = vpop.xlane.xlu1 %2337  ;;  %v2596_v56 = vpop.xlane.xlu0 %2595  ;;  %v2696_v21 = vsel %vm2200_vm7, %v7959_v32, 0.0 }
 0x488   :  { %2679 = vadd.xlane.f32.xlu1 %v2678_v30  ;;  %6249 = vpow2.f32 %v2533_v20  ;;  %2673 = vadd.xlane.f32.xlu0 %v2672_v3  ;;  %v6240_v48 = vpop.eup %6239 }
 0x489   :  { %6251 = vpow2.f32 %v2539_v1  ;;  %v2842_v20 = vmul.f32 %v6240_v48, %v7679_v47 }
 0x48a   :  { %v7961_v51 = vpop.eup %6241  ;;  %6253 = vrcp.f32 %v2596_v56 }
 0x48b   :  { %v7963_v53 = vpop.xlane.xlu1 %2334  ;;  %v2593_v5 = vpop.xlane.xlu0 %2592  ;;  %v2702_v35 = vsel %vm2200_vm7, %v7961_v51, 0.0 }
 0x48c   :  { %v6244_v55 = vpop.eup %6243  ;;  %6255 = vrcp.f32 %v2593_v5  ;;  %2703 = vadd.xlane.f32.xlu1 %v2702_v35  ;;  %2697 = vadd.xlane.f32.xlu0 %v2696_v21 }
 0x48d   :  { %v7969_v9 = vpop.eup %6245  ;;  %v2841_v11 = vmul.f32 %v6244_v55, %v7699_v44  ;;  %6257 = vrcp.f32 %v7898_v52  ;;  %v8850_v44 = vld [vmem:[#allocation23_spill] sm:$0xff] }
 0x48e   :  { %v2669_v30 = vsel %vm2200_vm7, %v7969_v9, 0.0  ;;  %v7981_v3 = vpop.eup %6247 }
 0x48f   :  { %5288 = vmatprep.mubr.msk.f32.mxu1 %vm2200_vm7, %v2841_v11  ;;  %v7975_v1 = vpop.xlane.xlu1 %2343  ;;  %v2602_v56 = vpop.xlane.xlu0 %2601 }
 0x490   :  { %5289 = vmatmul.mubr.msk.f32.vlgmr.msra.gmra.mrb[56].mxu1 %vm2200_vm7, %v2842_v20  ;;  %6259 = vrcp.f32 %v2602_v56  ;;  %2670 = vadd.xlane.f32.xlu0 %v2669_v30  ;;  %v6051_v20 = vunpack.i.h.bf16 %v7485_v62  ;;  %v6050_v56 = vunpack.i.l.bf16 %v7485_v62 }
 0x491   :  { %5753 = vmatpush3.bf16.msra.mxu1 %v8815_v12  ;;  %6261 = vrcp.f32 %v7908_v6  ;;  %v2675_v12 = vsel %vm2200_vm7, %v7981_v3, 0.0  ;;  %v8851_v6 = vld [vmem:[#allocation25_spill] sm:$0xff] }
 0x492   :  { %5755 = vmatprep.subr.bf16.mxu1 %v8850_v44  ;;  %v7985_v47 = vpop.eup %6249  ;;  %v8006_v62 = vpack.c.bf16 %v6051_v20, %v6050_v56  ;;  %v2435_v56 = vsub.f32 %v7681_v22, %v7942_v54 }
 0x493   :  { %v2611_v52 = vpop.xlane.xlu1 %2610  ;;  %v2608_v48 = vpop.xlane.xlu0 %2607  ;;  %v2699_v5 = vsel %vm2200_vm7, %v7985_v47, 0.0 }
 0x494   :  { %v7989_v55 = vpop.eup %6251  ;;  %6263 = vrcp.f32 %v2611_v52  ;;  %2700 = vadd.xlane.f32.xlu1 %v2699_v5  ;;  %2676 = vadd.xlane.f32.xlu0 %v2675_v12  ;;  %v8852_v52 = vld [vmem:[#allocation27_spill] sm:$0xff] }
 0x495   :  { %5757 = vmatpush3.bf16.msra.mxu1 %v8850_v44  ;;  %v6254_v35 = vpop.eup %6253  ;;  %6265 = vrcp.f32 %v2608_v48  ;;  %v2708_v44 = vsel %vm2200_vm7, %v7989_v55, 0.0 }
 0x496   :  { %5759 = vmatprep.subr.bf16.mxu1 %v8851_v6  ;;  %v6256_v21 = vpop.eup %6255  ;;  %v2844_v5 = vmul.f32 %v6254_v35, %v7713_v7 }
 0x497   :  { %v6258_v11 = vpop.eup %6257  ;;  %v2843_v30 = vmul.f32 %v6256_v21, %v7720_v49 }
 0x498   :  { %2709 = vadd.xlane.f32.xlu0 %v2708_v44  ;;  %v2845_v12 = vmul.f32 %v6258_v11, %v7660_v50 }
 0x499   :  { %5761 = vmatpush3.bf16.msra.mxu1 %v8851_v6  ;;  %5291 = vmatprep.mubr.msk.f32.mxu1 %vm2200_vm7, %v2843_v30 }
 0x49a   :  { %5763 = vmatprep.subr.bf16.mxu1 %v8852_v52  ;;  %v6260_v48 = vpop.eup %6259  ;;  %5292 = vmatmul.mubr.msk.f32.gmra.mrb[58].mxu1 %vm2200_vm7, %v2844_v5 }
 0x49b   :  { %v6262_v37 = vpop.eup %6261  ;;  %v2846_v49 = vmul.f32 %v6260_v48, %v7727_v33  ;;  %5294 = vmatprep.mubr.msk.f32.mxu1 %vm2200_vm7, %v2845_v12  ;;  %v2433_v33 = vsub.f32 %v7670_v18, %v7924_v60  ;;  %v2541_v18 = vmul.f32 1.442695, %v2435_v56  ;;  %v2341_v60 = vpop.xlane.xlu1 %2340  ;;  %v8854_v56 = vld [vmem:[#allocation44_spill] sm:$0xff] }
 0x49c   :  { %v2847_v7 = vmul.f32 %v6262_v37, %v7668_v25  ;;  %v2436_v25 = vsub.f32 %v7673_v40, %v7931_v58 }
 0x49d   :  { %5765 = vmatpush3.bf16.msra.mxu1 %v8852_v52  ;;  %v2537_v37 = vmul.f32 1.442695, %v2433_v33  ;;  %v2438_v52 = vsub.f32 %v7684_v27, %v7953_v15  ;;  %v2437_v27 = vsub.f32 %v7690_v8, %v7963_v53  ;;  %v8853_v33 = vld [vmem:[#allocation40_spill] sm:$0xff] }
 0x49e   :  { %5767 = vmatprep.subr.bf16.mxu1 %v8006_v62  ;;  %v6264_v6 = vpop.eup %6263  ;;  %5295 = vmatmul.mubr.msk.f32.gmra.mrb[60].mxu1 %vm2200_vm7, %v2846_v49  ;;  %v2543_v44 = vmul.f32 1.442695, %v2436_v25 }
 0x49f   :  { %v6266_v35 = vpop.eup %6265  ;;  %5297 = vmatprep.mubr.msk.f32.mxu1 %vm2200_vm7, %v2847_v7  ;;  %v2849_v21 = vmul.f32 %v6264_v6, %v7736_v45  ;;  %v2547_v58 = vmul.f32 1.442695, %v2438_v52  ;;  %v2617_v48 = vpop.xlane.xlu1 %2616 }
 0x4a0   :  { %v2848_v50 = vmul.f32 %v6266_v35, %v7730_v17 }
 0x4a2   :  { %5298 = vmatmul.mubr.msk.f32.gmra.mrb[62].mxu1 %vm2200_vm7, %v2848_v50  ;;  %v2440_v50 = vsub.f32 %v7693_v31, %v7975_v1 }
 0x4a3   :  { %5316 = vmatprep.mubr.msk.f32.mxu1 %vm2200_vm7, %v2849_v21  ;;  %v2623_v21 = vpop.xlane.xlu1 %2622 }
 0x4a4   :  { %v2551_v31 = vmul.f32 1.442695, %v2440_v50 }
 0x4ad   :  { %v2350_v11 = vpop.xlane.xlu0 %2349 }
 0x4ae   :  { %v2442_v20 = vsub.f32 %v7756_v16, %v2350_v11  ;;  %v2439_v11 = vsub.f32 %v8853_v33, %v2341_v60 }
 0x4b0   :  { %v2555_v17 = vmul.f32 1.442695, %v2442_v20 }
 0x4b1   :  { %v2347_v30 = vpop.xlane.xlu0 %2346 }
 0x4b2   :  { %6267 = vpow2.f32 %v2555_v17  ;;  %v2441_v45 = vsub.f32 %v7758_v19, %v2347_v30 }
 0x4b3   :  { %6269 = vpow2.f32 %v2537_v37 }
 0x4b4   :  { %v2553_v16 = vmul.f32 1.442695, %v2441_v45  ;;  %v2549_v45 = vmul.f32 1.442695, %v2439_v11  ;;  %v8857_v11 = vld [vmem:[#allocation46_spill] sm:$0xff] }
 0x4b5   :  { %v2356_v5 = vpop.xlane.xlu0 %2355 }
 0x4b6   :  { %6271 = vpow2.f32 %v2553_v16  ;;  %v2444_v40 = vsub.f32 %v7763_v10, %v2356_v5  ;;  %v8062_v16 = vpop.xlane.xlu1 %2628 }
 0x4b7   :  { %6273 = vpow2.f32 %v2543_v44 }
 0x4b8   :  { %6275 = vpow2.f32 %v2541_v18  ;;  %v2559_v22 = vmul.f32 1.442695, %v2444_v40 }
 0x4b9   :  { %v2353_v54 = vpop.xlane.xlu0 %2352  ;;  %6277 = vpow2.f32 %v2547_v58 }
 0x4ba   :  { %v2443_v19 = vsub.f32 %v7765_v42, %v2353_v54  ;;  %6279 = vpow2.f32 %v2559_v22  ;;  %v2545_v42 = vmul.f32 1.442695, %v2437_v27  ;;  %v8855_v54 = vld [vmem:[#allocation45_spill] sm:$0xff]  ;;  %v8856_v27 = vld [vmem:[#allocation48_spill] sm:$0xff] }
 0x4bc   :  { %v8031_v12 = vpop.eup %6267  ;;  %v2557_v15 = vmul.f32 1.442695, %v2443_v19 }
 0x4bd   :  { %v2362_v49 = vpop.xlane.xlu0 %2361  ;;  %v2732_v10 = vsel %vm2200_vm7, %v8031_v12, 0.0  ;;  %v8037_v6 = vpop.eup %6269 }
 0x4be   :  { %v2446_v7 = vsub.f32 %v7769_v39, %v2362_v49  ;;  %2733 = vadd.xlane.f32.xlu0 %v2732_v10  ;;  %6281 = vpow2.f32 %v2557_v15  ;;  %v2705_v39 = vsel %vm2200_vm7, %v8037_v6, 0.0 }
 0x4c0   :  { %v8040_v35 = vpop.eup %6271  ;;  %v2563_v8 = vmul.f32 1.442695, %v2446_v7 }
 0x4c1   :  { %v8044_v53 = vpop.eup %6273  ;;  %v2359_v20 = vpop.xlane.xlu0 %2358  ;;  %v2729_v25 = vsel %vm2200_vm7, %v8040_v35, 0.0 }
 0x4c2   :  { %v8051_v37 = vpop.eup %6275  ;;  %6283 = vpow2.f32 %v2563_v8  ;;  %v2445_v17 = vsub.f32 %v8854_v56, %v2359_v20  ;;  %2730 = vadd.xlane.f32.xlu1 %v2729_v25  ;;  %2706 = vadd.xlane.f32.xlu0 %v2705_v39  ;;  %v2714_v52 = vsel %vm2200_vm7, %v8044_v53, 0.0  ;;  %v8858_v56 = vld [vmem:[#allocation49_spill] sm:$0xff] }
 0x4c3   :  { %6285 = vpow2.f32 %v2545_v42  ;;  %v8054_v30 = vpop.eup %6277  ;;  %v2711_v18 = vsel %vm2200_vm7, %v8051_v37, 0.0 }
 0x4c4   :  { %v2561_v1 = vmul.f32 1.442695, %v2445_v17  ;;  %6287 = vrcp.f32 %v2617_v48  ;;  %v8060_v60 = vpop.eup %6279  ;;  %v2720_v58 = vsel %vm2200_vm7, %v8054_v30, 0.0 }
 0x4c5   :  { %v2614_v44 = vpop.xlane.xlu0 %2613  ;;  %v2738_v40 = vsel %vm2200_vm7, %v8060_v60, 0.0 }
 0x4c6   :  { %6289 = vpow2.f32 %v2561_v1  ;;  %2715 = vadd.xlane.f32.xlu1 %v2714_v52  ;;  %2712 = vadd.xlane.f32.xlu0 %v2711_v18  ;;  %v8859_v1 = vld [vmem:[#allocation29_spill] sm:$0xff] }
 0x4c7   :  { %6291 = vrcp.f32 %v2614_v44  ;;  %v6055_v44 = vunpack.i.l.bf16 %v8859_v1 }
 0x4c8   :  { %6293 = vpow2.f32 %v2551_v31  ;;  %v8068_v22 = vpop.eup %6281 }
 0x4c9   :  { %6295 = vpow2.f32 %v2549_v45  ;;  %v2368_v5 = vpop.xlane.xlu0 %2367  ;;  %v2735_v50 = vsel %vm2200_vm7, %v8068_v22, 0.0  ;;  %v6056_v45 = vunpack.i.h.bf16 %v8859_v1 }
 0x4ca   :  { %v2448_v48 = vsub.f32 %v8855_v54, %v2368_v5  ;;  %v2371_v19 = vpop.xlane.xlu1 %2370  ;;  %2739 = vadd.xlane.f32.xlu1 %v2738_v40  ;;  %2721 = vadd.xlane.f32.xlu0 %v2720_v58 }
 0x4cb   :  { %v2449_v15 = vsub.f32 %v8856_v27, %v2371_v19  ;;  %v8860_v19 = vld [vmem:[#allocation47_spill] sm:$0xff] }
 0x4cc   :  { %v8072_v49 = vpop.eup %6283  ;;  %v2567_v10 = vmul.f32 1.442695, %v2448_v48 }
 0x4cd   :  { %v2569_v7 = vmul.f32 1.442695, %v2449_v15  ;;  %v2365_v42 = vpop.xlane.xlu0 %2364  ;;  %v2744_v8 = vsel %vm2200_vm7, %v8072_v49, 0.0  ;;  %v8078_v33 = vpop.eup %6285 }
 0x4ce   :  { %6297 = vpow2.f32 %v2567_v10  ;;  %v2447_v20 = vsub.f32 %v8857_v11, %v2365_v42  ;;  %v2377_v25 = vpop.xlane.xlu1 %2376  ;;  %2736 = vadd.xlane.f32.xlu1 %v2735_v50  ;;  %2745 = vadd.xlane.f32.xlu0 %v2744_v8  ;;  %v6288_v39 = vpop.eup %6287  ;;  %v2717_v54 = vsel %vm2200_vm7, %v8078_v33, 0.0  ;;  %v8862_v42 = vld [vmem:[#allocation31_spill] sm:$0xff]  ;;  %v5770_v11 = vpack.c.bf16 %v6056_v45, %v6055_v44  ;;  %v8863_v45 = vld [vmem:[#allocation32_spill] sm:$0xff] }
 0x4cf   :  { %6299 = vpow2.f32 %v2569_v7  ;;  %v2451_v17 = vsub.f32 %v8858_v56, %v2377_v25  ;;  %v6061_v50 = vunpack.i.h.bf16 %v8862_v42  ;;  %v6060_v8 = vunpack.i.l.bf16 %v8862_v42 }
 0x4d0   :  { %v8082_v31 = vpop.eup %6289  ;;  %v2565_v52 = vmul.f32 1.442695, %v2447_v20  ;;  %6301 = vrcp.f32 %v2623_v21  ;;  %v8861_v21 = vld [vmem:[#allocation41_spill] sm:$0xff]  ;;  %v6065_v44 = vunpack.i.l.bf16 %v8863_v45 }
 0x4d1   :  { %v6292_v18 = vpop.eup %6291  ;;  %v2573_v5 = vmul.f32 1.442695, %v2451_v17  ;;  %v2620_v40 = vpop.xlane.xlu0 %2619  ;;  %v2741_v58 = vsel %vm2200_vm7, %v8082_v31, 0.0  ;;  %v2851_v7 = vmul.f32 %v6288_v39, %v8861_v21 }
 0x4d2   :  { %v8090_v48 = vpop.eup %6293  ;;  %v2850_v27 = vmul.f32 %v6292_v18, %v8860_v19  ;;  %6303 = vpow2.f32 %v2565_v52  ;;  %v2386_v15 = vpop.xlane.xlu1 %2385  ;;  %2742 = vadd.xlane.f32.xlu1 %v2741_v58  ;;  %2718 = vadd.xlane.f32.xlu0 %v2717_v54  ;;  %v5774_v52 = vpack.c.bf16 %v6061_v50, %v6060_v8  ;;  %v8865_v8 = vld [vmem:[#allocation51_spill] sm:$0xff] }
 0x4d3   :  { %v8093_v10 = vpop.eup %6295  ;;  %6305 = vpow2.f32 %v2573_v5  ;;  %v2726_v25 = vsel %vm2200_vm7, %v8090_v48, 0.0 }
 0x4d4   :  { %6307 = vrcp.f32 %v2620_v40  ;;  %5317 = vmatmul.mubr.msk.f32.vlgmr.msra.gmra.mrb[64].mxu1 %vm2200_vm7, %v2850_v27  ;;  %v2723_v39 = vsel %vm2200_vm7, %v8093_v10, 0.0  ;;  %v8864_v27 = vld [vmem:[#allocation28_spill] sm:$0xff] }
 0x4d5   :  { %5769 = vmatpush3.bf16.msra.mxu1 %v8006_v62  ;;  %5319 = vmatprep.mubr.msk.f32.mxu1 %vm2200_vm7, %v2851_v7  ;;  %v2626_v20 = vpop.xlane.xlu0 %2625  ;;  %v6066_v62 = vunpack.i.h.bf16 %v8863_v45  ;;  %v6071_v21 = vunpack.i.h.bf16 %v8864_v27  ;;  %v6070_v7 = vunpack.i.l.bf16 %v8864_v27  ;;  %v8867_v27 = vld [vmem:[#allocation42_spill] sm:$0xff] }
 0x4d6   :  { %5771 = vmatprep.subr.bf16.mxu1 %v5770_v11  ;;  %6309 = vrcp.f32 %v2626_v20  ;;  %v2383_v56 = vpop.xlane.xlu1 %2382  ;;  %2727 = vadd.xlane.f32.xlu1 %v2726_v25 }
 0x4d7   :  { %v2453_v17 = vsub.f32 %v7815_v14, %v2383_v56  ;;  %2724 = vadd.xlane.f32.xlu0 %v2723_v39  ;;  %6311 = vrcp.f32 %v8062_v16  ;;  %v5778_v42 = vpack.c.bf16 %v6066_v62, %v6065_v44  ;;  %v8866_v44 = vld [vmem:[#allocation50_spill] sm:$0xff] }
 0x4d8   :  { %v8106_v1 = vpop.eup %6297 }
 0x4d9   :  { %v8111_v18 = vpop.eup %6299  ;;  %v2577_v5 = vmul.f32 1.442695, %v2453_v17  ;;  %5773 = vmatpush3.bf16.msra.mxu1 %v5770_v11  ;;  %v2632_v40 = vpop.xlane.xlu0 %2631  ;;  %v2750_v58 = vsel %vm2200_vm7, %v8106_v1, 0.0  ;;  %v2454_v11 = vsub.f32 %v8865_v8, %v2386_v15 }
 0x4da   :  { %5775 = vmatprep.subr.bf16.mxu1 %v5774_v52  ;;  %6313 = vrcp.f32 %v2632_v40  ;;  %v2392_v14 = vpop.xlane.xlu1 %2391  ;;  %2751 = vadd.xlane.f32.xlu1 %v2750_v58  ;;  %v2753_v54 = vsel %vm2200_vm7, %v8111_v18, 0.0  ;;  %v6302_v19 = vpop.eup %6301  ;;  %v8131_v40 = vpack.c.bf16 %v6071_v21, %v6070_v7 }
 0x4db   :  { %6315 = vpow2.f32 %v2577_v5  ;;  %2754 = vadd.xlane.f32.xlu0 %v2753_v54  ;;  %v2579_v58 = vmul.f32 1.442695, %v2454_v11  ;;  %v2853_v8 = vmul.f32 %v6302_v19, %v8867_v27  ;;  %v2456_v7 = vsub.f32 %v7824_v57, %v2392_v14  ;;  %v8868_v11 = vld [vmem:[#allocation43_spill] sm:$0xff] }
 0x4dc   :  { %v8117_v16 = vpop.eup %6303 }
 0x4dd   :  { %v8121_v50 = vpop.eup %6305  ;;  %5777 = vmatpush3.bf16.msra.mxu1 %v5774_v52  ;;  %v2374_v20 = vpop.xlane.xlu0 %2373  ;;  %v2747_v25 = vsel %vm2200_vm7, %v8117_v16, 0.0  ;;  %v2583_v57 = vmul.f32 1.442695, %v2456_v7 }
 0x4de   :  { %v6308_v56 = vpop.eup %6307  ;;  %5779 = vmatprep.subr.bf16.mxu1 %v5778_v42  ;;  %v2450_v39 = vsub.f32 %v7792_v2, %v2374_v20  ;;  %v2389_v17 = vpop.xlane.xlu1 %2388  ;;  %2748 = vadd.xlane.f32.xlu1 %v2747_v25  ;;  %v2759_v45 = vsel %vm2200_vm7, %v8121_v50, 0.0 }
 0x4df   :  { %v2455_v62 = vsub.f32 %v7827_v43, %v2389_v17  ;;  %2760 = vadd.xlane.f32.xlu0 %v2759_v45  ;;  %v2852_v5 = vmul.f32 %v6308_v56, %v8866_v44 }
 0x4e0   :  { %v6310_v15 = vpop.eup %6309  ;;  %v2571_v52 = vmul.f32 1.442695, %v2450_v39 }
 0x4e1   :  { %v2581_v54 = vmul.f32 1.442695, %v2455_v62  ;;  %5781 = vmatpush3.bf16.msra.mxu1 %v5778_v42  ;;  %v2380_v2 = vpop.xlane.xlu0 %2379  ;;  %v6312_v20 = vpop.eup %6311  ;;  %v2854_v56 = vmul.f32 %v6310_v15, %v7821_v38 }
 0x4e2   :  { %6317 = vpow2.f32 %v2571_v52  ;;  %5320 = vmatmul.mubr.msk.f32.gmra.mrb[66].mxu1 %vm2200_vm7, %v2852_v5  ;;  %5783 = vmatprep.subr.bf16.mxu1 %v8131_v40  ;;  %v2452_v43 = vsub.f32 %v7800_v28, %v2380_v2  ;;  %v2635_v25 = vpop.xlane.xlu1 %2634  ;;  %v2855_v39 = vmul.f32 %v6312_v20, %v8868_v11  ;;  %v8869_v2 = vld [vmem:[#allocation33_spill] sm:$0xff]  ;;  %v8870_v11 = vld [vmem:[#allocation52_spill] sm:$0xff] }
 0x4e3   :  { %6319 = vpow2.f32 %v2581_v54  ;;  %5322 = vmatprep.mubr.msk.f32.mxu1 %vm2200_vm7, %v2853_v8  ;;  %v6081_v20 = vunpack.i.h.bf16 %v8869_v2 }
 0x4e4   :  { %v6314_v21 = vpop.eup %6313  ;;  %v2575_v42 = vmul.f32 1.442695, %v2452_v43  ;;  %6321 = vrcp.f32 %v2635_v25  ;;  %v6080_v43 = vunpack.i.l.bf16 %v8869_v2  ;;  %v8874_v2 = vld [vmem:[#allocation35_spill] sm:$0xff] }
 0x4e5   :  { %v8140_v19 = vpop.eup %6315  ;;  %6323 = vpow2.f32 %v2579_v58  ;;  %v2638_v17 = vpop.xlane.xlu0 %2637  ;;  %v2856_v45 = vmul.f32 %v6314_v21, %v7831_v24 }
 0x4e6   :  { %6325 = vpow2.f32 %v2575_v42  ;;  %5323 = vmatmul.mubr.msk.f32.gmra.mrb[68].mxu1 %vm2200_vm7, %v2854_v56  ;;  %v2641_v28 = vpop.xlane.xlu1 %2640  ;;  %v2765_v38 = vsel %vm2200_vm7, %v8140_v19, 0.0 }
 0x4e7   :  { %5325 = vmatprep.mubr.msk.f32.mxu1 %vm2200_vm7, %v2855_v39  ;;  %6327 = vrcp.f32 %v2638_v17  ;;  %2766 = vadd.xlane.f32.xlu0 %v2765_v38  ;;  %v8871_v17 = vld [vmem:[#allocation30_spill] sm:$0xff] }
 0x4e8   :  { %6329 = vrcp.f32 %v2641_v28  ;;  %v6091_v28 = vunpack.i.h.bf16 %v8871_v17  ;;  %v6090_v38 = vunpack.i.l.bf16 %v8871_v17 }
 0x4e9   :  { %v2644_v14 = vpop.xlane.xlu0 %2643 }
 0x4ea   :  { %5326 = vmatmul.mubr.msk.f32.gmra.mrb[70].mxu1 %vm2200_vm7, %v2856_v45  ;;  %6331 = vrcp.f32 %v2644_v14  ;;  %v2647_v62 = vpop.xlane.xlu1 %2646  ;;  %v5786_v45 = vpack.c.bf16 %v6081_v20, %v6080_v43  ;;  %v6101_v20 = vunpack.i.h.bf16 %v8874_v2  ;;  %v5790_v43 = vpack.c.bf16 %v6091_v28, %v6090_v38 }
 0x4eb   :  { %6333 = vrcp.f32 %v2647_v62  ;;  %v8872_v62 = vld [vmem:[#allocation53_spill] sm:$0xff] }
 0x4ec   :  { %v8149_v44 = vpop.eup %6317  ;;  %6335 = vpow2.f32 %v2583_v57 }
 0x4ed   :  { %v8151_v5 = vpop.eup %6319  ;;  %v2650_v15 = vpop.xlane.xlu0 %2649  ;;  %v2756_v24 = vsel %vm2200_vm7, %v8149_v44, 0.0 }
 0x4ee   :  { %v6322_v52 = vpop.eup %6321  ;;  %6337 = vrcp.f32 %v2650_v15  ;;  %2757 = vadd.xlane.f32.xlu1 %v2756_v24  ;;  %v2771_v58 = vsel %vm2200_vm7, %v8151_v5, 0.0 }
 0x4ef   :  { %v8157_v54 = vpop.eup %6323  ;;  %2772 = vadd.xlane.f32.xlu0 %v2771_v58  ;;  %v2857_v27 = vmul.f32 %v6322_v52, %v7846_v26  ;;  %v8873_v52 = vld [vmem:[#allocation54_spill] sm:$0xff] }
 0x4f0   :  { %v8160_v8 = vpop.eup %6325 }
 0x4f1   :  { %v6328_v25 = vpop.eup %6327  ;;  %5344 = vmatprep.mubr.msk.f32.mxu1 %vm2200_vm7, %v2857_v27  ;;  %v2656_v56 = vpop.xlane.xlu0 %2655  ;;  %v2762_v21 = vsel %vm2200_vm7, %v8160_v8, 0.0 }
 0x4f2   :  { %v6330_v7 = vpop.eup %6329  ;;  %v2858_v42 = vmul.f32 %v6328_v25, %v7851_v29  ;;  %2763 = vadd.xlane.f32.xlu1 %v2762_v21  ;;  %6339 = vrcp.f32 %v2656_v56  ;;  %v2768_v29 = vsel %vm2200_vm7, %v8157_v54, 0.0  ;;  %v8875_v56 = vld [vmem:[#allocation55_spill] sm:$0xff] }
 0x4f3   :  { %v2859_v39 = vmul.f32 %v6330_v7, %v8870_v11  ;;  %v2662_v7 = vpop.xlane.xlu1 %2661 }
 0x4f4   :  { %v6332_v26 = vpop.eup %6331  ;;  %5345 = vmatmul.mubr.msk.f32.vlgmr.msra.gmra.mrb[72].mxu1 %vm2200_vm7, %v2858_v42  ;;  %v8876_v42 = vld [vmem:[#allocation34_spill] sm:$0xff] }
 0x4f5   :  { %v6334_v57 = vpop.eup %6333  ;;  %5785 = vmatpush3.bf16.msra.mxu1 %v8131_v40  ;;  %5347 = vmatprep.mubr.msk.f32.mxu1 %vm2200_vm7, %v2859_v39  ;;  %v2653_v14 = vpop.xlane.xlu0 %2652  ;;  %v2860_v15 = vmul.f32 %v6332_v26, %v8872_v62  ;;  %v6100_v40 = vunpack.i.l.bf16 %v8874_v2  ;;  %v6111_v11 = vunpack.i.h.bf16 %v8876_v42  ;;  %v6110_v39 = vunpack.i.l.bf16 %v8876_v42 }
 0x4f6   :  { %v8177_v24 = vpop.eup %6335  ;;  %5787 = vmatprep.subr.bf16.mxu1 %v5786_v45  ;;  %6341 = vrcp.f32 %v2653_v14  ;;  %2769 = vadd.xlane.f32.xlu1 %v2768_v29  ;;  %v2861_v58 = vmul.f32 %v6334_v57, %v8873_v52 }
 0x4f7   :  { %v2774_v25 = vsel %vm2200_vm7, %v8177_v24, 0.0  ;;  %v5794_v26 = vpack.c.bf16 %v6101_v20, %v6100_v40  ;;  %6343 = vrcp.f32 %v2662_v7  ;;  %v8879_v40 = vld [vmem:[#allocation36_spill] sm:$0xff] }
 0x4f8   :  { %v6338_v27 = vpop.eup %6337  ;;  %5348 = vmatmul.mubr.msk.f32.gmra.mrb[74].mxu1 %vm2200_vm7, %v2860_v15  ;;  %v8877_v15 = vld [vmem:[#allocation24_spill] sm:$0xff] }
 0x4f9   :  { %5789 = vmatpush3.bf16.msra.mxu1 %v5786_v45  ;;  %5350 = vmatprep.mubr.msk.f32.mxu1 %vm2200_vm7, %v2861_v58  ;;  %v2862_v21 = vmul.f32 %v6338_v27, %v8875_v56  ;;  %v5814_v45 = vpack.c.bf16 %v6111_v11, %v6110_v39  ;;  %v8880_v56 = vld [vmem:[#allocation19_spill] sm:$0xff]  ;;  %v8881_v39 = vld [vmem:[#allocation56_spill] sm:$0xff] }
 0x4fa   :  { %5791 = vmatprep.subr.bf16.mxu1 %v5790_v43  ;;  %2775 = vadd.xlane.f32.xlu1 %v2774_v25  ;;  %v6125_v7 = vunpack.i.l.bf16 %v8880_v56 }
 0x4fc   :  { %5351 = vmatmul.mubr.msk.f32.gmra.mrb[76].mxu1 %vm2200_vm7, %v2862_v21  ;;  %v6340_v28 = vpop.eup %6339  ;;  %v6126_v21 = vunpack.i.h.bf16 %v8880_v56 }
 0x4fd   :  { %5793 = vmatpush3.bf16.msra.mxu1 %v5790_v43  ;;  %v2686_v17 = vpop.xlane.xlu1 %2685  ;;  %v2864_v62 = vmul.f32 %v6340_v28, %v7876_v13  ;;  %v6121_v43 = vunpack.i.h.bf16 %v8879_v40  ;;  %v6120_v13 = vunpack.i.l.bf16 %v8879_v40  ;;  %v8886_v40 = vld [vmem:[#allocation21_spill] sm:$0xff] }
 0x4fe   :  { %5795 = vmatprep.subr.bf16.mxu1 %v5794_v26  ;;  %6345 = vrcp.f32 %v2686_v17 }
 0x500   :  { %v6342_v38 = vpop.eup %6341 }
 0x501   :  { %5797 = vmatpush3.bf16.msra.mxu1 %v5794_v26  ;;  %v2863_v57 = vmul.f32 %v6342_v38, %v7886_v59  ;;  %v2659_v14 = vpop.xlane.xlu1 %2658  ;;  %v2683_v29 = vpop.xlane.xlu0 %2682  ;;  %v8878_v59 = vld [vmem:[#allocation26_spill] sm:$0xff] }
 0x502   :  { %5815 = vmatprep.subr.bf16.mxu1 %v5814_v45  ;;  %6347 = vrcp.f32 %v2659_v14  ;;  %v6344_v27 = vpop.eup %6343  ;;  %v8882_v38 = vld [vmem:[#allocation22_spill] sm:$0xff] }
 0x503   :  { %5353 = vmatprep.mubr.msk.f32.mxu1 %vm2200_vm7, %v2863_v57  ;;  %6349 = vrcp.f32 %v2683_v29  ;;  %v2866_v26 = vmul.f32 %v6344_v27, %v8881_v39  ;;  %v6131_v57 = vunpack.i.h.bf16 %v8882_v38  ;;  %v6130_v14 = vunpack.i.l.bf16 %v8882_v38  ;;  %v8884_v27 = vld [vmem:[#allocation18_spill] sm:$0xff] }
 0x504   :  { %5354 = vmatmul.mubr.msk.f32.gmra.mrb[78].mxu1 %vm2200_vm7, %v2864_v62  ;;  %v8883_v62 = vld [vmem:[#allocation38_spill] sm:$0xff] }
 0x505   :  { %6158 = vrot.lane.b32.xlu0 %v8877_v15, %s6428_s17  ;;  %v2668_v52 = vpop.xlane.xlu0 %2667  ;;  %v6136_v15 = vunpack.i.h.bf16 %v8883_v62 }
 0x506   :  { %6351 = vrcp.f32 %v2668_v52  ;;  %v6135_v52 = vunpack.i.l.bf16 %v8883_v62 }
 0x508   :  { %v6346_v2 = vpop.eup %6345 }
 0x509   :  { %v2692_v58 = vpop.xlane.xlu0 %2691  ;;  %v2874_v28 = vmul.f32 %v6346_v2, %v7895_v41  ;;  %v5834_v41 = vpack.c.bf16 %v6126_v21, %v6125_v7 }
 0x50b   :  { %6163 = vrot.lane.b32.xlu1 %v8878_v59, %s6428_s17 }
 0x50c   :  { %v6348_v20 = vpop.eup %6347 }
 0x50d   :  { %v6350_v25 = vpop.eup %6349  ;;  %v2665_v42 = vpop.xlane.xlu0 %2664  ;;  %v2865_v11 = vmul.f32 %v6348_v20, %v7902_v61  ;;  %v5818_v61 = vpack.c.bf16 %v6121_v43, %v6120_v13  ;;  %v5822_v20 = vpack.c.bf16 %v6131_v57, %v6130_v14  ;;  %v6146_v43 = vunpack.i.h.bf16 %v8886_v40 }
 0x50e   :  { %6353 = vrcp.f32 %v2665_v42  ;;  %v2873_v17 = vmul.f32 %v6350_v25, %v7905_v46  ;;  %v6145_v13 = vunpack.i.l.bf16 %v8886_v40  ;;  %v5838_v25 = vpack.c.bf16 %v6136_v15, %v6135_v52  ;;  %v8887_v42 = vld [vmem:[#allocation39_spill] sm:$0xff] }
 0x50f   :  { %5372 = vmatprep.mubr.msk.f32.mxu1 %vm2200_vm7, %v2865_v11  ;;  %6355 = vrcp.f32 %v2692_v58  ;;  %v8885_v58 = vld [vmem:[#allocation20_spill] sm:$0xff]  ;;  %v6151_v11 = vunpack.i.h.bf16 %v8887_v42  ;;  %v6150_v39 = vunpack.i.l.bf16 %v8887_v42 }
 0x510   :  { %5400 = vmatprep.mubr.msk.f32.mxu0 %vm2200_vm7, %v2873_v17  ;;  %5373 = vmatmul.mubr.msk.f32.vlgmr.msra.gmra.mrb[80].mxu1 %vm2200_vm7, %v2866_v26  ;;  %v6141_v59 = vunpack.i.h.bf16 %v8885_v58  ;;  %v6140_v2 = vunpack.i.l.bf16 %v8885_v58  ;;  %v6352_v56 = vpop.eup %6351  ;;  %v5842_v17 = vpack.c.bf16 %v6146_v43, %v6145_v13 }
 0x511   :  { %v2695_v29 = vpop.xlane.xlu1 %2694  ;;  %5401 = vmatmul.mubr.msk.f32.vlgmr.msra.gmra.mrb[56].mxu0 %vm2200_vm7, %v2874_v28  ;;  %5817 = vmatpush3.bf16.msra.mxu1 %v5814_v45  ;;  %v2689_v46 = vpop.xlane.xlu0 %2688  ;;  %v2868_v14 = vmul.f32 %v6352_v56, %v7915_v23  ;;  %v8225_v62 = vpack.c.bf16 %v6151_v11, %v6150_v39  ;;  %v8888_v56 = vld [vmem:[#allocation57_spill] sm:$0xff] }
 0x512   :  { %6357 = vrcp.f32 %v2695_v29  ;;  %5833 = vmatpush3.bf16.msra.mxu0 %v8884_v27  ;;  %5819 = vmatprep.subr.bf16.mxu1 %v5818_v61  ;;  %v5826_v26 = vpack.c.bf16 %v6141_v59, %v6140_v2 }
 0x513   :  { %6359 = vrcp.f32 %v2689_v46  ;;  %5835 = vmatprep.subr.bf16.mxu0 %v5834_v41 }
 0x515   :  { %5821 = vmatpush3.bf16.msra.mxu1 %v5818_v61  ;;  %v2674_v45 = vpop.xlane.xlu0 %2673  ;;  %v2680_v21 = vpop.xlane.xlu1 %2679 }
 0x516   :  { %5837 = vmatpush3.bf16.msra.mxu0 %v5834_v41  ;;  %5823 = vmatprep.subr.bf16.mxu1 %v5822_v20 }
 0x517   :  { %5839 = vmatprep.subr.bf16.mxu0 %v5838_v25 }
 0x518   :  { %v6354_v7 = vpop.eup %6353 }
 0x519   :  { %5825 = vmatpush3.bf16.msra.mxu1 %v5822_v20  ;;  %v2698_v28 = vpop.xlane.xlu0 %2697  ;;  %v2867_v38 = vmul.f32 %v6354_v7, %v7929_v63  ;;  %v6356_v57 = vpop.eup %6355 }
 0x51a   :  { %5841 = vmatpush3.bf16.msra.mxu0 %v5838_v25  ;;  %5827 = vmatprep.subr.bf16.mxu1 %v5826_v26  ;;  %6361 = vrcp.f32 %v2698_v28  ;;  %v2704_v15 = vpop.xlane.xlu1 %2703  ;;  %v2876_v23 = vmul.f32 %v6356_v57, %v7920_v36 }
 0x51b   :  { %5843 = vmatprep.subr.bf16.mxu0 %v5842_v17  ;;  %5375 = vmatprep.mubr.msk.f32.mxu1 %vm2200_vm7, %v2867_v38  ;;  %6363 = vrcp.f32 %v2674_v45  ;;  %v8889_v38 = vld [vmem:[#allocation37_spill] sm:$0xff] }
 0x51c   :  { %v6358_v29 = vpop.eup %6357  ;;  %5376 = vmatmul.mubr.msk.f32.gmra.mrb[82].mxu1 %vm2200_vm7, %v2868_v14  ;;  %v6156_v57 = vunpack.i.h.bf16 %v8889_v38  ;;  %v6155_v14 = vunpack.i.l.bf16 %v8889_v38 }
 0x51d   :  { %v6360_v61 = vpop.eup %6359  ;;  %5829 = vmatpush3.bf16.msra.mxu1 %v5826_v26  ;;  %v2671_v52 = vpop.xlane.xlu0 %2670  ;;  %v2877_v41 = vmul.f32 %v6358_v29, %v7939_v4 }
 0x51e   :  { %v2875_v63 = vmul.f32 %v6360_v61, %v7937_v0  ;;  %5845 = vmatpush3.bf16.msra.mxu0 %v5842_v17  ;;  %5847 = vmatprep.subr.bf16.mxu1 %v8225_v62  ;;  %6365 = vrcp.f32 %v2671_v52 }
 0x51f   :  { %6367 = vrcp.f32 %v2680_v21 }
 0x520   :  { %5403 = vmatprep.mubr.msk.f32.mxu0 %vm2200_vm7, %v2875_v63  ;;  %6369 = vrcp.f32 %v2704_v15 }
 0x521   :  { %5404 = vmatmul.mubr.msk.f32.gmra.mrb[58].mxu0 %vm2200_vm7, %v2876_v23  ;;  %v2701_v46 = vpop.xlane.xlu1 %2700  ;;  %v2677_v27 = vpop.xlane.xlu0 %2676 }
 0x522   :  { %5406 = vmatprep.mubr.msk.f32.mxu0 %vm2200_vm7, %v2877_v41  ;;  %6371 = vrcp.f32 %v2701_v46 }
 0x523   :  { %6373 = vrcp.f32 %v2677_v27  ;;  %v5850_v27 = vpack.c.bf16 %v6156_v57, %v6155_v14 }
 0x524   :  { %v6362_v0 = vpop.eup %6361 }
 0x525   :  { %v2878_v58 = vmul.f32 %v6362_v0, %v7959_v32  ;;  %v6364_v59 = vpop.eup %6363 }
 0x526   :  { %v2870_v20 = vmul.f32 %v6364_v59, %v7951_v34  ;;  %v2710_v34 = vpop.xlane.xlu0 %2709 }
 0x527   :  { %5407 = vmatmul.mubr.msk.f32.gmra.mrb[60].mxu0 %vm2200_vm7, %v2878_v58  ;;  %6375 = vrcp.f32 %v2710_v34 }
 0x528   :  { %v6366_v2 = vpop.eup %6365 }
 0x529   :  { %v2869_v36 = vmul.f32 %v6366_v2, %v7969_v9  ;;  %v6368_v4 = vpop.eup %6367 }
 0x52a   :  { %v6370_v40 = vpop.eup %6369  ;;  %v2872_v9 = vmul.f32 %v6368_v4, %v8888_v56 }
 0x52b   :  { %5378 = vmatprep.mubr.msk.f32.mxu1 %vm2200_vm7, %v2869_v36  ;;  %v2880_v45 = vmul.f32 %v6370_v40, %v7961_v51 }
 0x52c   :  { %v6372_v43 = vpop.eup %6371  ;;  %5379 = vmatmul.mubr.msk.f32.gmra.mrb[84].mxu1 %vm2200_vm7, %v2870_v20 }
 0x52d   :  { %v6374_v13 = vpop.eup %6373  ;;  %v2879_v25 = vmul.f32 %v6372_v43, %v7985_v47 }
 0x52e   :  { %v2871_v32 = vmul.f32 %v6374_v13, %v7981_v3 }
 0x52f   :  { %5409 = vmatprep.mubr.msk.f32.mxu0 %vm2200_vm7, %v2879_v25 }
 0x530   :  { %5381 = vmatprep.mubr.msk.f32.mxu1 %vm2200_vm7, %v2871_v32  ;;  %5410 = vmatmul.mubr.msk.f32.gmra.mrb[62].mxu0 %vm2200_vm7, %v2880_v45 }
 0x531   :  { %5382 = vmatmul.mubr.msk.f32.gmra.mrb[86].mxu1 %vm2200_vm7, %v2872_v9  ;;  %v6376_v39 = vpop.eup %6375 }
 0x532   :  { %v2882_v23 = vmul.f32 %v6376_v39, %v7989_v55 }
 0x54b   :  { %v2734_v21 = vpop.xlane.xlu0 %2733 }
 0x54c   :  { %6377 = vrcp.f32 %v2734_v21 }
 0x54f   :  { %v2731_v7 = vpop.xlane.xlu1 %2730  ;;  %v2707_v47 = vpop.xlane.xlu0 %2706 }
 0x550   :  { %6379 = vrcp.f32 %v2731_v7 }
 0x551   :  { %6381 = vrcp.f32 %v2707_v47 }
 0x553   :  { %v2716_v3 = vpop.xlane.xlu1 %2715  ;;  %v2713_v51 = vpop.xlane.xlu0 %2712 }
 0x554   :  { %6383 = vrcp.f32 %v2716_v3 }
 0x555   :  { %6385 = vrcp.f32 %v2713_v51 }
 0x556   :  { %v6378_v26 = vpop.eup %6377 }
 0x557   :  { %v2740_v42 = vpop.xlane.xlu1 %2739  ;;  %v2722_v11 = vpop.xlane.xlu0 %2721  ;;  %v2890_v52 = vmul.f32 %v6378_v26, %v8031_v12 }
 0x558   :  { %6387 = vrcp.f32 %v2740_v42 }
 0x55a   :  { %v6380_v17 = vpop.eup %6379 }
 0x55b   :  { %v6382_v28 = vpop.eup %6381  ;;  %v2737_v29 = vpop.xlane.xlu1 %2736  ;;  %v2889_v15 = vmul.f32 %v6380_v17, %v8040_v35 }
 0x55c   :  { %v2746_v61 = vpop.xlane.xlu0 %2745  ;;  %6389 = vrcp.f32 %v2737_v29  ;;  %v2881_v63 = vmul.f32 %v6382_v28, %v8037_v6 }
 0x55d   :  { %5456 = vmatprep.mubr.msk.f32.mxu0 %vm2200_vm7, %v2889_v15  ;;  %6391 = vrcp.f32 %v2722_v11 }
 0x55e   :  { %v6384_v41 = vpop.eup %6383  ;;  %5428 = vmatprep.mubr.msk.f32.mxu1 %vm2200_vm7, %v2881_v63  ;;  %5457 = vmatmul.mubr.msk.f32.vlgmr.msra.gmra.mrb[64].mxu0 %vm2200_vm7, %v2890_v52  ;;  %6393 = vrcp.f32 %v2746_v61 }
 0x55f   :  { %v6386_v46 = vpop.eup %6385  ;;  %5429 = vmatmul.mubr.msk.f32.vlgmr.msra.gmra.mrb[88].mxu1 %vm2200_vm7, %v2882_v23  ;;  %v2743_v35 = vpop.xlane.xlu1 %2742  ;;  %v2884_v0 = vmul.f32 %v6384_v41, %v8044_v53 }
 0x560   :  { %v2719_v12 = vpop.xlane.xlu0 %2718  ;;  %5849 = vmatpush3.bf16.msra.mxu1 %v8225_v62  ;;  %6395 = vrcp.f32 %v2743_v35  ;;  %v2883_v55 = vmul.f32 %v6386_v46, %v8051_v37 }
 0x561   :  { %5851 = vmatprep.subr.bf16.mxu1 %v5850_v27  ;;  %6397 = vrcp.f32 %v2719_v12 }
 0x562   :  { %5431 = vmatprep.mubr.msk.f32.mxu1 %vm2200_vm7, %v2883_v55  ;;  %v6388_v53 = vpop.eup %6387 }
 0x563   :  { %v8262_v6 = vpop.f32.mrb[56].mxu1  ;;  %5432 = vmatmul.mubr.msk.f32.gmra.mrb[90].mxu1 %vm2200_vm7, %v2884_v0  ;;  %v2728_v58 = vpop.xlane.xlu1 %2727  ;;  %v2892_v40 = vmul.f32 %v6388_v53, %v8060_v60 }
 0x564   :  { %v8265_v59 = vpop.f32.mrb[57].mxu1  ;;  %5853 = vmatpush3.bf16.msra.mxu1 %v5850_v27  ;;  %6399 = vrcp.f32 %v2728_v58  ;;  %v2725_v2 = vpop.xlane.xlu0 %2724 }
 0x565   :  { %6401 = vrcp.f32 %v2725_v2 }
 0x566   :  { %v6390_v62 = vpop.eup %6389 }
 0x567   :  { %v2752_v36 = vpop.xlane.xlu1 %2751  ;;  %v2891_v37 = vmul.f32 %v6390_v62, %v8068_v22  ;;  %v6392_v4 = vpop.eup %6391 }
 0x568   :  { %v2755_v20 = vpop.xlane.xlu0 %2754  ;;  %v6394_v43 = vpop.eup %6393  ;;  %v2886_v60 = vmul.f32 %v6392_v4, %v8054_v30 }
 0x569   :  { %6403 = vrcp.f32 %v2755_v20  ;;  %5459 = vmatprep.mubr.msk.f32.mxu0 %vm2200_vm7, %v2891_v37  ;;  %v2894_v22 = vmul.f32 %v6394_v43, %v8072_v49 }
 0x56a   :  { %v6396_v13 = vpop.eup %6395  ;;  %5460 = vmatmul.mubr.msk.f32.gmra.mrb[66].mxu0 %vm2200_vm7, %v2892_v40  ;;  %6405 = vrcp.f32 %v2752_v36 }
 0x56b   :  { %v6398_v25 = vpop.eup %6397  ;;  %v2749_v32 = vpop.xlane.xlu1 %2748  ;;  %v2893_v45 = vmul.f32 %v6396_v13, %v8082_v31 }
 0x56c   :  { %6407 = vrcp.f32 %v2749_v32  ;;  %v2885_v56 = vmul.f32 %v6398_v25, %v8078_v33  ;;  %v2761_v47 = vpop.xlane.xlu0 %2760 }
 0x56d   :  { %5462 = vmatprep.mubr.msk.f32.mxu0 %vm2200_vm7, %v2893_v45  ;;  %v8278_v21 = vpop.f32.mrb[58].mxu1 }
 0x56e   :  { %v6400_v9 = vpop.eup %6399  ;;  %5434 = vmatprep.mubr.msk.f32.mxu1 %vm2200_vm7, %v2885_v56  ;;  %5463 = vmatmul.mubr.msk.f32.gmra.mrb[68].mxu0 %vm2200_vm7, %v2894_v22  ;;  %v8282_v7 = vpop.f32.mrb[59].mxu1 }
 0x56f   :  { %v6402_v34 = vpop.eup %6401  ;;  %5435 = vmatmul.mubr.msk.f32.gmra.mrb[92].mxu1 %vm2200_vm7, %v2886_v60  ;;  %v2888_v31 = vmul.f32 %v6400_v9, %v8090_v48 }
 0x570   :  { %v2887_v49 = vmul.f32 %v6402_v34, %v8093_v10 }
 0x571   :  { %v8286_v30 = vpop.f32.mrb[60].mxu1 }
 0x572   :  { %5437 = vmatprep.mubr.msk.f32.mxu1 %vm2200_vm7, %v2887_v49  ;;  %v8289_v3 = vpop.f32.mrb[61].mxu1 }
 0x573   :  { %v6404_v33 = vpop.eup %6403  ;;  %5438 = vmatmul.mubr.msk.f32.gmra.mrb[94].mxu1 %vm2200_vm7, %v2888_v31 }
 0x574   :  { %v2897_v51 = vmul.f32 %v6404_v33, %v8111_v18  ;;  %v6406_v42 = vpop.eup %6405  ;;  %v2767_v39 = vpop.xlane.xlu0 %2766 }
 0x575   :  { %v8293_v48 = vpop.f32.mrb[62].mxu1  ;;  %v2896_v17 = vmul.f32 %v6406_v42, %v8106_v1 }
 0x576   :  { %v6408_v11 = vpop.eup %6407  ;;  %5484 = vmatprep.mubr.msk.f32.mxu1 %vm2200_vm7, %v2897_v51  ;;  %v8296_v26 = vpop.f32.mrb[63].mxu1 }
 0x577   :  { %v2895_v10 = vmul.f32 %v6408_v11, %v8117_v16 }
 0x579   :  { %5465 = vmatprep.mubr.msk.f32.mxu0 %vm2200_vm7, %v2895_v10  ;;  %v4218_v10 = vld [vmem:[%s8674_s6] sm:$0xff] }
 0x57a   :  { %5466 = vmatmul.mubr.msk.f32.gmra.mrb[70].mxu0 %vm2200_vm7, %v2896_v17  ;;  %v4220_v17 = vld [vmem:[%s8674_s6 + $0x10] sm:$0xff] }
 0x57b   :  { %v2758_v28 = vpop.xlane.xlu1 %2757 }
 0x57c   :  { %v2773_v38 = vpop.xlane.xlu0 %2772  ;;  %6409 = vrcp.f32 %v2758_v28 }
 0x57d   :  { %6411 = vrcp.f32 %v2761_v47 }
 0x57f   :  { %v2764_v18 = vpop.xlane.xlu1 %2763 }
 0x580   :  { %v6159_v57 = vpop.permute.xlu0 %6158  ;;  %6413 = vrcp.f32 %v2764_v18 }
 0x581   :  { %v6161_v14 = vunpack.i.h.bf16 %v6159_v57  ;;  %v6160_v29 = vunpack.i.l.bf16 %v6159_v57  ;;  %6415 = vrcp.f32 %v2767_v39  ;;  %v4219_v39 = vld [vmem:[%s8674_s6 + $0x8] sm:$0xff] }
 0x582   :  { %v5862_v28 = vpack.c.bf16 %v4219_v39, %v4218_v10 }
 0x583   :  { %v5854_v61 = vpack.c.bf16 %v6161_v14, %v6160_v29  ;;  %v2770_v15 = vpop.xlane.xlu1 %2769  ;;  %v4222_v14 = vld [vmem:[%s8674_s6 + $0x20] sm:$0xff]  ;;  %v4223_v29 = vld [vmem:[%s8674_s6 + $0x28] sm:$0xff] }
 0x584   :  { %6417 = vrcp.f32 %v2770_v15  ;;  %5863 = vmatprep.subr.bf16.mxu0 %v5862_v28  ;;  %v5870_v15 = vpack.c.bf16 %v4223_v29, %v4222_v14 }
 0x585   :  { %5855 = vmatprep.subr.bf16.mxu1 %v5854_v61  ;;  %6419 = vrcp.f32 %v2773_v38  ;;  %v4221_v38 = vld [vmem:[%s8674_s6 + $0x18] sm:$0xff]  ;;  %5865 = vmatpush3.bf16.msra.mxu0 %v5862_v28 }
 0x586   :  { %5857 = vmatpush3.bf16.msra.mxu1 %v5854_v61  ;;  %v6410_v41 = vpop.eup %6409  ;;  %v5866_v57 = vpack.c.bf16 %v4221_v38, %v4220_v17 }
 0x587   :  { %v2776_v16 = vpop.xlane.xlu1 %2775  ;;  %v6412_v46 = vpop.eup %6411  ;;  %v2898_v35 = vmul.f32 %v6410_v41, %v8149_v44  ;;  %v4225_v41 = vld [vmem:[%s8674_s6 + $0x38] sm:$0xff] }
 0x588   :  { %6421 = vrcp.f32 %v2776_v16  ;;  %v2899_v12 = vmul.f32 %v6412_v46, %v8121_v50  ;;  %5867 = vmatprep.subr.bf16.mxu0 %v5866_v57 }
 0x589   :  { %5869 = vmatpush3.bf16.msra.mxu0 %v5866_v57 }
 0x58a   :  { %v6414_v27 = vpop.eup %6413  ;;  %5871 = vmatprep.subr.bf16.mxu0 %v5870_v15 }
 0x58b   :  { %v6164_v1 = vpop.permute.xlu1 %6163  ;;  %v6416_v0 = vpop.eup %6415  ;;  %v2900_v55 = vmul.f32 %v6414_v27, %v8160_v8 }
 0x58c   :  { %v6166_v52 = vunpack.i.h.bf16 %v6164_v1  ;;  %v6165_v63 = vunpack.i.l.bf16 %v6164_v1  ;;  %v2901_v2 = vmul.f32 %v6416_v0, %v8140_v19 }
 0x58d   :  { %5873 = vmatpush3.bf16.msra.mxu0 %v5870_v15 }
 0x58e   :  { %v5858_v23 = vpack.c.bf16 %v6166_v52, %v6165_v63  ;;  %v6418_v58 = vpop.eup %6417 }
 0x58f   :  { %v6420_v53 = vpop.eup %6419  ;;  %v2902_v44 = vmul.f32 %v6418_v58, %v8157_v54 }
 0x590   :  { %5859 = vmatprep.subr.bf16.mxu1 %v5858_v23  ;;  %v2903_v50 = vmul.f32 %v6420_v53, %v8151_v5 }
 0x591   :  { %5861 = vmatpush3.bf16.msra.mxu1 %v5858_v23  ;;  %v4224_v23 = vld [vmem:[%s8674_s6 + $0x30] sm:$0xff] }
 0x592   :  { %v6422_v62 = vpop.eup %6421  ;;  %v5874_v46 = vpack.c.bf16 %v4225_v41, %v4224_v23 }
 0x593   :  { %v2904_v36 = vmul.f32 %v6422_v62, %v8177_v24 }
 0x594   :  { %5485 = vmatmul.mubr.msk.f32.vlgmr.msra.gmra.mrb[96].mxu1 %vm2200_vm7, %v2898_v35  ;;  %5875 = vmatprep.subr.bf16.mxu0 %v5874_v46 }
 0x595   :  { %5487 = vmatprep.mubr.msk.f32.mxu1 %vm2200_vm7, %v2899_v12  ;;  %5877 = vmatpush3.bf16.msra.mxu0 %v5874_v46 }
 0x598   :  { %5488 = vmatmul.mubr.msk.f32.gmra.mrb[98].mxu1 %vm2200_vm7, %v2900_v55 }
 0x599   :  { %5490 = vmatprep.mubr.msk.f32.mxu1 %vm2200_vm7, %v2901_v2 }
 0x59c   :  { %5491 = vmatmul.mubr.msk.f32.gmra.mrb[100].mxu1 %vm2200_vm7, %v2902_v44 }
 0x59d   :  { %5493 = vmatprep.mubr.msk.f32.mxu1 %vm2200_vm7, %v2903_v50 }
 0x5a0   :  { %5494 = vmatmul.mubr.msk.f32.gmra.mrb[102].mxu1 %vm2200_vm7, %v2904_v36 }
 0x5a7   :  { %v8315_v8 = vpop.f32.mrb[64].mxu1 }
 0x5a8   :  { %v8317_v19 = vpop.f32.mrb[65].mxu1 }
 0x5b5   :  { %v8319_v37 = vpop.f32.mrb[66].mxu1 }
 0x5b6   :  { %v8321_v4 = vpop.f32.mrb[67].mxu1 }
 0x5b9   :  { %v8323_v54 = vpop.f32.mrb[68].mxu1 }
 0x5ba   :  { %v8325_v20 = vpop.f32.mrb[69].mxu1 }
 0x5bd   :  { %v8327_v5 = vpop.f32.mrb[70].mxu1 }
 0x5be   :  { %v8329_v40 = vpop.f32.mrb[71].mxu1 }
 0x5c7   :  { %v5346_v43 = vpop.f32.mrb[72].mxu1 }
 0x5c8   :  { %3955 = vrot.lane.b32.xlu1 %v5346_v43, %s6429_s18  ;;  %v3253_v24 = vpop.f32.mrb[73].mxu1 }
 0x5cb   :  { %v5349_v13 = vpop.f32.mrb[74].mxu1 }
 0x5cc   :  { %3953 = vrot.lane.b32.xlu1 %v3253_v24, %s6429_s18  ;;  %v3263_v25 = vpop.f32.mrb[75].mxu1 }
 0x5cd   :  { %3957 = vrot.lane.b32.xlu0 %v3263_v25, %s6429_s18 }
 0x5cf   :  { %v5352_v32 = vpop.f32.mrb[76].mxu1 }
 0x5d0   :  { %3959 = vrot.lane.b32.xlu1 %v5349_v13, %s6429_s18  ;;  %v3273_v45 = vpop.f32.mrb[77].mxu1 }
 0x5d1   :  { %3961 = vrot.lane.b32.xlu0 %v3273_v45, %s6429_s18 }
 0x5d4   :  { %3963 = vrot.lane.b32.xlu1 %v5352_v32, %s6429_s18 }
 0x5d7   :  { %v5355_v56 = vpop.f32.mrb[78].mxu1 }
 0x5d8   :  { %3967 = vrot.lane.b32.xlu1 %v5355_v56, %s6429_s18  ;;  %v3283_v22 = vpop.f32.mrb[79].mxu1 }
 0x5d9   :  { %3965 = vrot.lane.b32.xlu0 %v3283_v22, %s6429_s18 }
 0x5e3   :  { %v5374_v60 = vpop.f32.mrb[80].mxu1 }
 0x5e4   :  { %v5402_v9 = vpop.f32.mrb[56].mxu0  ;;  %v3382_v34 = vpop.f32.mrb[81].mxu1 }
 0x5e5   :  { %4019 = vrot.lane.b32.xlu1 %v5402_v9, %s6430_s19  ;;  %v3511_v31 = vpop.f32.mrb[57].mxu0  ;;  %3969 = vrot.lane.b32.xlu0 %v3382_v34, %s6429_s18 }
 0x5e9   :  { %3971 = vrot.lane.b32.xlu1 %v5374_v60, %s6429_s18 }
 0x5ed   :  { %4017 = vrot.lane.b32.xlu1 %v3511_v31, %s6430_s19 }
 0x5ef   :  { %v5377_v49 = vpop.f32.mrb[82].mxu1 }
 0x5f0   :  { %v3392_v33 = vpop.f32.mrb[83].mxu1 }
 0x5f4   :  { %v5405_v47 = vpop.f32.mrb[58].mxu0 }
 0x5f5   :  { %4023 = vrot.lane.b32.xlu1 %v5405_v47, %s6430_s19  ;;  %v3521_v51 = vpop.f32.mrb[59].mxu0 }
 0x5f6   :  { %4021 = vrot.lane.b32.xlu0 %v3521_v51, %s6430_s19 }
 0x5f9   :  { %3975 = vrot.lane.b32.xlu1 %v5377_v49, %s6429_s18 }
 0x5fa   :  { %3973 = vrot.lane.b32.xlu0 %v3392_v33, %s6429_s18  ;;  %v5408_v42 = vpop.f32.mrb[60].mxu0 }
 0x5fb   :  { %v3531_v11 = vpop.f32.mrb[61].mxu0 }
 0x5fd   :  { %4027 = vrot.lane.b32.xlu1 %v5408_v42, %s6430_s19 }
 0x5fe   :  { %4025 = vrot.lane.b32.xlu0 %v3531_v11, %s6430_s19 }
 0x5ff   :  { %v5380_v18 = vpop.f32.mrb[84].mxu1 }
 0x600   :  { %v3402_v61 = vpop.f32.mrb[85].mxu1 }
 0x601   :  { %3979 = vrot.lane.b32.xlu1 %v5380_v18, %s6429_s18 }
 0x602   :  { %3977 = vrot.lane.b32.xlu0 %v3402_v61, %s6429_s18 }
 0x603   :  { %v5411_v16 = vpop.f32.mrb[62].mxu0 }
 0x604   :  { %v5383_v1 = vpop.f32.mrb[86].mxu1  ;;  %v3541_v52 = vpop.f32.mrb[63].mxu0 }
 0x605   :  { %4031 = vrot.lane.b32.xlu1 %v5411_v16, %s6430_s19  ;;  %v3412_v63 = vpop.f32.mrb[87].mxu1 }
 0x606   :  { %4029 = vrot.lane.b32.xlu0 %v3541_v52, %s6430_s19 }
 0x609   :  { %3983 = vrot.lane.b32.xlu1 %v5383_v1, %s6429_s18 }
 0x60a   :  { %3981 = vrot.lane.b32.xlu0 %v3412_v63, %s6429_s18 }
 0x631   :  { %v5458_v35 = vpop.f32.mrb[64].mxu0 }
 0x632   :  { %v5430_v27 = vpop.f32.mrb[88].mxu1  ;;  %4083 = vrot.lane.b32.xlu1 %v5458_v35, %s6431_s12  ;;  %v3769_v12 = vpop.f32.mrb[65].mxu0 }
 0x633   :  { %v3640_v0 = vpop.f32.mrb[89].mxu1  ;;  %4081 = vrot.lane.b32.xlu0 %v3769_v12, %s6431_s12 }
 0x636   :  { %v5433_v55 = vpop.f32.mrb[90].mxu1  ;;  %4035 = vrot.lane.b32.xlu1 %v5430_v27, %s6430_s19 }
 0x637   :  { %v3650_v58 = vpop.f32.mrb[91].mxu1  ;;  %4033 = vrot.lane.b32.xlu0 %v3640_v0, %s6430_s19  ;;  %v8459_v0 = vld [vmem:[%s8675_s5] ss:$0 sm:$0xff] }
 0x63a   :  { %v8383_v2 = vpop.permute.xlu1 %3955 }
 0x63d   :  { %v5461_v53 = vpop.f32.mrb[66].mxu0 }
 0x63e   :  { %v8385_v44 = vpop.permute.xlu1 %3953  ;;  %v3779_v62 = vpop.f32.mrb[67].mxu0  ;;  %4087 = vrot.lane.b32.xlu1 %v5461_v53, %s6431_s12 }
 0x63f   :  { %4085 = vrot.lane.b32.xlu0 %v3779_v62, %s6431_s12  ;;  %v8397_v56 = vpop.permute.xlu0 %3957 }
 0x641   :  { %v5464_v50 = vpop.f32.mrb[68].mxu0 }
 0x642   :  { %v8389_v36 = vpop.permute.xlu1 %3959  ;;  %v5436_v43 = vpop.f32.mrb[92].mxu1  ;;  %4039 = vrot.lane.b32.xlu1 %v5433_v55, %s6430_s19 }
 0x643   :  { %v3660_v24 = vpop.f32.mrb[93].mxu1  ;;  %v3789_v13 = vpop.f32.mrb[69].mxu0  ;;  %4037 = vrot.lane.b32.xlu0 %v3650_v58, %s6430_s19 }
 0x644   :  { %v8407_v31 = vpop.permute.xlu0 %3961 }
 0x646   :  { %v8393_v25 = vpop.permute.xlu1 %3963  ;;  %v5439_v32 = vpop.f32.mrb[94].mxu1  ;;  %4091 = vrot.lane.b32.xlu1 %v5464_v50, %s6431_s12 }
 0x647   :  { %v3670_v45 = vpop.f32.mrb[95].mxu1  ;;  %4089 = vrot.lane.b32.xlu0 %v3789_v13, %s6431_s12 }
 0x64a   :  { %v3968_v22 = vpop.permute.xlu1 %3967  ;;  %4043 = vrot.lane.b32.xlu1 %v5436_v43, %s6430_s19 }
 0x64b   :  { %v8402_v60 = vsel %vm935_vm5, %v8293_v48, %v3968_v22  ;;  %4041 = vrot.lane.b32.xlu0 %v3660_v24, %s6430_s19  ;;  %v8411_v49 = vpop.permute.xlu0 %3965 }
 0x64d   :  { %v5467_v9 = vpop.f32.mrb[70].mxu0 }
 0x64e   :  { %v3799_v34 = vpop.f32.mrb[71].mxu0  ;;  %4095 = vrot.lane.b32.xlu1 %v5467_v9, %s6431_s12 }
 0x64f   :  { %4093 = vrot.lane.b32.xlu0 %v3799_v34, %s6431_s12 }
 0x652   :  { %4047 = vrot.lane.b32.xlu1 %v5439_v32, %s6430_s19  ;;  %v4131_v32 = vsel %vm935_vm5, %v8282_v7, %v8397_v56  ;;  %v4134_v7 = vsel %vm935_vm5, %v8286_v30, %v8393_v25  ;;  %v4133_v56 = vsel %vm935_vm5, %v8289_v3, %v8407_v31  ;;  %v4135_v31 = vsel %vm935_vm5, %v8296_v26, %v8411_v49 }
 0x653   :  { %4045 = vrot.lane.b32.xlu0 %v3670_v45, %s6430_s19 }
 0x657   :  { %v4020_v33 = vpop.permute.xlu1 %4019  ;;  %v3970_v47 = vpop.permute.xlu0 %3969 }
 0x658   :  { %v8415_v48 = vsel %vm935_vm5, %v8317_v19, %v3970_v47 }
 0x65b   :  { %v3972_v51 = vpop.permute.xlu1 %3971 }
 0x65c   :  { %v8419_v42 = vsel %vm935_vm5, %v8315_v8, %v3972_v51 }
 0x65f   :  { %v4018_v11 = vpop.permute.xlu1 %4017 }
 0x667   :  { %v4024_v10 = vpop.permute.xlu1 %4023  ;;  %v5486_v39 = vpop.f32.mrb[96].mxu1 }
 0x668   :  { %v4022_v17 = vpop.permute.xlu0 %4021  ;;  %4099 = vrot.lane.b32.xlu1 %v5486_v39, %s6431_s12  ;;  %v3898_v28 = vpop.f32.mrb[97].mxu1 }
 0x669   :  { %4097 = vrot.lane.b32.xlu0 %v3898_v28, %s6431_s12  ;;  %v4148_v9 = vsel %vm4145_vm8, %v4131_v32, %v4022_v17 }
 0x66b   :  { %v3976_v38 = vpop.permute.xlu1 %3975  ;;  %v5489_v18 = vpop.f32.mrb[98].mxu1 }
 0x66c   :  { %v8425_v19 = vsel %vm935_vm5, %v8319_v37, %v3976_v38  ;;  %v3974_v57 = vpop.permute.xlu0 %3973  ;;  %4103 = vrot.lane.b32.xlu1 %v5489_v18, %s6431_s12  ;;  %v3908_v8 = vpop.f32.mrb[99].mxu1 }
 0x66d   :  { %v8430_v14 = vsel %vm935_vm5, %v8321_v4, %v3974_v57  ;;  %4101 = vrot.lane.b32.xlu0 %v3908_v8, %s6431_s12 }
 0x66f   :  { %v4028_v29 = vpop.permute.xlu1 %4027  ;;  %v5492_v61 = vpop.f32.mrb[100].mxu1 }
 0x670   :  { %v4026_v15 = vpop.permute.xlu0 %4025  ;;  %4107 = vrot.lane.b32.xlu1 %v5492_v61, %s6431_s12  ;;  %v3918_v16 = vpop.f32.mrb[101].mxu1 }
 0x671   :  { %4105 = vrot.lane.b32.xlu0 %v3918_v16, %s6431_s12  ;;  %v4150_v38 = vsel %vm4145_vm8, %v4133_v56, %v4026_v15 }
 0x673   :  { %v3980_v37 = vpop.permute.xlu1 %3979  ;;  %v5495_v1 = vpop.f32.mrb[102].mxu1 }
 0x674   :  { %v8437_v52 = vsel %vm935_vm5, %v8323_v54, %v3980_v37  ;;  %v3978_v63 = vpop.permute.xlu0 %3977  ;;  %4111 = vrot.lane.b32.xlu1 %v5495_v1, %s6431_s12  ;;  %v3928_v4 = vpop.f32.mrb[103].mxu1 }
 0x675   :  { %v8442_v23 = vsel %vm935_vm5, %v8325_v20, %v3978_v63  ;;  %4109 = vrot.lane.b32.xlu0 %v3928_v4, %s6431_s12  ;;  %v4130_v20 = vsel %vm935_vm5, %v8262_v6, %v8383_v2 }
 0x676   :  { %v4147_v55 = vsel %vm4145_vm8, %v4130_v20, %v4020_v33 }
 0x677   :  { %v4032_v41 = vpop.permute.xlu1 %4031 }
 0x678   :  { %v4030_v46 = vpop.permute.xlu0 %4029 }
 0x679   :  { %v4152_v1 = vsel %vm4145_vm8, %v4135_v31, %v4030_v46 }
 0x67b   :  { %v3984_v35 = vpop.permute.xlu1 %3983 }
 0x67c   :  { %v8447_v27 = vsel %vm935_vm5, %v8327_v5, %v3984_v35  ;;  %v3982_v12 = vpop.permute.xlu0 %3981  ;;  %v4129_v5 = vsel %vm935_vm5, %v8265_v59, %v8385_v44  ;;  %v4132_v44 = vsel %vm935_vm5, %v8278_v21, %v8389_v36 }
 0x67d   :  { %v8451_v54 = vsel %vm935_vm5, %v8329_v40, %v3982_v12  ;;  %v4146_v40 = vsel %vm4145_vm8, %v4129_v5, %v4018_v11  ;;  %v4149_v45 = vsel %vm4145_vm8, %v4132_v44, %v4024_v10  ;;  %v4151_v10 = vsel %vm4145_vm8, %v4134_v7, %v4028_v29 }
 0x67e   :  { %v4153_v29 = vsel %vm4145_vm8, %v8402_v60, %v4032_v41 }
 0x6a4   :  { %v4084_v58 = vpop.permute.xlu1 %4083 }
 0x6a5   :  { %v4164_v53 = vsel %vm4162_vm9, %v4147_v55, %v4084_v58  ;;  %v4082_v62 = vpop.permute.xlu0 %4081 }
 0x6a6   :  { %v4187_v50 = vadd.f32 %v8459_v0, %v4164_v53  ;;  %v4163_v6 = vsel %vm4162_vm9, %v4146_v40, %v4082_v62 }
 0x6a7   :  { %v4186_v2 = vadd.f32 %v8459_v0, %v4163_v6 }
 0x6a8   :  { %v4203_v24 = vmax.f32 %v4187_v50, 0.0  ;;  %v4036_v13 = vpop.permute.xlu1 %4035 }
 0x6a9   :  { %v4202_v43 = vmax.f32 %v4186_v2, 0.0  ;;  %v4034_v59 = vpop.permute.xlu0 %4033  ;;  %v4155_v49 = vsel %vm4145_vm8, %v8419_v42, %v4036_v13 }
 0x6aa   :  { %v4154_v46 = vsel %vm4145_vm8, %v8415_v48, %v4034_v59 }
 0x6ab   :  { %5512 = vmatprep.mubr.msk.f32.mxu0 %vm2200_vm7, %v4202_v43 }
 0x6ac   :  { %5513 = vmatmul.mubr.msk.f32.vlgmr.msra.gmra.mrb[72].mxu0 %vm2200_vm7, %v4203_v24 }
 0x6b0   :  { %v4088_v22 = vpop.permute.xlu1 %4087 }
 0x6b1   :  { %v4166_v34 = vsel %vm4162_vm9, %v4149_v45, %v4088_v22  ;;  %v4086_v33 = vpop.permute.xlu0 %4085 }
 0x6b2   :  { %v4189_v47 = vadd.f32 %v8459_v0, %v4166_v34  ;;  %v4165_v51 = vsel %vm4162_vm9, %v4148_v9, %v4086_v33 }
 0x6b3   :  { %v4188_v11 = vadd.f32 %v8459_v0, %v4165_v51 }
 0x6b4   :  { %v4040_v39 = vpop.permute.xlu1 %4039  ;;  %v4205_v28 = vmax.f32 %v4189_v47, 0.0 }
 0x6b5   :  { %v4204_v21 = vmax.f32 %v4188_v11, 0.0  ;;  %v4038_v36 = vpop.permute.xlu0 %4037  ;;  %v4157_v6 = vsel %vm4145_vm8, %v8425_v19, %v4040_v39 }
 0x6b6   :  { %v4156_v42 = vsel %vm4145_vm8, %v8430_v14, %v4038_v36 }
 0x6b7   :  { %5515 = vmatprep.mubr.msk.f32.mxu0 %vm2200_vm7, %v4204_v21 }
 0x6b8   :  { %v4092_v17 = vpop.permute.xlu1 %4091  ;;  %5516 = vmatmul.mubr.msk.f32.gmra.mrb[74].mxu0 %vm2200_vm7, %v4205_v28 }
 0x6b9   :  { %v4168_v18 = vsel %vm4162_vm9, %v4151_v10, %v4092_v17  ;;  %v4090_v57 = vpop.permute.xlu0 %4089 }
 0x6ba   :  { %v4191_v8 = vadd.f32 %v8459_v0, %v4168_v18  ;;  %v4167_v30 = vsel %vm4162_vm9, %v4150_v38, %v4090_v57 }
 0x6bb   :  { %v4190_v25 = vadd.f32 %v8459_v0, %v4167_v30  ;;  %v8890_v30 = vld [vmem:[#allocation3_spill] sm:$0xff] }
 0x6bc   :  { %v4044_v61 = vpop.permute.xlu1 %4043  ;;  %v4207_v3 = vmax.f32 %v4191_v8, 0.0 }
 0x6bd   :  { %v4206_v16 = vmax.f32 %v4190_v25, 0.0  ;;  %v4042_v37 = vpop.permute.xlu0 %4041  ;;  %v4159_v19 = vsel %vm4145_vm8, %v8437_v52, %v4044_v61  ;;  %v8891_v25 = vmax.f32 %v8890_v30, 0.0  ;;  %v8912_v30 = vld [vmem:[#allocation12_spill] sm:$0xff] }
 0x6be   :  { %v4158_v14 = vsel %vm4145_vm8, %v8442_v23, %v4042_v37 }
 0x6bf   :  { %5518 = vmatprep.mubr.msk.f32.mxu0 %vm2200_vm7, %v4206_v16  ;;  %v8892_v16 = vld [vmem:[#allocation2_spill] sm:$0xff] }
 0x6c0   :  { %v4096_v15 = vpop.permute.xlu1 %4095  ;;  %5519 = vmatmul.mubr.msk.f32.gmra.mrb[76].mxu0 %vm2200_vm7, %v4207_v3  ;;  %v8893_v37 = vmax.f32 %v8892_v16, 0.0 }
 0x6c1   :  { %v4170_v63 = vsel %vm4162_vm9, %v4153_v29, %v4096_v15  ;;  %v4094_v4 = vpop.permute.xlu0 %4093 }
 0x6c2   :  { %v4193_v35 = vadd.f32 %v8459_v0, %v4170_v63  ;;  %v4169_v12 = vsel %vm4162_vm9, %v4152_v1, %v4094_v4 }
 0x6c3   :  { %v4192_v20 = vadd.f32 %v8459_v0, %v4169_v12 }
 0x6c4   :  { %v4209_v55 = vmax.f32 %v4193_v35, 0.0  ;;  %v4048_v26 = vpop.permute.xlu1 %4047  ;;  %v8894_v35 = vld [vmem:[#allocation5_spill] sm:$0xff] }
 0x6c5   :  { %v4208_v5 = vmax.f32 %v4192_v20, 0.0  ;;  %v4046_v60 = vpop.permute.xlu0 %4045  ;;  %v4161_v52 = vsel %vm4145_vm8, %v8447_v27, %v4048_v26  ;;  %v8895_v12 = vmax.f32 %v8894_v35, 0.0  ;;  %v8916_v35 = vld [vmem:[#allocation14_spill] sm:$0xff] }
 0x6c6   :  { %v4160_v23 = vsel %vm4145_vm8, %v8451_v54, %v4046_v60  ;;  %v8555_v54 = vld [vmem:[%s8676_s7] ss:$0 sm:$0xff] }
 0x6c7   :  { %5521 = vmatprep.mubr.msk.f32.mxu0 %vm2200_vm7, %v4208_v5  ;;  %v8896_v5 = vld [vmem:[#allocation4_spill] sm:$0xff] }
 0x6c8   :  { %5522 = vmatmul.mubr.msk.f32.gmra.mrb[78].mxu0 %vm2200_vm7, %v4209_v55  ;;  %v8897_v55 = vmax.f32 %v8896_v5, 0.0 }
 0x6da   :  { %v4100_v41 = vpop.permute.xlu1 %4099 }
 0x6db   :  { %v4172_v58 = vsel %vm4162_vm9, %v4155_v49, %v4100_v41  ;;  %v4098_v40 = vpop.permute.xlu0 %4097 }
 0x6dc   :  { %v4195_v53 = vadd.f32 %v8459_v0, %v4172_v58  ;;  %v4171_v62 = vsel %vm4162_vm9, %v4154_v46, %v4098_v40 }
 0x6dd   :  { %v4194_v50 = vadd.f32 %v8459_v0, %v4171_v62 }
 0x6de   :  { %v4104_v2 = vpop.permute.xlu1 %4103  ;;  %v4211_v13 = vmax.f32 %v4195_v53, 0.0  ;;  %v8898_v53 = vld [vmem:[#allocation7_spill] sm:$0xff] }
 0x6df   :  { %v4210_v43 = vmax.f32 %v4194_v50, 0.0  ;;  %v4174_v24 = vsel %vm4162_vm9, %v4157_v6, %v4104_v2  ;;  %v4102_v48 = vpop.permute.xlu0 %4101  ;;  %v8899_v62 = vmax.f32 %v8898_v53, 0.0  ;;  %v8900_v6 = vld [vmem:[#allocation6_spill] sm:$0xff]  ;;  %v8920_v53 = vld [vmem:[#allocation16_spill] sm:$0xff] }
 0x6e0   :  { %v4197_v59 = vadd.f32 %v8459_v0, %v4174_v24  ;;  %v4173_v44 = vsel %vm4162_vm9, %v4156_v42, %v4102_v48  ;;  %v8901_v2 = vmax.f32 %v8900_v6, 0.0 }
 0x6e1   :  { %v4196_v32 = vadd.f32 %v8459_v0, %v4173_v44  ;;  %5524 = vmatprep.mubr.msk.f32.mxu0 %vm2200_vm7, %v4210_v43 }
 0x6e2   :  { %5525 = vmatmul.mubr.msk.f32.gmra.mrb[80].mxu0 %vm2200_vm7, %v4211_v13  ;;  %v4108_v45 = vpop.permute.xlu1 %4107  ;;  %v4213_v33 = vmax.f32 %v4197_v59, 0.0 }
 0x6e3   :  { %v4212_v22 = vmax.f32 %v4196_v32, 0.0  ;;  %v4176_v9 = vsel %vm4162_vm9, %v4159_v19, %v4108_v45  ;;  %v4106_v34 = vpop.permute.xlu0 %4105  ;;  %v8902_v32 = vld [vmem:[#allocation9_spill] sm:$0xff] }
 0x6e4   :  { %v4199_v47 = vadd.f32 %v8459_v0, %v4176_v9  ;;  %v4175_v51 = vsel %vm4162_vm9, %v4158_v14, %v4106_v34  ;;  %v8903_v19 = vmax.f32 %v8902_v32, 0.0  ;;  %v8904_v14 = vld [vmem:[#allocation8_spill] sm:$0xff] }
 0x6e5   :  { %v4198_v11 = vadd.f32 %v8459_v0, %v4175_v51  ;;  %5527 = vmatprep.mubr.msk.f32.mxu0 %vm2200_vm7, %v4212_v22  ;;  %v8905_v22 = vmax.f32 %v8904_v14, 0.0 }
 0x6e6   :  { %5528 = vmatmul.mubr.msk.f32.gmra.mrb[82].mxu0 %vm2200_vm7, %v4213_v33  ;;  %v4112_v39 = vpop.permute.xlu1 %4111  ;;  %v4215_v7 = vmax.f32 %v4199_v47, 0.0 }
 0x6e7   :  { %v4214_v21 = vmax.f32 %v4198_v11, 0.0  ;;  %v4178_v36 = vsel %vm4162_vm9, %v4161_v52, %v4112_v39  ;;  %v4110_v28 = vpop.permute.xlu0 %4109  ;;  %v8906_v39 = vld [vmem:[#allocation11_spill] sm:$0xff] }
 0x6e8   :  { %v4201_v56 = vadd.f32 %v8459_v0, %v4178_v36  ;;  %v4177_v10 = vsel %vm4162_vm9, %v4160_v23, %v4110_v28  ;;  %v8907_v23 = vmax.f32 %v8906_v39, 0.0  ;;  %v8908_v36 = vld [vmem:[#allocation10_spill] sm:$0xff] }
 0x6e9   :  { %v4200_v17 = vadd.f32 %v8459_v0, %v4177_v10  ;;  %5530 = vmatprep.mubr.msk.f32.mxu0 %vm2200_vm7, %v4214_v21  ;;  %v8909_v28 = vmax.f32 %v8908_v36, 0.0 }
 0x6ea   :  { %5531 = vmatmul.mubr.msk.f32.gmra.mrb[84].mxu0 %vm2200_vm7, %v4215_v7  ;;  %v4217_v38 = vmax.f32 %v4201_v56, 0.0 }
 0x6eb   :  { %v4216_v27 = vmax.f32 %v4200_v17, 0.0 }
 0x6ed   :  { %5533 = vmatprep.mubr.msk.f32.mxu0 %vm2200_vm7, %v4216_v27 }
 0x6ee   :  { %5534 = vmatmul.mubr.msk.f32.gmra.mrb[86].mxu0 %vm2200_vm7, %v4217_v38 }
 0x77f   :  { %v5514_v18 = vpop.f32.mrb[72].mxu0 }
 0x780   :  { %v4353_v57 = vadd.f32 %v5514_v18, %v8555_v54  ;;  %v4347_v8 = vpop.f32.mrb[73].mxu0 }
 0x781   :  { %v4348_v0 = vadd.f32 %v8555_v54, %v4347_v8 }
 0x782   :  { %v4427_v61 = vadd.f32 %v4353_v57, %v8891_v25  ;;  %v8910_v57 = vld [vmem:[#allocation13_spill] sm:$0xff]  ;;  %v8913_v25 = vmax.f32 %v8912_v30, 0.0 }
 0x783   :  { %v4426_v3 = vadd.f32 %v4348_v0, %v8893_v37  ;;  %v8911_v8 = vmax.f32 %v8910_v57, 0.0 }
 0x784   :  { %v4443_v31 = vmax.f32 %v4427_v61, 0.0 }
 0x785   :  { %v4442_v29 = vmax.f32 %v4426_v3, 0.0 }
 0x786   :  { %4460 = vst.msk [vmem:[%s8677_s8 + $0x8] sm:$0xff] %vm4458_vm10, %v4443_v31 }
 0x787   :  { %4459 = vst.msk [vmem:[%s8677_s8] sm:$0xff] %vm4458_vm10, %v4442_v29 }
 0x78b   :  { %v5517_v15 = vpop.f32.mrb[74].mxu0 }
 0x78c   :  { %v4363_v1 = vadd.f32 %v5517_v15, %v8555_v54  ;;  %v4357_v63 = vpop.f32.mrb[75].mxu0 }
 0x78d   :  { %v4358_v4 = vadd.f32 %v8555_v54, %v4357_v63 }
 0x78e   :  { %v4429_v20 = vadd.f32 %v4363_v1, %v8895_v12  ;;  %v8914_v1 = vld [vmem:[#allocation15_spill] sm:$0xff]  ;;  %v8917_v12 = vmax.f32 %v8916_v35, 0.0 }
 0x78f   :  { %v4428_v26 = vadd.f32 %v4358_v4, %v8897_v55  ;;  %v8915_v63 = vmax.f32 %v8914_v1, 0.0 }
 0x790   :  { %v4445_v60 = vmax.f32 %v4429_v20, 0.0 }
 0x791   :  { %v4444_v49 = vmax.f32 %v4428_v26, 0.0 }
 0x792   :  { %4462 = vst.msk [vmem:[%s8677_s8 + $0x18] sm:$0xff] %vm4458_vm10, %v4445_v60 }
 0x793   :  { %4461 = vst.msk [vmem:[%s8677_s8 + $0x10] sm:$0xff] %vm4458_vm10, %v4444_v49  ;;  %v5520_v41 = vpop.f32.mrb[76].mxu0 }
 0x794   :  { %v4373_v46 = vadd.f32 %v5520_v41, %v8555_v54  ;;  %v4367_v58 = vpop.f32.mrb[77].mxu0 }
 0x795   :  { %v4368_v40 = vadd.f32 %v8555_v54, %v4367_v58 }
 0x796   :  { %v4431_v50 = vadd.f32 %v4373_v46, %v8899_v62  ;;  %v8918_v46 = vld [vmem:[#allocation17_spill] sm:$0xff]  ;;  %v8921_v62 = vmax.f32 %v8920_v53, 0.0 }
 0x797   :  { %v4430_v42 = vadd.f32 %v4368_v40, %v8901_v2  ;;  %v8919_v58 = vmax.f32 %v8918_v46, 0.0 }
 0x798   :  { %v4447_v43 = vmax.f32 %v4431_v50, 0.0 }
 0x799   :  { %v4446_v24 = vmax.f32 %v4430_v42, 0.0 }
 0x79a   :  { %4464 = vst.msk [vmem:[%s8677_s8 + $0x28] sm:$0xff] %vm4458_vm10, %v4447_v43 }
 0x79b   :  { %4463 = vst.msk [vmem:[%s8677_s8 + $0x20] sm:$0xff] %vm4458_vm10, %v4446_v24  ;;  %v5523_v48 = vpop.f32.mrb[78].mxu0 }
 0x79c   :  { %v4383_v13 = vadd.f32 %v5523_v48, %v8555_v54  ;;  %v4377_v59 = vpop.f32.mrb[79].mxu0 }
 0x79d   :  { %v4378_v44 = vadd.f32 %v8555_v54, %v4377_v59 }
 0x79e   :  { %v4433_v45 = vadd.f32 %v4383_v13, %v8903_v19 }
 0x79f   :  { %v4432_v9 = vadd.f32 %v4378_v44, %v8905_v22 }
 0x7a0   :  { %v4449_v34 = vmax.f32 %v4433_v45, 0.0 }
 0x7a1   :  { %v4448_v33 = vmax.f32 %v4432_v9, 0.0 }
 0x7a2   :  { %4466 = vst.msk [vmem:[%s8677_s8 + $0x38] sm:$0xff] %vm4458_vm10, %v4449_v34 }
 0x7a3   :  { %4465 = vst.msk [vmem:[%s8677_s8 + $0x30] sm:$0xff] %vm4458_vm10, %v4448_v33 }
 0x7b5   :  { %v5526_v47 = vpop.f32.mrb[80].mxu0 }
 0x7b6   :  { %v4393_v51 = vadd.f32 %v5526_v47, %v8555_v54  ;;  %v4387_v11 = vpop.f32.mrb[81].mxu0 }
 0x7b7   :  { %v4388_v52 = vadd.f32 %v8555_v54, %v4387_v11 }
 0x7b8   :  { %v4435_v21 = vadd.f32 %v4393_v51, %v8907_v23 }
 0x7b9   :  { %v4434_v7 = vadd.f32 %v4388_v52, %v8909_v28  ;;  %v5529_v56 = vpop.f32.mrb[82].mxu0 }
 0x7ba   :  { %v4451_v10 = vmax.f32 %v4435_v21, 0.0  ;;  %v4403_v17 = vadd.f32 %v5529_v56, %v8555_v54  ;;  %v4397_v27 = vpop.f32.mrb[83].mxu0 }
 0x7bb   :  { %v4450_v38 = vmax.f32 %v4434_v7, 0.0  ;;  %v4398_v18 = vadd.f32 %v8555_v54, %v4397_v27 }
 0x7bc   :  { %4468 = vst.msk [vmem:[%s8677_s8 + $0x48] sm:$0xff] %vm4458_vm10, %v4451_v10  ;;  %v4437_v0 = vadd.f32 %v4403_v17, %v8911_v8 }
 0x7bd   :  { %4467 = vst.msk [vmem:[%s8677_s8 + $0x40] sm:$0xff] %vm4458_vm10, %v4450_v38  ;;  %v4436_v61 = vadd.f32 %v4398_v18, %v8913_v25  ;;  %v5532_v16 = vpop.f32.mrb[84].mxu0 }
 0x7be   :  { %v4453_v37 = vmax.f32 %v4437_v0, 0.0  ;;  %v4413_v3 = vadd.f32 %v5532_v16, %v8555_v54  ;;  %v4407_v31 = vpop.f32.mrb[85].mxu0 }
 0x7bf   :  { %v4452_v29 = vmax.f32 %v4436_v61, 0.0  ;;  %v4408_v15 = vadd.f32 %v8555_v54, %v4407_v31 }
 0x7c0   :  { %4470 = vst.msk [vmem:[%s8677_s8 + $0x58] sm:$0xff] %vm4458_vm10, %v4453_v37  ;;  %v4439_v4 = vadd.f32 %v4413_v3, %v8915_v63 }
 0x7c1   :  { %4469 = vst.msk [vmem:[%s8677_s8 + $0x50] sm:$0xff] %vm4458_vm10, %v4452_v29  ;;  %v4438_v20 = vadd.f32 %v4408_v15, %v8917_v12  ;;  %v5535_v5 = vpop.f32.mrb[86].mxu0 }
 0x7c2   :  { %v4455_v55 = vmax.f32 %v4439_v4, 0.0  ;;  %v4423_v26 = vadd.f32 %v5535_v5, %v8555_v54  ;;  %v4417_v60 = vpop.f32.mrb[87].mxu0 }
 0x7c3   :  { %v4454_v49 = vmax.f32 %v4438_v20, 0.0  ;;  %v4418_v41 = vadd.f32 %v8555_v54, %v4417_v60 }
 0x7c4   :  { %4472 = vst.msk [vmem:[%s8677_s8 + $0x68] sm:$0xff] %vm4458_vm10, %v4455_v55  ;;  %v4441_v40 = vadd.f32 %v4423_v26, %v8919_v58 }
 0x7c5   :  { %4471 = vst.msk [vmem:[%s8677_s8 + $0x60] sm:$0xff] %vm4458_vm10, %v4454_v49  ;;  %v4440_v50 = vadd.f32 %v4418_v41, %v8921_v62 }
 0x7c6   :  { %v4457_v6 = vmax.f32 %v4441_v40, 0.0 }
 0x7c7   :  { %v4456_v2 = vmax.f32 %v4440_v50, 0.0 }
 0x7c8   :  { %4474 = vst.msk [vmem:[%s8677_s8 + $0x78] sm:$0xff] %vm4458_vm10, %v4457_v6 }
 0x7c9   :  { %4473 = vst.msk [vmem:[%s8677_s8 + $0x70] sm:$0xff] %vm4458_vm10, %v4456_v2 }

</bundles_post_ra>
